<compile_context>
chip_gen: v7x
topology: tpu7x:2x2x1
jax: 0.10.0
libtpu: 0.0.40
codegen_flags: <defaults>
</compile_context>

<pallas_src>
import functools
import math

import jax
import jax.numpy as jnp
from jax import lax
from jax.experimental import pallas as pl
from jax.experimental.pallas import tpu as pltpu


def _round_up(x: int, m: int) -> int:
    return ((x + m - 1) // m) * m


# ---------------------------------------------------------------------------
# ALiBi-style slope construction (same as build_slope_tensor in the PyTorch ref)
# ---------------------------------------------------------------------------
def build_slope_tensor(n_heads: int) -> jnp.ndarray:
    def get_slopes_power_of_2(n):
        start = 2 ** (-(2 ** -(math.log2(n) - 3)))
        ratio = start
        return [start * ratio ** i for i in range(n)]

    def get_slopes(n):
        if math.log2(n).is_integer():
            return get_slopes_power_of_2(n)
        closest = 2 ** math.floor(math.log2(n))
        return (get_slopes_power_of_2(closest)
                + get_slopes(2 * closest)[0::2][: n - closest])

    return jnp.asarray(get_slopes(n_heads), dtype=jnp.float32)  # (H,)


# ---------------------------------------------------------------------------
# Tiled linear projection: x @ w + b   (bf16 operands, f32 accumulation)
# ---------------------------------------------------------------------------
def _linear_kernel(x_ref, w_ref, b_ref, o_ref, acc_ref):
    @pl.when(pl.program_id(2) == 0)
    def _():
        acc_ref[...] = jnp.zeros_like(acc_ref)

    acc_ref[...] += jnp.dot(x_ref[...].astype(jnp.bfloat16),
                            w_ref[...].astype(jnp.bfloat16),
                            preferred_element_type=jnp.float32)

    @pl.when(pl.program_id(2) == pl.num_programs(2) - 1)
    def _():
        o_ref[...] = (acc_ref[...] + b_ref[...]).astype(o_ref.dtype)


def pallas_linear(x2d, w, b, *, out_dtype=jnp.float32, tm=512, tn=512, tk=None):
    """x2d: (M, Cin) @ w: (Cin, Cout) + b: (Cout,) -> (M, Cout), tiled."""
    M, Cin = x2d.shape
    Cout = w.shape[1]

    if tk is None:
        # Collapse the reduction axis when it fits (no accumulator revisits).
        tk = Cin if Cin <= 1024 else 512
    tm = min(tm, _round_up(M, 8))
    tn = min(tn, _round_up(Cout, 128))
    tk = min(tk, _round_up(Cin, 128))

    # Pad to tile multiples instead of falling back to giant single tiles.
    Mp, Np, Kp = _round_up(M, tm), _round_up(Cout, tn), _round_up(Cin, tk)
    if (Mp, Kp) != (M, Cin):
        x2d = jnp.pad(x2d, ((0, Mp - M), (0, Kp - Cin)))
    if (Kp, Np) != (Cin, Cout):
        w = jnp.pad(w, ((0, Kp - Cin), (0, Np - Cout)))
    if Np != Cout:
        b = jnp.pad(b, (0, Np - Cout))

    flops = 2 * Mp * Kp * Np
    bytes_accessed = int(x2d.dtype.itemsize * Mp * Kp + 4 * Kp * Np
                         + jnp.dtype(out_dtype).itemsize * Mp * Np + 4 * Np)

    out = pl.pallas_call(
        _linear_kernel,
        out_shape=jax.ShapeDtypeStruct((Mp, Np), out_dtype),
        grid=(Mp // tm, Np // tn, Kp // tk),
        in_specs=[
            pl.BlockSpec((tm, tk), lambda i, j, k: (i, k)),
            pl.BlockSpec((tk, tn), lambda i, j, k: (k, j)),
            pl.BlockSpec((1, tn), lambda i, j, k: (0, j)),
        ],
        out_specs=pl.BlockSpec((tm, tn), lambda i, j, k: (i, j)),
        scratch_shapes=[pltpu.VMEM((tm, tn), jnp.float32)],
        compiler_params=pltpu.CompilerParams(
            dimension_semantics=("parallel", "parallel", "arbitrary"),
            vmem_limit_bytes=32 * 1024 * 1024,
        ),
        cost_estimate=pl.CostEstimate(
            flops=flops, transcendentals=0, bytes_accessed=bytes_accessed),
    )(x2d, w, b.reshape(1, Np))

    if (Mp, Np) != (M, Cout):
        out = out[:M, :Cout]
    return out


# ---------------------------------------------------------------------------
# Blocked lightning attention (Lightning-Attention-2 style recurrence)
# ---------------------------------------------------------------------------
def _decay_tables(slopes, tq):
    """Host-side decay tables: no transcendentals inside the kernel."""
    r = jnp.arange(tq, dtype=jnp.float32)
    diff = r[:, None] - r[None, :]                                      # (tq,tq)
    s = slopes[:, None, None]
    mask = jnp.where(diff[None] >= 0.0,
                     jnp.exp(-s * jnp.maximum(diff[None], 0.0)),
                     0.0)                                               # (H,tq,tq)
    q_dec = jnp.exp(-slopes[:, None] * r[None, :])[..., None]           # (H,tq,1)
    k_dec = jnp.exp(-slopes[:, None] * (tq - r)[None, :])[..., None]    # (H,tq,1)
    b_dec = jnp.exp(-slopes * float(tq))                                # (H,)
    return mask, q_dec, k_dec, b_dec


def _lightning_attn_kernel(q_ref, k_ref, v_ref, mask_ref, qdec_ref, kdec_ref,
                           bdec_ref, o_ref, kv_ref):
    """One (batch, head, query-block) grid step.

    q_ref/k_ref/v_ref : (1, tq, D) bf16 per-head views of the fused qkv output
    mask_ref          : (1, tq, tq) f32 intra-block causal decay mask
    qdec_ref/kdec_ref : (1, tq, 1) f32 per-row decay factors
    bdec_ref          : (H,) f32 per-block decay scalars (SMEM)
    o_ref             : (1, tq, D) output block for this head
    kv_ref            : (D, D) f32 running kv state (VMEM scratch)
    """
    h = pl.program_id(1)

    # First query block of this (batch, head) sweep: reset the recurrence.
    @pl.when(pl.program_id(2) == 0)
    def _():
        kv_ref[...] = jnp.zeros_like(kv_ref)

    q = q_ref[0]                       # (tq, D) bf16
    k = k_ref[0]
    v = v_ref[0]
    kv = kv_ref[...]                   # (D, D) f32 state before this block

    # Intra (diagonal) block: (Q K^T) * decay_mask, then @ V.
    scores = lax.dot_general(q, k, (((1,), (1,)), ((), ())),
                             preferred_element_type=jnp.float32)        # (tq,tq)
    p = (scores * mask_ref[0]).astype(jnp.bfloat16)
    o_intra = jnp.dot(p, v, preferred_element_type=jnp.float32)         # (tq, D)

    # Inter block: (Q * exp(-s*c)) @ KV_state.
    q_scaled = (q.astype(jnp.float32) * qdec_ref[0]).astype(jnp.bfloat16)
    o_inter = jnp.dot(q_scaled, kv.astype(jnp.bfloat16),
                      preferred_element_type=jnp.float32)               # (tq, D)

    o_ref[0] = (o_intra + o_inter).astype(o_ref.dtype)

    # KV state update: KV <- exp(-s*tq) * KV + (K * exp(-s*(tq-c)))^T V.
    k_scaled = (k.astype(jnp.float32) * kdec_ref[0]).astype(jnp.bfloat16)
    kv_ref[...] = bdec_ref[h] * kv + lax.dot_general(
        k_scaled, v, (((0,), (0,)), ((), ())),
        preferred_element_type=jnp.float32)


def lightning_attn_fused(qkv3, slopes, num_heads, head_dim, *,
                         block_q=128, out_dtype=jnp.bfloat16):
    """Blocked lightning attention reading per-head q/k/v column blocks straight
    out of the fused (B, N, 3C) qkv projection; writes lane-dense (B, N, C)."""
    B, N, C3 = qkv3.shape
    C = C3 // 3
    H, D = num_heads, head_dim
    assert C == H * D
    # TODO(synk): support head_dim not a multiple of 128 (would need the fused
    # (1, tq, 3C) block variant with in-kernel head slicing).
    assert D % 128 == 0, "head_dim must be a multiple of 128"

    tq = min(block_q, _round_up(N, 8))
    Np = _round_up(N, tq)
    if Np != N:
        # Zero-padded keys/values contribute nothing to scores or the kv state
        # (and come after all real positions); padded query rows are sliced off.
        qkv3 = jnp.pad(qkv3, ((0, 0), (0, Np - N), (0, 0)))
    nq = Np // tq

    mask, q_dec, k_dec, b_dec = _decay_tables(slopes, tq)

    flops = int(4 * B * H * Np * D * (tq + D))
    bytes_accessed = int(qkv3.dtype.itemsize * 3 * B * Np * C
                         + jnp.dtype(out_dtype).itemsize * B * Np * C)

    out = pl.pallas_call(
        _lightning_attn_kernel,
        out_shape=jax.ShapeDtypeStruct((B, Np, C), out_dtype),
        grid=(B, H, nq),
        in_specs=[
            # Per-head q / k / v column blocks of the fused qkv projection.
            pl.BlockSpec((1, tq, D), lambda b, h, qi: (b, qi, h)),
            pl.BlockSpec((1, tq, D), lambda b, h, qi, H=H: (b, qi, H + h)),
            pl.BlockSpec((1, tq, D), lambda b, h, qi, H=H: (b, qi, 2 * H + h)),
            # Precomputed decay tables (block index only changes with h).
            pl.BlockSpec((1, tq, tq), lambda b, h, qi: (h, 0, 0)),
            pl.BlockSpec((1, tq, 1), lambda b, h, qi: (h, 0, 0)),
            pl.BlockSpec((1, tq, 1), lambda b, h, qi: (h, 0, 0)),
            pl.BlockSpec(memory_space=pltpu.MemorySpace.SMEM),
        ],
        out_specs=pl.BlockSpec((1, tq, D), lambda b, h, qi: (b, qi, h)),
        scratch_shapes=[pltpu.VMEM((D, D), jnp.float32)],
        compiler_params=pltpu.CompilerParams(
            # Batch/head axes shard across TensorCores; the query-block axis
            # carries the kv-state recurrence and must stay sequential and
            # innermost.
            dimension_semantics=("parallel", "parallel", "arbitrary"),
            vmem_limit_bytes=32 * 1024 * 1024,
        ),
        cost_estimate=pl.CostEstimate(
            flops=flops, transcendentals=0, bytes_accessed=bytes_accessed),
    )(qkv3, qkv3, qkv3, mask, q_dec, k_dec, b_dec)

    return out if Np == N else out[:, :N, :]


# ---------------------------------------------------------------------------
# Module equivalent
# ---------------------------------------------------------------------------
class MinimalLightningAttention2:
    def __init__(self, dim, num_heads, key):
        self.dim = dim
        self.num_heads = num_heads
        self.head_dim = dim // num_heads
        k1, k2, k3, k4 = jax.random.split(key, 4)
        scale = 1.0 / math.sqrt(dim)
        # stored already transposed: (Cin, Cout)
        self.w_qkv = jax.random.normal(k1, (dim, 3 * dim), jnp.float32) * scale
        self.b_qkv = jax.random.normal(k2, (3 * dim,), jnp.float32) * scale
        self.w_out = jax.random.normal(k3, (dim, dim), jnp.float32) * scale
        self.b_out = jax.random.normal(k4, (dim,), jnp.float32) * scale
        self.slopes = build_slope_tensor(num_heads)

    def __call__(self, x):
        B, N, C = x.shape
        # qkv projection emitted in bf16: halves the inter-kernel HBM traffic
        # and feeds the attention matmuls with MXU-native operands.
        qkv = pallas_linear(x.reshape(B * N, C), self.w_qkv, self.b_qkv,
                            out_dtype=jnp.bfloat16)
        qkv = qkv.reshape(B, N, 3 * C)          # free reshape; no transpose
        attn = lightning_attn_fused(qkv, self.slopes, self.num_heads,
                                    self.head_dim,
                                    out_dtype=jnp.bfloat16)   # (B, N, C)
        out = pallas_linear(attn.reshape(B * N, C), self.w_out, self.b_out,
                            out_dtype=jnp.float32)
        return out.reshape(B, N, C)


# ---------------------------------------------------------------------------
# Pure-JAX reference for correctness
# ---------------------------------------------------------------------------
def reference_forward(mod, x):
    B, N, C = x.shape
    H, D = mod.num_heads, mod.head_dim
    qkv = x.reshape(B * N, C) @ mod.w_qkv + mod.b_qkv
    qkv = qkv.reshape(B, N, 3, H, D).transpose(2, 0, 3, 1, 4)
    q, k, v = qkv[0], qkv[1], qkv[2]
    t = jnp.arange(N, dtype=jnp.float32)
    diff = t[:, None] - t[None, :]
    decay = jnp.where(diff >= 0,
                      jnp.exp(-mod.slopes[:, None, None] * jnp.maximum(diff, 0.0)),
                      0.0)                                            # (H, N, N)
    scores = jnp.einsum("bhnd,bhmd->bhnm", q, k) * decay[None]
    attn = jnp.einsum("bhnm,bhmd->bhnd", scores, v)
    out = attn.transpose(0, 2, 1, 3).reshape(B, N, C)
    return (out.reshape(B * N, C) @ mod.w_out + mod.b_out).reshape(B, N, C)


if __name__ == "__main__":
    key = jax.random.PRNGKey(0)
    k_param, k_x = jax.random.split(key)

    # head_dim = 128 -> lane-aligned per-head blocks, full MXU contraction width.
    B, N, dim, num_heads = 2, 256, 512, 4
    mod = MinimalLightningAttention2(dim, num_heads, k_param)
    x = jax.random.normal(k_x, (B, N, dim), jnp.float32)

    y = jax.block_until_ready(mod(x))
    assert y.shape == (B, N, dim)

    with jax.default_matmul_precision("float32"):
        y_ref = reference_forward(mod, x)
    rel_err = jnp.max(jnp.abs(y - y_ref)) / (jnp.max(jnp.abs(y_ref)) + 1e-6)
    # bf16 matmul operands with f32 accumulation vs. an f32 reference.
    assert rel_err < 2e-2, f"mismatch vs reference: normalized max err {rel_err}"

    print("KERNEL_OK")
</pallas_src>

<mosaic_0001>
module attributes {stable_mosaic.version = 11 : i64} {
  func.func @_linear_kernel(%arg0: i32, %arg1: i32, %arg2: i32, %arg3: memref<512x512xf32, #tpu.memory_space<vmem>>, %arg4: memref<512x512xf32, #tpu.memory_space<vmem>>, %arg5: memref<1x512xf32, #tpu.memory_space<vmem>>, %arg6: memref<512x512xbf16, #tpu.memory_space<vmem>>, %arg7: memref<512x512xf32, #tpu.memory_space<vmem>>) attributes {dimension_semantics = [#tpu.dimension_semantics<parallel>, #tpu.dimension_semantics<parallel>, #tpu.dimension_semantics<arbitrary>], iteration_bounds = array<i64: 1, 3, 1>, scalar_prefetch = 0 : i64, scratch_operands = 1 : i64, tpu.core_type = #tpu.core_type<tc>, window_params = [{transform_indices = @transform_0, window_bounds = array<i64: 512, 512>}, {transform_indices = @transform_1, window_bounds = array<i64: 512, 512>}, {transform_indices = @transform_2, window_bounds = array<i64: 1, 512>}, {transform_indices = @transform_3, window_bounds = array<i64: 512, 512>}]} {
    %c0_i32 = arith.constant 0 : i32
    %0 = arith.cmpi eq, %arg2, %c0_i32 : i32
    %1 = arith.extui %0 : i1 to i32
    %c0_i32_0 = arith.constant 0 : i32
    %2 = arith.cmpi ne, %1, %c0_i32_0 : i32
    scf.if %2 {
      %cst_10 = arith.constant 0.000000e+00 : f32
      %14 = vector.broadcast %cst_10 : f32 to vector<512x512xf32>
      %c0_11 = arith.constant 0 : index
      %c0_12 = arith.constant 0 : index
      %15 = vector.load %arg7[%c0_11, %c0_12] : memref<512x512xf32, #tpu.memory_space<vmem>>, vector<512x512xf32>
      tpu.vector_store %arg7[%c0_11, %c0_12], %14 {strides = array<i32>} : memref<512x512xf32, #tpu.memory_space<vmem>>, vector<512x512xf32>,
    } else {
    }
    %c0 = arith.constant 0 : index
    %c0_1 = arith.constant 0 : index
    %3 = vector.load %arg7[%c0, %c0_1] : memref<512x512xf32, #tpu.memory_space<vmem>>, vector<512x512xf32>
    %c0_2 = arith.constant 0 : index
    %c0_3 = arith.constant 0 : index
    %4 = vector.load %arg3[%c0_2, %c0_3] : memref<512x512xf32, #tpu.memory_space<vmem>>, vector<512x512xf32>
    %5 = arith.truncf %4 : vector<512x512xf32> to vector<512x512xbf16>
    %c0_4 = arith.constant 0 : index
    %c0_5 = arith.constant 0 : index
    %6 = vector.load %arg4[%c0_4, %c0_5] : memref<512x512xf32, #tpu.memory_space<vmem>>, vector<512x512xf32>
    %7 = arith.truncf %6 : vector<512x512xf32> to vector<512x512xbf16>
    %cst = arith.constant dense<0.000000e+00> : vector<512x512xf32>
    %8 = tpu.matmul %5, %7, %cst {dimension_numbers = #tpu.dot_dimension_numbers<[1], [0], [0], [1], [0, 0, 1, 1], [], []>} : vector<512x512xbf16>, vector<512x512xbf16>, vector<512x512xf32> -> vector<512x512xf32>
    %9 = arith.addf %3, %8 : vector<512x512xf32>
    %c0_6 = arith.constant 0 : index
    %c0_7 = arith.constant 0 : index
    %10 = vector.load %arg7[%c0_6, %c0_7] : memref<512x512xf32, #tpu.memory_space<vmem>>, vector<512x512xf32>
    tpu.vector_store %arg7[%c0_6, %c0_7], %9 {strides = array<i32>} : memref<512x512xf32, #tpu.memory_space<vmem>>, vector<512x512xf32>,
    %c0_i32_8 = arith.constant 0 : i32
    %11 = arith.cmpi eq, %arg2, %c0_i32_8 : i32
    %12 = arith.extui %11 : i1 to i32
    %c0_i32_9 = arith.constant 0 : i32
    %13 = arith.cmpi ne, %12, %c0_i32_9 : i32
    scf.if %13 {
      %c0_10 = arith.constant 0 : index
      %c0_11 = arith.constant 0 : index
      %14 = vector.load %arg7[%c0_10, %c0_11] : memref<512x512xf32, #tpu.memory_space<vmem>>, vector<512x512xf32>
      %c0_12 = arith.constant 0 : index
      %c0_13 = arith.constant 0 : index
      %15 = vector.load %arg5[%c0_12, %c0_13] : memref<1x512xf32, #tpu.memory_space<vmem>>, vector<1x512xf32>
      %16 = vector.broadcast %15 : vector<1x512xf32> to vector<512x512xf32>
      %17 = arith.addf %14, %16 : vector<512x512xf32>
      %18 = arith.truncf %17 : vector<512x512xf32> to vector<512x512xbf16>
      %c0_14 = arith.constant 0 : index
      %c0_15 = arith.constant 0 : index
      %19 = vector.load %arg6[%c0_14, %c0_15] : memref<512x512xbf16, #tpu.memory_space<vmem>>, vector<512x512xbf16>
      tpu.vector_store %arg6[%c0_14, %c0_15], %18 {strides = array<i32>} : memref<512x512xbf16, #tpu.memory_space<vmem>>, vector<512x512xbf16>,
    } else {
    }
    return
  }
  func.func @transform_0(%arg0: i32, %arg1: i32, %arg2: i32) -> (i32, i32) {
    %c0_i32 = arith.constant 0 : i32
    return %arg0, %arg2 : i32, i32
  }
  func.func @transform_1(%arg0: i32, %arg1: i32, %arg2: i32) -> (i32, i32) {
    %c0_i32 = arith.constant 0 : i32
    return %arg2, %arg1 : i32, i32
  }
  func.func @transform_2(%arg0: i32, %arg1: i32, %arg2: i32) -> (i32, i32) {
    %c0_i32 = arith.constant 0 : i32
    %c0_i32_0 = arith.constant 0 : i32
    return %c0_i32, %arg1 : i32, i32
  }
  func.func @transform_3(%arg0: i32, %arg1: i32, %arg2: i32) -> (i32, i32) {
    %c0_i32 = arith.constant 0 : i32
    return %arg0, %arg1 : i32, i32
  }
}

</mosaic_0001>

<bundles_post_ra>
// kernel: tpu_custom_call.1
= control target key start
LH: loop header
LB: loop body
LE: loop exit
PB: predicated region body
PF: predicated region fallthrough
CT: control target
= control target key end

     0   :  { %s6811_s0 = inlined_call_operand.hbm [shape: f32[512,512], index: 0, kind: input, shape index: {}]   ;;  %s6812_s1 = inlined_call_operand.hbm [shape: f32[512,1536], index: 1, kind: input, shape index: {}]   ;;  %s6813_s2 = inlined_call_operand.hbm [shape: f32[1,1536], index: 2, kind: input, shape index: {}]   ;;  %s6814_s3 = inlined_call_operand.hbm [shape: bf16[512,1536], index: 3, kind: output, shape index: {}]  }
   0x1   :  { %6822 = sst [smem:[#allocation13_spill]] %s6812_s1 }
   0x2   :  { %8 = vsyncpa [#allocation4], 0 }
   0x3   :  { %9 = vsyncpa [#allocation7], 0 }
   0x4   :  { %11 = vsyncpa [#allocation7 + $0x1], 0 }
   0x5   :  { %12 = vsyncpa [#allocation5], 0 }
   0x6   :  { %14 = vsyncpa [#allocation5 + $0x1], 0  ;;  %s5896_s12 = smov 0   ;;  %s5898_s13 = smov 0  }
   0x7   :  { %s5900_s14 = smov 0   ;;  %s5902_s15 = smov 0  }
   0x8   :  { %s5904_s16 = smov 0   ;;  %s5906_s17 = smov 0  }
   0x9 LB: > { %s35_s18 = sadd.s32 1, %s5860_s16  ;;  %s76_s19 = sadd.s32 1, %s5852_s14  ;;  %s5864_s17 = sphi %s5906_s17, %s20_s17   ;;  %s5860_s16 = sphi %s5904_s16, %s6844_s16   ;;  %s5856_s15 = sphi %s5902_s15, %s6843_s15   ;;  %s5852_s14 = sphi %s5900_s14, %s6842_s14   ;;  %s5848_s13 = sphi %s5898_s13, %s6841_s13   ;;  %s5844_s12 = sphi %s5896_s12, %s6840_s12  }
   0xa   : > { %p37_p0 = scmp.ge.s32.totalorder %s35_s18, 3  ;;  %p83_p1 = scmp.ne.s32.totalorder %s5852_s14, %s5848_s13 }
   0xb   : > { %p84_p2 = scmp.eq.s32.totalorder %s5864_s17, 0  ;;  %p5632_p5 = scmp.lt.s32.totalorder %s5864_s17, 3 }
   0xc   : > { %s6846_s18 = smov (%p37_p0, %s35_s18), 0  ;;  %s186_s22 = sand.u32 1, %s5864_s17  }
   0xd   : > { %p5936_p3 = por %p84_p2, %p83_p1  ;;  %s72_s21 = ssub.s32 %s5860_s16, %s6846_s18 }
   0xe   : > { %p74_p4 = scmp.eq.s32.totalorder %s72_s21, 0  ;;  %s188_s23 = sand.u32 1, %s5852_s14  }
   0xf   : > { %s5075_s25 = sshll.u32 %s188_s23, 11  ;;  %s5219_s26 = sshll.u32 %s5860_s16, 9 }
  0x10   : > { %s5946_s24 = scalar_select %p74_p4, %s5852_s14, %s76_s19  }
  0x11   : > { %s6824_s1 = sld [smem:[#allocation13_spill]]  ;;  %s190_s30 = scalar_lea.vmem [#allocation6], %s5075_s25 }
  0x12   : > { %s200_s4 = sshll.u32 %s190_s30, 4  ;;  %p5960_p6 = pnand %p5632_p5, %p5936_p3  ;;  %s5956_s4 = int_to_ptr.vmem [resolvable:$true] %s200_s4 }
  0x13   : > { %s5964_s6 = scalar_lea.sflag [#allocation7], %s186_s22 }
  0x14   : > { %p5692_p8 = pneg %p5960_p6 }
  0x17   : > { %s5954_s29 = scalar_lea.hbm %s6824_s1, %s5219_s26  ;;  %s5695_s10 = scalar_lea.hbm %s6824_s1, 98304 }
  0x18   : > { %s5690_s7 = scalar_lea.hbm %s5954_s29, 32768  ;;  %p5696_p11 = scmp.lt.u32.totalorder %s5954_s29, %s6824_s1 }
  0x19   : > { %p5691_p7 = scmp.ne.s32.totalorder %s5954_s29, %s5690_s7  ;;  %p5697_p12 = scmp.lt.u32.totalorder %s5695_s10, %s5690_s7 }
  0x1a   : > { %p5699_p0 = scmp.lt.u32.totalorder %s5690_s7, %s5954_s29 }
  0x1b   : > { %p5693_p9 = pnand %p5692_p8, %p5691_p7  ;;  %p5698_p13 = por %p5697_p12, %p5696_p11 }
  0x1d   : > { %p5694_p10 = pneg %p5693_p9  ;;  %p5700_p2 = por %p5699_p0, %p5698_p13 }
  0x1f   : > { %p5701_p3 = pnand %p5700_p2, %p5694_p10 }
  0x21   : > { %5704 = shalt.err (!%p5701_p3)
}
  0x22   : > { %s5705_s20 = scalar_lea.vmem %s5956_s4, 32768  ;;  %s5866_s21 = smov [#allocation6]  }
  0x23   : > { %p5706_p4 = scmp.ne.s32.totalorder %s5956_s4, %s5705_s20  ;;  %s5710_s22 = sshll.u32 %s5866_s21, 4  ;;  %s5711_s22 = int_to_ptr.vmem [resolvable:$false] %s5710_s22 }
  0x24   : > { %s5712_s25 = scalar_lea.vmem %s5711_s22, 65536  ;;  %p5713_p9 = scmp.lt.s32.totalorder %s5956_s4, %s5711_s22 }
  0x25   : > { %p5708_p5 = pnand %p5706_p4, %p5692_p8  ;;  %p5714_p11 = scmp.lt.s32.totalorder %s5712_s25, %s5705_s20 }
  0x27   : > { %p5709_p7 = pneg %p5708_p5  ;;  %p5715_p12 = por %p5714_p11, %p5713_p9 }
  0x29   : > { %p5716_p13 = pnand %p5715_p12, %p5709_p7 }
  0x2b   : > { %5719 = shalt.err (!%p5716_p13)
}
  0x2c   : > { %s5867_s26 = smov 1536   ;;  %s6815_s27 = smov 512  }
  0x2d   : > { %s6816_s28 = smov 32   ;;  %s5995_s30 = sadd.s32 4294967295, %s5864_s17  }
  0x2e   : > { %5623 = dma.hbm_to_vmem [thread:$0]  (!%p5960_p6), %s5954_s29, 32768, %s5956_s4, %s5964_s6, %s5867_s26, %s6815_s27, %s6816_s28  }
  0x2f   : > { %s5071_s7 = sadd.s32 4294967294, %s5864_s17   ;;  %p89_p10 = scmp.ne.s32.totalorder %s5848_s13, %s5844_s12 }
  0x30   : > { %p6817_p0 = scmp.eq.s32.totalorder %s5995_s30, 0  ;;  %p141_p2 = scmp.eq.s32.totalorder %s5995_s30, 2 }
  0x31   : > { %p147_p3 = scmp.eq.s32.totalorder %s5071_s7, 2  ;;  %p5072_p5 = scmp.ge.s32.totalorder %s5864_s17, 1 }
  0x32   : > { %p6004_p4 = por %p6817_p0, %p89_p10  ;;  %p6012_p7 = por %p141_p2, %p83_p1 }
  0x33   : > { %p6016_p9 = por %p147_p3, %p89_p10  ;;  %p154_p11 = scmp.lt.s32.totalorder %s5864_s17, 4 }
  0x34   : > { %s6826_s8 = scalar_select %p6004_p4, 1, 0 }
  0x35   : > { %s6827_s29 = scalar_select %p6012_p7, 1, 0 }
  0x36   : > { %s6828_s4 = scalar_select %p6016_p9, 1, 0 }
  0x37   : > { %s5078_s9 = sshll.u32 %s188_s23, 2  ;;  %p6023_p12 = pnand %p5072_p5, %p154_p11 }
  0x38   : > { %s5870_s11 = smov [#allocation3]   ;;  %s5220_s20 = sshll.u32 %s5860_s16, 6 }
  0x39   : > { %s6829_s10 = scalar_select %p6023_p12, 1, 0 }
  0x3a   : > { %s172_s19 = sshll.u32 %s5870_s11, 4  ;;  %p5616_p1 = pneg %p6023_p12  ;;  %s6027_s19 = int_to_ptr.vmem [resolvable:$true] %s172_s19 }
  0x3b   : > { %s6035_s25 = scalar_lea.hbm %s6813_s2, %s5220_s20  ;;  %s214_s23 = scalar_lea.vmem [#allocation8], %s5078_s9 }
  0x3c   : > { %s222_s26 = sshll.u32 %s214_s23, 4  ;;  %p6039_p13 = pnand %p5616_p1, %p6817_p0  ;;  %s223_s26 = int_to_ptr.vmem [resolvable:$true] %s222_s26 }
  0x3d   : > { %s5720_s11 = scalar_lea.hbm %s6035_s25, 64  ;;  %s5725_s22 = scalar_lea.hbm %s6813_s2, 192 }
  0x3e   : > { %s6830_s7 = scalar_select %p6039_p13, 1, 0 }
  0x3f   : > { %p5721_p10 = scmp.ne.s32.totalorder %s6035_s25, %s5720_s11  ;;  %p5726_p5 = scmp.lt.u32.totalorder %s6035_s25, %s6813_s2 }
  0x40   : > { %p5727_p11 = scmp.lt.u32.totalorder %s5725_s22, %s5720_s11  ;;  %p5729_p0 = scmp.lt.u32.totalorder %s5720_s11, %s6035_s25 }
  0x41   : > { %p5723_p2 = pnand %p5721_p10, %p5692_p8 }
  0x42   : > { %p5728_p1 = por %p5727_p11, %p5726_p5 }
  0x43   : > { %p5724_p3 = pneg %p5723_p2 }
  0x44   : > { %p5730_p9 = por %p5729_p0, %p5728_p1 }
  0x46   : > { %p5731_p7 = pnand %p5730_p9, %p5724_p3 }
  0x48   : > { %5734 = shalt.err (!%p5731_p7)
}
  0x49   : > { %s5735_s9 = scalar_lea.vmem %s223_s26, 64  ;;  %s5871_s23 = smov [#allocation8]  }
  0x4a   : > { %p5736_p4 = scmp.ne.s32.totalorder %s223_s26, %s5735_s9  ;;  %s5740_s20 = sshll.u32 %s5871_s23, 4  ;;  %s5741_s20 = int_to_ptr.vmem [resolvable:$false] %s5740_s20 }
  0x4b   : > { %s5742_s21 = scalar_lea.vmem %s5741_s20, 128  ;;  %p5743_p12 = scmp.lt.s32.totalorder %s223_s26, %s5741_s20 }
  0x4c   : > { %p5738_p10 = pnand %p5736_p4, %p5692_p8  ;;  %p5744_p13 = scmp.lt.s32.totalorder %s5742_s21, %s5735_s9 }
  0x4e   : > { %p5739_p2 = pneg %p5738_p10  ;;  %p5745_p5 = por %p5744_p13, %p5743_p12 }
  0x50   : > { %p5746_p11 = pnand %p5745_p5, %p5739_p2 }
  0x52   : > { %5749 = shalt.err (!%p5746_p11)
}
  0x53   : > { %5626 = dma.hbm_to_vmem [thread:$0]  (!%p5960_p6), %s6035_s25, 64, %s223_s26, %s5964_s6  }
  0x54   : > { %s5750_s11 = scalar_lea.hbm %s6811_s0, 32768  ;;  %p6831_p0 = scmp.ne.s32.totalorder %s6830_s7, 0 }
  0x55   : > { %p5751_p8 = scmp.ne.s32.totalorder %s6811_s0, %s5750_s11  ;;  %p5757_p12 = scmp.lt.u32.totalorder %s5750_s11, %s6811_s0 }
  0x56   : > { %p5752_p4 = pneg %p6831_p0 }
  0x58   : > { %p5753_p7 = pnand %p5752_p4, %p5751_p8 }
  0x5a   : > { %p5754_p9 = pneg %p5753_p7 }
  0x5c   : > { %p5759_p13 = pnand %p5757_p12, %p5754_p9 }
  0x5e   : > { %5762 = shalt.err (!%p5759_p13)
}
  0x5f   : > { %s5763_s5 = scalar_lea.vmem %s6027_s19, 32768  ;;  %p5771_p10 = scmp.lt.s32.totalorder %s6027_s19, %s6027_s19 }
  0x60   : > { %p5764_p6 = scmp.ne.s32.totalorder %s6027_s19, %s5763_s5  ;;  %p5772_p2 = scmp.lt.s32.totalorder %s5763_s5, %s5763_s5 }
  0x62   : > { %p5766_p3 = pnand %p5764_p6, %p5752_p4  ;;  %p5773_p5 = por %p5772_p2, %p5771_p10 }
  0x64   : > { %p5767_p1 = pneg %p5766_p3 }
  0x66   : > { %p5774_p11 = pnand %p5773_p5, %p5767_p1 }
  0x68   : > { %5777 = shalt.err (!%p5774_p11)
}
  0x69   : > { %s6832_s1 = smov 32   ;;  %s6833_s6 = smov 512  }
  0x6a   : > { %5619 = dma.hbm_to_vmem [thread:$0]  (!%p6831_p0), %s6811_s0, 32768, %s6027_s19, [#allocation4], %s6833_s6, %s6833_s6, %s6832_s1  }
  0x6b   : > { %p6834_p8 = scmp.ne.s32.totalorder %s6829_s10, 0 }
  0x6c   : > { %p6835_p4 = scmp.eq.s32.totalorder (!%p6834_p8), %s5995_s30, 0 }
  0x6d   : > { %231 = sbr.rel (%p6834_p8) target bundleno = 930 (0x3a2), region = 32 }
  0x74   : > { %5831 = dma.done.wait (%p6835_p4), [#allocation4], 32768   ;;  %p6836_p7 = pmov %p6835_p4 }
  0x75   : > { %s237_s7 = sand.u32 1, %s5995_s30   ;;  %s6095_s20 = sand.u32 1, %s5848_s13  }
  0x76   : > { %5833 = vsyncadd (%p6836_p7), [#allocation4], 4294934528  ;;  %s5083_s21 = sshll.u32 %s6095_s20, 11  ;;  %s238_s27 = scalar_lea.sflag [#allocation7], %s237_s7 }
  0x77   : > { %s6098_s28 = scalar_lea.vmem [#allocation6], %s5083_s21  ;;  %p6837_p0 = scmp.ne.s32.totalorder %s6826_s8, 0 }
  0x79   : > { %5835 = dma.done.wait (%p6837_p0), %s238_s27, 32832  }
  0x7a   : > { %5837 = vsyncadd (%p6837_p0), %s238_s27, 4294934464  ;;  %v1186_v0 = vld [vmem:[%s6098_s28 + $0x8] sm:$0xff]  ;;  %v1188_v2 = vld [vmem:[%s6098_s28 + $0x18] sm:$0xff]  ;;  %s5084_s30 = sshll.u32 %s6095_s20, 2  ;;  %s5085_s10 = sshll.u32 %s6095_s20, 10 }
  0x7b   : > { %v1190_v1 = vld [vmem:[%s6098_s28 + $0x28] sm:$0xff]  ;;  %v1192_v4 = vld [vmem:[%s6098_s28 + $0x38] sm:$0xff]  ;;  %v1185_v5 = vld [vmem:[%s6098_s28] sm:$0xff]  ;;  %s250_s8 = scalar_lea.vmem [#allocation8], %s5084_s30  ;;  %s6378_s19 = scalar_lea.vmem [#allocation9], %s5085_s10 }
  0x7c   : > { %v1442_v3 = vpack.c.bf16 %v1190_v1, %v1186_v0  ;;  %v1189_v6 = vld [vmem:[%s6098_s28 + $0x20] sm:$0xff]  ;;  %v1444_v7 = vpack.c.bf16 %v1192_v4, %v1188_v2  ;;  %v1187_v9 = vld [vmem:[%s6098_s28 + $0x10] sm:$0xff]  ;;  %v1194_v11 = vld [vmem:[%s6098_s28 + $0x48] sm:$0xff]  ;;  %s5349_s11 = sshll.u32 %s5856_s15, 8  ;;  %s4943_s22 = sshll.u32 %s6378_s19, 4  ;;  %s6760_s22 = int_to_ptr.vmem [resolvable:$true] %s4943_s22 }
  0x7d   : > { %v1441_v8 = vpack.c.bf16 %v1189_v6, %v1185_v5  ;;  %v1191_v10 = vld [vmem:[%s6098_s28 + $0x30] sm:$0xff]  ;;  %v1198_v13 = vld [vmem:[%s6098_s28 + $0x68] sm:$0xff]  ;;  %v1196_v14 = vld [vmem:[%s6098_s28 + $0x58] sm:$0xff]  ;;  %s6757_s23 = scalar_lea.hbm %s6814_s3, %s5349_s11  ;;  %s4927_s5 = scalar_lea.sflag [#allocation5], %s6095_s20 }
  0x7e   : > { %1569 = vmatprep.subr.bf16.mxu0 %v1442_v3  ;;  %v1443_v12 = vpack.c.bf16 %v1191_v10, %v1187_v9  ;;  %v1200_v15 = vld [vmem:[%s6098_s28 + $0x78] sm:$0xff]  ;;  %2275 = vmatprep.subr.bf16.mxu1 %v1444_v7  ;;  %v1446_v16 = vpack.c.bf16 %v1198_v13, %v1194_v11  ;;  %v1193_v18 = vld [vmem:[%s6098_s28 + $0x40] sm:$0xff]  ;;  %v1195_v20 = vld [vmem:[%s6098_s28 + $0x50] sm:$0xff]  ;;  %s5778_s1 = scalar_lea.vmem %s6760_s22, 16384  ;;  %p6838_p12 = scmp.ne.s32.totalorder %s6827_s29, 0 }
  0x7f   : > { %1570 = vmatpush1.bf16.msra.mxu0 %v1441_v8  ;;  %v1448_v17 = vpack.c.bf16 %v1200_v15, %v1196_v14  ;;  %v1197_v19 = vld [vmem:[%s6098_s28 + $0x60] sm:$0xff]  ;;  %v1199_v22 = vld [vmem:[%s6098_s28 + $0x70] sm:$0xff]  ;;  %v1202_v23 = vld [vmem:[%s6098_s28 + $0x88] sm:$0xff]  ;;  %p5779_p9 = scmp.ne.s32.totalorder %s6760_s22, %s5778_s1  ;;  %s5872_s6 = smov [#allocation9]  }
  0x80   : > { %2276 = vmatpush1.bf16.msra.mxu1 %v1443_v12  ;;  %v1445_v21 = vpack.c.bf16 %v1197_v19, %v1193_v18  ;;  %v1206_v24 = vld [vmem:[%s6098_s28 + $0xa8] sm:$0xff]  ;;  %1571 = vmatprep.subr.bf16.mxu0 %v1446_v16  ;;  %v1447_v25 = vpack.c.bf16 %v1199_v22, %v1195_v20  ;;  %v1204_v27 = vld [vmem:[%s6098_s28 + $0x98] sm:$0xff]  ;;  %v1201_v29 = vld [vmem:[%s6098_s28 + $0x80] sm:$0xff]  ;;  %s5782_s25 = sshll.u32 %s5872_s6, 4  ;;  %s5783_s25 = int_to_ptr.vmem [resolvable:$false] %s5782_s25 }
  0x81   : > { %2277 = vmatprep.subr.bf16.mxu1 %v1448_v17  ;;  %v1450_v26 = vpack.c.bf16 %v1206_v24, %v1202_v23  ;;  %v1208_v28 = vld [vmem:[%s6098_s28 + $0xb8] sm:$0xff]  ;;  %v1205_v31 = vld [vmem:[%s6098_s28 + $0xa0] sm:$0xff]  ;;  %v1203_v32 = vld [vmem:[%s6098_s28 + $0x90] sm:$0xff]  ;;  %p5780_p13 = pnand %p5779_p9, %p6838_p12  ;;  %s5784_s26 = scalar_lea.vmem %s5783_s25, 32768 }
  0x82   : > { %v1452_v30 = vpack.c.bf16 %v1208_v28, %v1204_v27  ;;  %v1207_v33 = vld [vmem:[%s6098_s28 + $0xb0] sm:$0xff]  ;;  %v1449_v34 = vpack.c.bf16 %v1205_v31, %v1201_v29  ;;  %v1210_v35 = vld [vmem:[%s6098_s28 + $0xc8] sm:$0xff]  ;;  %v1212_v37 = vld [vmem:[%s6098_s28 + $0xd8] sm:$0xff]  ;;  %p5785_p3 = scmp.lt.s32.totalorder %s6760_s22, %s5783_s25  ;;  %p5786_p1 = scmp.lt.s32.totalorder %s5784_s26, %s5778_s1 }
  0x83   : > { %1572 = vmatpush1.bf16.msra.mxu0 %v1445_v21  ;;  %v1214_v36 = vld [vmem:[%s6098_s28 + $0xe8] sm:$0xff]  ;;  %v1451_v38 = vpack.c.bf16 %v1207_v33, %v1203_v32  ;;  %v1216_v40 = vld [vmem:[%s6098_s28 + $0xf8] sm:$0xff]  ;;  %v1209_v41 = vld [vmem:[%s6098_s28 + $0xc0] sm:$0xff]  ;;  %p5781_p6 = pneg %p5780_p13 }
  0x84   : > { %2278 = vmatpush1.bf16.msra.mxu1 %v1447_v25  ;;  %1573 = vmatprep.subr.bf16.mxu0 %v1450_v26  ;;  %v1454_v39 = vpack.c.bf16 %v1214_v36, %v1210_v35  ;;  %v1213_v42 = vld [vmem:[%s6098_s28 + $0xe0] sm:$0xff]  ;;  %v1456_v43 = vpack.c.bf16 %v1216_v40, %v1212_v37  ;;  %v1211_v44 = vld [vmem:[%s6098_s28 + $0xd0] sm:$0xff]  ;;  %v1218_v46 = vld [vmem:[%s6098_s28 + $0x108] sm:$0xff]  ;;  %p5787_p10 = por %p5786_p1, %p5785_p3 }
  0x85   : > { %2279 = vmatprep.subr.bf16.mxu1 %v1452_v30  ;;  %v1215_v45 = vld [vmem:[%s6098_s28 + $0xf0] sm:$0xff]  ;;  %v1222_v47 = vld [vmem:[%s6098_s28 + $0x128] sm:$0xff]  ;;  %v1220_v48 = vld [vmem:[%s6098_s28 + $0x118] sm:$0xff]  ;;  %v1453_v50 = vpack.c.bf16 %v1213_v42, %v1209_v41 }
  0x86   : > { %v1224_v49 = vld [vmem:[%s6098_s28 + $0x138] sm:$0xff]  ;;  %v1455_v51 = vpack.c.bf16 %v1215_v45, %v1211_v44  ;;  %v1458_v52 = vpack.c.bf16 %v1222_v47, %v1218_v46  ;;  %v1217_v53 = vld [vmem:[%s6098_s28 + $0x100] sm:$0xff]  ;;  %v1219_v55 = vld [vmem:[%s6098_s28 + $0x110] sm:$0xff]  ;;  %p5788_p2 = pnand %p5787_p10, %p5781_p6 }
  0x87   : > { %1574 = vmatpush1.bf16.msra.mxu0 %v1449_v34  ;;  %v1221_v54 = vld [vmem:[%s6098_s28 + $0x120] sm:$0xff]  ;;  %v1460_v56 = vpack.c.bf16 %v1224_v49, %v1220_v48  ;;  %v1223_v57 = vld [vmem:[%s6098_s28 + $0x130] sm:$0xff]  ;;  %v1226_v58 = vld [vmem:[%s6098_s28 + $0x148] sm:$0xff] }
  0x88   : > { %2280 = vmatpush1.bf16.msra.mxu1 %v1451_v38  ;;  %1575 = vmatprep.subr.bf16.mxu0 %v1454_v39  ;;  %v1230_v59 = vld [vmem:[%s6098_s28 + $0x168] sm:$0xff]  ;;  %v1228_v60 = vld [vmem:[%s6098_s28 + $0x158] sm:$0xff]  ;;  %v1457_v62 = vpack.c.bf16 %v1221_v54, %v1217_v53  ;;  %v1459_v63 = vpack.c.bf16 %v1223_v57, %v1219_v55  ;;  %v1225_v1 = vld [vmem:[%s6098_s28 + $0x140] sm:$0xff] }
  0x89   : > { %2281 = vmatprep.subr.bf16.mxu1 %v1456_v43  ;;  %v1232_v61 = vld [vmem:[%s6098_s28 + $0x178] sm:$0xff]  ;;  %v1462_v0 = vpack.c.bf16 %v1230_v59, %v1226_v58  ;;  %v1229_v2 = vld [vmem:[%s6098_s28 + $0x160] sm:$0xff]  ;;  %v1227_v3 = vld [vmem:[%s6098_s28 + $0x150] sm:$0xff] }
  0x8a   : > { %v1464_v4 = vpack.c.bf16 %v1232_v61, %v1228_v60  ;;  %v1231_v5 = vld [vmem:[%s6098_s28 + $0x170] sm:$0xff]  ;;  %v1234_v6 = vld [vmem:[%s6098_s28 + $0x188] sm:$0xff]  ;;  %v1236_v8 = vld [vmem:[%s6098_s28 + $0x198] sm:$0xff]  ;;  %v1461_v10 = vpack.c.bf16 %v1229_v2, %v1225_v1 }
  0x8b   : > { %1576 = vmatpush1.bf16.msra.mxu0 %v1453_v50  ;;  %v1238_v7 = vld [vmem:[%s6098_s28 + $0x1a8] sm:$0xff]  ;;  %v1240_v9 = vld [vmem:[%s6098_s28 + $0x1b8] sm:$0xff]  ;;  %v1463_v11 = vpack.c.bf16 %v1231_v5, %v1227_v3  ;;  %v1233_v13 = vld [vmem:[%s6098_s28 + $0x180] sm:$0xff] }
  0x8c   : > { %2282 = vmatpush1.bf16.msra.mxu1 %v1455_v51  ;;  %1577 = vmatprep.subr.bf16.mxu0 %v1458_v52  ;;  %v1466_v12 = vpack.c.bf16 %v1238_v7, %v1234_v6  ;;  %v1237_v14 = vld [vmem:[%s6098_s28 + $0x1a0] sm:$0xff]  ;;  %v1235_v15 = vld [vmem:[%s6098_s28 + $0x190] sm:$0xff]  ;;  %v1468_v16 = vpack.c.bf16 %v1240_v9, %v1236_v8  ;;  %v1242_v18 = vld [vmem:[%s6098_s28 + $0x1c8] sm:$0xff] }
  0x8d   : > { %2283 = vmatprep.subr.bf16.mxu1 %v1460_v56  ;;  %v1239_v17 = vld [vmem:[%s6098_s28 + $0x1b0] sm:$0xff]  ;;  %v1246_v19 = vld [vmem:[%s6098_s28 + $0x1e8] sm:$0xff]  ;;  %v1244_v20 = vld [vmem:[%s6098_s28 + $0x1d8] sm:$0xff]  ;;  %v1465_v22 = vpack.c.bf16 %v1237_v14, %v1233_v13 }
  0x8e   : > { %v1248_v21 = vld [vmem:[%s6098_s28 + $0x1f8] sm:$0xff]  ;;  %v1467_v23 = vpack.c.bf16 %v1239_v17, %v1235_v15  ;;  %v1470_v24 = vpack.c.bf16 %v1246_v19, %v1242_v18  ;;  %v1241_v25 = vld [vmem:[%s6098_s28 + $0x1c0] sm:$0xff]  ;;  %v1243_v27 = vld [vmem:[%s6098_s28 + $0x1d0] sm:$0xff] }
  0x8f   : > { %1578 = vmatpush1.bf16.msra.mxu0 %v1457_v62  ;;  %v1245_v26 = vld [vmem:[%s6098_s28 + $0x1e0] sm:$0xff]  ;;  %v1472_v28 = vpack.c.bf16 %v1248_v21, %v1244_v20  ;;  %v1247_v29 = vld [vmem:[%s6098_s28 + $0x1f0] sm:$0xff]  ;;  %v1250_v30 = vld [vmem:[%s6098_s28 + $0x208] sm:$0xff] }
  0x90   : > { %2284 = vmatpush1.bf16.msra.mxu1 %v1459_v63  ;;  %1579 = vmatprep.subr.bf16.mxu0 %v1462_v0  ;;  %v1254_v31 = vld [vmem:[%s6098_s28 + $0x228] sm:$0xff]  ;;  %v1252_v32 = vld [vmem:[%s6098_s28 + $0x218] sm:$0xff]  ;;  %v1469_v34 = vpack.c.bf16 %v1245_v26, %v1241_v25  ;;  %v1471_v35 = vpack.c.bf16 %v1247_v29, %v1243_v27  ;;  %v1249_v37 = vld [vmem:[%s6098_s28 + $0x200] sm:$0xff] }
  0x91   : > { %2285 = vmatprep.subr.bf16.mxu1 %v1464_v4  ;;  %v1256_v33 = vld [vmem:[%s6098_s28 + $0x238] sm:$0xff]  ;;  %v1474_v36 = vpack.c.bf16 %v1254_v31, %v1250_v30  ;;  %v1253_v38 = vld [vmem:[%s6098_s28 + $0x220] sm:$0xff]  ;;  %v1251_v39 = vld [vmem:[%s6098_s28 + $0x210] sm:$0xff] }
  0x92   : > { %v1476_v40 = vpack.c.bf16 %v1256_v33, %v1252_v32  ;;  %v1255_v41 = vld [vmem:[%s6098_s28 + $0x230] sm:$0xff]  ;;  %v1258_v42 = vld [vmem:[%s6098_s28 + $0x248] sm:$0xff]  ;;  %v1260_v44 = vld [vmem:[%s6098_s28 + $0x258] sm:$0xff]  ;;  %v1473_v46 = vpack.c.bf16 %v1253_v38, %v1249_v37 }
  0x93   : > { %1580 = vmatpush1.bf16.msra.mxu0 %v1461_v10  ;;  %v1262_v43 = vld [vmem:[%s6098_s28 + $0x268] sm:$0xff]  ;;  %v1264_v45 = vld [vmem:[%s6098_s28 + $0x278] sm:$0xff]  ;;  %v1475_v47 = vpack.c.bf16 %v1255_v41, %v1251_v39  ;;  %v1257_v49 = vld [vmem:[%s6098_s28 + $0x240] sm:$0xff] }
  0x94   : > { %2286 = vmatpush1.bf16.msra.mxu1 %v1463_v11  ;;  %1581 = vmatprep.subr.bf16.mxu0 %v1466_v12  ;;  %v1478_v48 = vpack.c.bf16 %v1262_v43, %v1258_v42  ;;  %v1261_v50 = vld [vmem:[%s6098_s28 + $0x260] sm:$0xff]  ;;  %v1259_v51 = vld [vmem:[%s6098_s28 + $0x250] sm:$0xff]  ;;  %v1480_v52 = vpack.c.bf16 %v1264_v45, %v1260_v44  ;;  %v1266_v54 = vld [vmem:[%s6098_s28 + $0x288] sm:$0xff] }
  0x95   : > { %2287 = vmatprep.subr.bf16.mxu1 %v1468_v16  ;;  %v1263_v53 = vld [vmem:[%s6098_s28 + $0x270] sm:$0xff]  ;;  %v1270_v55 = vld [vmem:[%s6098_s28 + $0x2a8] sm:$0xff]  ;;  %v1268_v56 = vld [vmem:[%s6098_s28 + $0x298] sm:$0xff]  ;;  %v1477_v58 = vpack.c.bf16 %v1261_v50, %v1257_v49 }
  0x96   : > { %v1272_v57 = vld [vmem:[%s6098_s28 + $0x2b8] sm:$0xff]  ;;  %v1479_v59 = vpack.c.bf16 %v1263_v53, %v1259_v51  ;;  %v1482_v60 = vpack.c.bf16 %v1270_v55, %v1266_v54  ;;  %v1265_v61 = vld [vmem:[%s6098_s28 + $0x280] sm:$0xff]  ;;  %v1267_v63 = vld [vmem:[%s6098_s28 + $0x290] sm:$0xff] }
  0x97   : > { %1582 = vmatpush1.bf16.msra.mxu0 %v1465_v22  ;;  %v1269_v62 = vld [vmem:[%s6098_s28 + $0x2a0] sm:$0xff]  ;;  %v1484_v0 = vpack.c.bf16 %v1272_v57, %v1268_v56  ;;  %v1271_v1 = vld [vmem:[%s6098_s28 + $0x2b0] sm:$0xff]  ;;  %v1274_v2 = vld [vmem:[%s6098_s28 + $0x2c8] sm:$0xff] }
  0x98   : > { %2288 = vmatpush1.bf16.msra.mxu1 %v1467_v23  ;;  %1583 = vmatprep.subr.bf16.mxu0 %v1470_v24  ;;  %v1278_v3 = vld [vmem:[%s6098_s28 + $0x2e8] sm:$0xff]  ;;  %v1276_v4 = vld [vmem:[%s6098_s28 + $0x2d8] sm:$0xff]  ;;  %v1481_v6 = vpack.c.bf16 %v1269_v62, %v1265_v61  ;;  %v1273_v7 = vld [vmem:[%s6098_s28 + $0x2c0] sm:$0xff]  ;;  %v1483_v8 = vpack.c.bf16 %v1271_v1, %v1267_v63 }
  0x99   : > { %2289 = vmatprep.subr.bf16.mxu1 %v1472_v28  ;;  %v1280_v5 = vld [vmem:[%s6098_s28 + $0x2f8] sm:$0xff]  ;;  %v1486_v9 = vpack.c.bf16 %v1278_v3, %v1274_v2  ;;  %v1277_v10 = vld [vmem:[%s6098_s28 + $0x2e0] sm:$0xff]  ;;  %v1275_v11 = vld [vmem:[%s6098_s28 + $0x2d0] sm:$0xff] }
  0x9a   : > { %v1279_v12 = vld [vmem:[%s6098_s28 + $0x2f0] sm:$0xff]  ;;  %v1488_v13 = vpack.c.bf16 %v1280_v5, %v1276_v4  ;;  %v1282_v14 = vld [vmem:[%s6098_s28 + $0x308] sm:$0xff]  ;;  %v1284_v17 = vld [vmem:[%s6098_s28 + $0x318] sm:$0xff]  ;;  %v1485_v20 = vpack.c.bf16 %v1277_v10, %v1273_v7 }
  0x9b   : > { %1584 = vmatpush1.bf16.msra.mxu0 %v1469_v34  ;;  %v1286_v15 = vld [vmem:[%s6098_s28 + $0x328] sm:$0xff]  ;;  %v1288_v18 = vld [vmem:[%s6098_s28 + $0x338] sm:$0xff]  ;;  %v1487_v22 = vpack.c.bf16 %v1279_v12, %v1275_v11  ;;  %v1281_v24 = vld [vmem:[%s6098_s28 + $0x300] sm:$0xff] }
  0x9c   : > { %2290 = vmatpush1.bf16.msra.mxu1 %v1471_v35  ;;  %1585 = vmatprep.subr.bf16.mxu0 %v1474_v36  ;;  %v802_v16 = vld [vmem:[#allocation3 + $0x8] sm:$0xff]  ;;  %v1490_v23 = vpack.c.bf16 %v1286_v15, %v1282_v14  ;;  %v1285_v25 = vld [vmem:[%s6098_s28 + $0x320] sm:$0xff]  ;;  %v1283_v26 = vld [vmem:[%s6098_s28 + $0x310] sm:$0xff]  ;;  %v1492_v27 = vpack.c.bf16 %v1288_v18, %v1284_v17 }
  0x9d   : > { %2291 = vmatprep.subr.bf16.mxu1 %v1476_v40  ;;  %v806_v19 = vld [vmem:[#allocation3 + $0x28] sm:$0xff]  ;;  %v1287_v28 = vld [vmem:[%s6098_s28 + $0x330] sm:$0xff]  ;;  %v1292_v31 = vld [vmem:[%s6098_s28 + $0x358] sm:$0xff]  ;;  %v1489_v33 = vpack.c.bf16 %v1285_v25, %v1281_v24 }
  0x9e   : > { %v1058_v21 = vpack.c.bf16 %v806_v19, %v802_v16  ;;  %v1290_v29 = vld [vmem:[%s6098_s28 + $0x348] sm:$0xff]  ;;  %v1296_v32 = vld [vmem:[%s6098_s28 + $0x378] sm:$0xff]  ;;  %v1491_v34 = vpack.c.bf16 %v1287_v28, %v1283_v26  ;;  %v1289_v36 = vld [vmem:[%s6098_s28 + $0x340] sm:$0xff] }
  0x9f   : > { %1586 = vmatpush1.bf16.msra.mxu0 %v1473_v46  ;;  %v1294_v30 = vld [vmem:[%s6098_s28 + $0x368] sm:$0xff]  ;;  %v1293_v37 = vld [vmem:[%s6098_s28 + $0x360] sm:$0xff]  ;;  %v1291_v38 = vld [vmem:[%s6098_s28 + $0x350] sm:$0xff]  ;;  %v1496_v39 = vpack.c.bf16 %v1296_v32, %v1292_v31 }
  0xa0   : > { %2292 = vmatpush1.bf16.msra.mxu1 %v1475_v47  ;;  %1587 = vmatprep.subr.bf16.mxu0 %v1478_v48  ;;  %v1494_v35 = vpack.c.bf16 %v1294_v30, %v1290_v29  ;;  %v1295_v40 = vld [vmem:[%s6098_s28 + $0x370] sm:$0xff]  ;;  %v1298_v41 = vld [vmem:[%s6098_s28 + $0x388] sm:$0xff]  ;;  %v1300_v43 = vld [vmem:[%s6098_s28 + $0x398] sm:$0xff]  ;;  %v1493_v45 = vpack.c.bf16 %v1293_v37, %v1289_v36 }
  0xa1   : > { %2293 = vmatprep.subr.bf16.mxu1 %v1480_v52  ;;  %1601 = vmatprep.mubr.bf16.mxu0 %v1058_v21  ;;  %v1302_v42 = vld [vmem:[%s6098_s28 + $0x3a8] sm:$0xff]  ;;  %v1304_v44 = vld [vmem:[%s6098_s28 + $0x3b8] sm:$0xff]  ;;  %v1495_v46 = vpack.c.bf16 %v1295_v40, %v1291_v38  ;;  %v1297_v48 = vld [vmem:[%s6098_s28 + $0x380] sm:$0xff] }
  0xa2   : > { %2307 = vmatprep.mubr.bf16.mxu1 %v1058_v21  ;;  %v1498_v47 = vpack.c.bf16 %v1302_v42, %v1298_v41  ;;  %v1301_v49 = vld [vmem:[%s6098_s28 + $0x3a0] sm:$0xff]  ;;  %v1299_v50 = vld [vmem:[%s6098_s28 + $0x390] sm:$0xff]  ;;  %v1500_v51 = vpack.c.bf16 %v1304_v44, %v1300_v43  ;;  %v1306_v53 = vld [vmem:[%s6098_s28 + $0x3c8] sm:$0xff] }
  0xa3   : > { %1588 = vmatpush1.bf16.msra.mxu0 %v1477_v58  ;;  %v1303_v52 = vld [vmem:[%s6098_s28 + $0x3b0] sm:$0xff]  ;;  %v1310_v54 = vld [vmem:[%s6098_s28 + $0x3e8] sm:$0xff]  ;;  %v1308_v55 = vld [vmem:[%s6098_s28 + $0x3d8] sm:$0xff]  ;;  %v1497_v57 = vpack.c.bf16 %v1301_v49, %v1297_v48 }
  0xa4   : > { %2294 = vmatpush1.bf16.msra.mxu1 %v1479_v59  ;;  %1589 = vmatprep.subr.bf16.mxu0 %v1482_v60  ;;  %v1312_v56 = vld [vmem:[%s6098_s28 + $0x3f8] sm:$0xff]  ;;  %v1499_v58 = vpack.c.bf16 %v1303_v52, %v1299_v50  ;;  %v1502_v59 = vpack.c.bf16 %v1310_v54, %v1306_v53  ;;  %v1305_v60 = vld [vmem:[%s6098_s28 + $0x3c0] sm:$0xff]  ;;  %v1307_v62 = vld [vmem:[%s6098_s28 + $0x3d0] sm:$0xff] }
  0xa5   : > { %2295 = vmatprep.subr.bf16.mxu1 %v1484_v0  ;;  %v1309_v61 = vld [vmem:[%s6098_s28 + $0x3e0] sm:$0xff]  ;;  %v1504_v63 = vpack.c.bf16 %v1312_v56, %v1308_v55  ;;  %v1311_v0 = vld [vmem:[%s6098_s28 + $0x3f0] sm:$0xff]  ;;  %v1314_v1 = vld [vmem:[%s6098_s28 + $0x408] sm:$0xff] }
  0xa6   : > { %v1318_v2 = vld [vmem:[%s6098_s28 + $0x428] sm:$0xff]  ;;  %v1316_v3 = vld [vmem:[%s6098_s28 + $0x418] sm:$0xff]  ;;  %v1501_v5 = vpack.c.bf16 %v1309_v61, %v1305_v60  ;;  %v805_v7 = vld [vmem:[#allocation3 + $0x20] sm:$0xff] }
  0xa7   : > { %1590 = vmatpush1.bf16.msra.mxu0 %v1481_v6  ;;  %v1320_v4 = vld [vmem:[%s6098_s28 + $0x438] sm:$0xff]  ;;  %v801_v6 = vld [vmem:[#allocation3] sm:$0xff]  ;;  %v1315_v12 = vld [vmem:[%s6098_s28 + $0x410] sm:$0xff] }
  0xa8   : > { %2296 = vmatpush1.bf16.msra.mxu1 %v1483_v8  ;;  %1591 = vmatprep.subr.bf16.mxu0 %v1486_v9  ;;  %v1503_v8 = vpack.c.bf16 %v1311_v0, %v1307_v62  ;;  %v1506_v9 = vpack.c.bf16 %v1318_v2, %v1314_v1  ;;  %v1313_v10 = vld [vmem:[%s6098_s28 + $0x400] sm:$0xff]  ;;  %v1319_v14 = vld [vmem:[%s6098_s28 + $0x430] sm:$0xff]  ;;  %v810_v15 = vld [vmem:[#allocation3 + $0x48] sm:$0xff]  ;;  %v1057_v17 = vpack.c.bf16 %v805_v7, %v801_v6 }
  0xa9   : > { %2297 = vmatprep.subr.bf16.mxu1 %v1488_v13  ;;  %v1317_v11 = vld [vmem:[%s6098_s28 + $0x420] sm:$0xff]  ;;  %v1508_v13 = vpack.c.bf16 %v1320_v4, %v1316_v3  ;;  %v814_v16 = vld [vmem:[#allocation3 + $0x68] sm:$0xff]  ;;  %v1324_v21 = vld [vmem:[%s6098_s28 + $0x458] sm:$0xff] }
  0xaa   : > { %v1322_v18 = vld [vmem:[%s6098_s28 + $0x448] sm:$0xff]  ;;  %v1062_v24 = vpack.c.bf16 %v814_v16, %v810_v15  ;;  %v1321_v25 = vld [vmem:[%s6098_s28 + $0x440] sm:$0xff]  ;;  %v1327_v29 = vld [vmem:[%s6098_s28 + $0x470] sm:$0xff] }
  0xab   : > { %1592 = vmatpush1.bf16.msra.mxu0 %v1485_v20  ;;  %v1326_v19 = vld [vmem:[%s6098_s28 + $0x468] sm:$0xff]  ;;  %v1505_v20 = vpack.c.bf16 %v1317_v11, %v1313_v10  ;;  %v1325_v26 = vld [vmem:[%s6098_s28 + $0x460] sm:$0xff]  ;;  %v1344_v52 = vld [vmem:[%s6098_s28 + $0x4f8] sm:$0xff] }
  0xac   : > { %2298 = vmatpush1.bf16.msra.mxu1 %v1487_v22  ;;  %1593 = vmatprep.subr.bf16.mxu0 %v1490_v23  ;;  %v1328_v22 = vld [vmem:[%s6098_s28 + $0x478] sm:$0xff]  ;;  %v1507_v23 = vpack.c.bf16 %v1319_v14, %v1315_v12  ;;  %v1510_v28 = vpack.c.bf16 %v1326_v19, %v1322_v18  ;;  %v1330_v30 = vld [vmem:[%s6098_s28 + $0x488] sm:$0xff]  ;;  %v813_v36 = vld [vmem:[#allocation3 + $0x60] sm:$0xff]  ;;  %v1509_v37 = vpack.c.bf16 %v1325_v26, %v1321_v25 }
  0xad   : > { %2299 = vmatprep.subr.bf16.mxu1 %v1492_v27  ;;  %v1323_v27 = vld [vmem:[%s6098_s28 + $0x450] sm:$0xff]  ;;  %v1334_v31 = vld [vmem:[%s6098_s28 + $0x4a8] sm:$0xff]  ;;  %v1512_v32 = vpack.c.bf16 %v1328_v22, %v1324_v21  ;;  %v1329_v43 = vld [vmem:[%s6098_s28 + $0x480] sm:$0xff] }
  0xae   : > { %v818_v38 = vld [vmem:[#allocation3 + $0x88] sm:$0xff]  ;;  %v1511_v40 = vpack.c.bf16 %v1327_v29, %v1323_v27  ;;  %v1514_v41 = vpack.c.bf16 %v1334_v31, %v1330_v30  ;;  %v1333_v44 = vld [vmem:[%s6098_s28 + $0x4a0] sm:$0xff]  ;;  %v1343_v61 = vld [vmem:[%s6098_s28 + $0x4f0] sm:$0xff] }
  0xaf   : > { %1594 = vmatpush1.bf16.msra.mxu0 %v1489_v33  ;;  %v1332_v33 = vld [vmem:[%s6098_s28 + $0x498] sm:$0xff]  ;;  %v1338_v48 = vld [vmem:[%s6098_s28 + $0x4c8] sm:$0xff]  ;;  %v1513_v53 = vpack.c.bf16 %v1333_v44, %v1329_v43  ;;  %v817_v54 = vld [vmem:[#allocation3 + $0x80] sm:$0xff] }
  0xb0   : > { %2300 = vmatpush1.bf16.msra.mxu1 %v1491_v34  ;;  %1595 = vmatprep.subr.bf16.mxu0 %v1494_v35  ;;  %v1336_v34 = vld [vmem:[%s6098_s28 + $0x4b8] sm:$0xff]  ;;  %v809_v35 = vld [vmem:[#allocation3 + $0x40] sm:$0xff]  ;;  %v1342_v49 = vld [vmem:[%s6098_s28 + $0x4e8] sm:$0xff] }
  0xb1   : > { %2301 = vmatprep.subr.bf16.mxu1 %v1496_v39  ;;  %v822_v39 = vld [vmem:[#allocation3 + $0xa8] sm:$0xff]  ;;  %v1516_v42 = vpack.c.bf16 %v1336_v34, %v1332_v33  ;;  %v1518_v56 = vpack.c.bf16 %v1342_v49, %v1338_v48  ;;  %v821_v0 = vld [vmem:[#allocation3 + $0xa0] sm:$0xff]  ;;  %v1348_v1 = vld [vmem:[%s6098_s28 + $0x518] sm:$0xff] }
  0xb2   : > { %v1066_v50 = vpack.c.bf16 %v822_v39, %v818_v38  ;;  %v1346_v62 = vld [vmem:[%s6098_s28 + $0x508] sm:$0xff]  ;;  %v1352_v2 = vld [vmem:[%s6098_s28 + $0x538] sm:$0xff]  ;;  %v1347_v10 = vld [vmem:[%s6098_s28 + $0x510] sm:$0xff]  ;;  %v1065_v11 = vpack.c.bf16 %v821_v0, %v817_v54 }
  0xb3   : > { %1596 = vmatpush1.bf16.msra.mxu0 %v1493_v45  ;;  %v1331_v45 = vld [vmem:[%s6098_s28 + $0x490] sm:$0xff]  ;;  %v826_v3 = vld [vmem:[#allocation3 + $0xc8] sm:$0xff]  ;;  %v1524_v12 = vpack.c.bf16 %v1352_v2, %v1348_v1  ;;  %v1360_v18 = vld [vmem:[%s6098_s28 + $0x578] sm:$0xff] }
  0xb4   : > { %2302 = vmatpush1.bf16.msra.mxu1 %v1495_v46  ;;  %1597 = vmatprep.subr.bf16.mxu0 %v1498_v47  ;;  %v1061_v46 = vpack.c.bf16 %v813_v36, %v809_v35  ;;  %v1335_v47 = vld [vmem:[%s6098_s28 + $0x4b0] sm:$0xff]  ;;  %v830_v4 = vld [vmem:[#allocation3 + $0xe8] sm:$0xff]  ;;  %v829_v30 = vld [vmem:[#allocation3 + $0xe0] sm:$0xff] }
  0xb5   : > { %2303 = vmatprep.subr.bf16.mxu1 %v1500_v51  ;;  %v1340_v51 = vld [vmem:[%s6098_s28 + $0x4d8] sm:$0xff]  ;;  %v1515_v55 = vpack.c.bf16 %v1335_v47, %v1331_v45  ;;  %v1354_v14 = vld [vmem:[%s6098_s28 + $0x548] sm:$0xff]  ;;  %v1070_v16 = vpack.c.bf16 %v830_v4, %v826_v3  ;;  %v1355_v25 = vld [vmem:[%s6098_s28 + $0x550] sm:$0xff] }
  0xb6   : > { %v1520_v60 = vpack.c.bf16 %v1344_v52, %v1340_v51  ;;  %v1358_v15 = vld [vmem:[%s6098_s28 + $0x568] sm:$0xff]  ;;  %v1359_v27 = vld [vmem:[%s6098_s28 + $0x570] sm:$0xff]  ;;  %v1364_v31 = vld [vmem:[%s6098_s28 + $0x598] sm:$0xff] }
  0xb7   : > { %1598 = vmatpush1.bf16.msra.mxu0 %v1497_v57  ;;  %v1337_v57 = vld [vmem:[%s6098_s28 + $0x4c0] sm:$0xff]  ;;  %v1526_v22 = vpack.c.bf16 %v1358_v15, %v1354_v14  ;;  %v1366_v29 = vld [vmem:[%s6098_s28 + $0x5a8] sm:$0xff]  ;;  %v1527_v36 = vpack.c.bf16 %v1359_v27, %v1355_v25  ;;  %v1367_v43 = vld [vmem:[%s6098_s28 + $0x5b0] sm:$0xff] }
  0xb8   : > { %2304 = vmatpush1.bf16.msra.mxu1 %v1499_v58  ;;  %1599 = vmatprep.subr.bf16.mxu0 %v1502_v59  ;;  %v1341_v58 = vld [vmem:[%s6098_s28 + $0x4e0] sm:$0xff]  ;;  %v1339_v59 = vld [vmem:[%s6098_s28 + $0x4d0] sm:$0xff]  ;;  %v834_v33 = vld [vmem:[#allocation3 + $0x108] sm:$0xff] }
  0xb9   : > { %2305 = vmatprep.subr.bf16.mxu1 %v1504_v63  ;;  %v1350_v63 = vld [vmem:[%s6098_s28 + $0x528] sm:$0xff]  ;;  %v1519_v6 = vpack.c.bf16 %v1343_v61, %v1339_v59  ;;  %v1361_v38 = vld [vmem:[%s6098_s28 + $0x580] sm:$0xff]  ;;  %v1372_v47 = vld [vmem:[%s6098_s28 + $0x5d8] sm:$0xff] }
  0xba   : > { %v1522_v7 = vpack.c.bf16 %v1350_v63, %v1346_v62  ;;  %v838_v34 = vld [vmem:[#allocation3 + $0x128] sm:$0xff]  ;;  %v1365_v39 = vld [vmem:[%s6098_s28 + $0x5a0] sm:$0xff]  ;;  %v1376_v48 = vld [vmem:[%s6098_s28 + $0x5f8] sm:$0xff] }
  0xbb   : > { %1600 = vmatpush1.bf16.msra.mxu0 %v1501_v5  ;;  %v1517_v5 = vpack.c.bf16 %v1341_v58, %v1337_v57  ;;  %v1370_v44 = vld [vmem:[%s6098_s28 + $0x5c8] sm:$0xff]  ;;  %v1529_v49 = vpack.c.bf16 %v1365_v39, %v1361_v38  ;;  %v1373_v54 = vld [vmem:[%s6098_s28 + $0x5e0] sm:$0xff]  ;;  %v1375_v57 = vld [vmem:[%s6098_s28 + $0x5f0] sm:$0xff] }
  0xbc   : > { %2306 = vmatpush1.bf16.msra.mxu1 %v1503_v8  ;;  %1922 = vmatprep.subr.bf16.mxu0 %v1506_v9  ;;  %v1345_v8 = vld [vmem:[%s6098_s28 + $0x500] sm:$0xff]  ;;  %v1374_v45 = vld [vmem:[%s6098_s28 + $0x5e8] sm:$0xff]  ;;  %v1380_v61 = vld [vmem:[%s6098_s28 + $0x618] sm:$0xff] }
  0xbd   : > { %2628 = vmatprep.subr.bf16.mxu1 %v1508_v13  ;;  %v1349_v9 = vld [vmem:[%s6098_s28 + $0x520] sm:$0xff]  ;;  %v1351_v13 = vld [vmem:[%s6098_s28 + $0x530] sm:$0xff]  ;;  %v1534_v52 = vpack.c.bf16 %v1374_v45, %v1370_v44  ;;  %v1378_v58 = vld [vmem:[%s6098_s28 + $0x608] sm:$0xff] }
  0xbe   : > { %1602 = vmatmul.mubr.bf16.vlgmr.msra.gmra.mrb[0].mxu0 %v1057_v17  ;;  %v1521_v19 = vpack.c.bf16 %v1349_v9, %v1345_v8  ;;  %v1523_v21 = vpack.c.bf16 %v1351_v13, %v1347_v10  ;;  %v1382_v59 = vld [vmem:[%s6098_s28 + $0x628] sm:$0xff]  ;;  %v1384_v62 = vld [vmem:[%s6098_s28 + $0x638] sm:$0xff]  ;;  %v1377_v4 = vld [vmem:[%s6098_s28 + $0x600] sm:$0xff] }
  0xbf   : > { %2308 = vmatmul.mubr.bf16.vlgmr.msra.gmra.mrb[0].mxu1 %v1057_v17  ;;  %1923 = vmatpush1.bf16.msra.mxu0 %v1505_v20  ;;  %v1356_v17 = vld [vmem:[%s6098_s28 + $0x558] sm:$0xff]  ;;  %v825_v20 = vld [vmem:[#allocation3 + $0xc0] sm:$0xff]  ;;  %v842_v63 = vld [vmem:[#allocation3 + $0x148] sm:$0xff]  ;;  %v1538_v3 = vpack.c.bf16 %v1382_v59, %v1378_v58  ;;  %v1540_v8 = vpack.c.bf16 %v1384_v62, %v1380_v61 }
  0xc0   : > { %2629 = vmatpush1.bf16.msra.mxu1 %v1507_v23  ;;  %1611 = vmatprep.mubr.bf16.mxu0 %v1062_v24  ;;  %v1353_v23 = vld [vmem:[%s6098_s28 + $0x540] sm:$0xff]  ;;  %v1528_v26 = vpack.c.bf16 %v1360_v18, %v1356_v17  ;;  %v846_v0 = vld [vmem:[#allocation3 + $0x168] sm:$0xff]  ;;  %v1383_v9 = vld [vmem:[%s6098_s28 + $0x630] sm:$0xff] }
  0xc1   : > { %2317 = vmatprep.mubr.bf16.mxu1 %v1062_v24  ;;  %1924 = vmatprep.subr.bf16.mxu0 %v1510_v28  ;;  %v1357_v24 = vld [vmem:[%s6098_s28 + $0x560] sm:$0xff]  ;;  %v1362_v28 = vld [vmem:[%s6098_s28 + $0x588] sm:$0xff]  ;;  %v1388_v13 = vld [vmem:[%s6098_s28 + $0x658] sm:$0xff] }
  0xc2   : > { %2630 = vmatprep.subr.bf16.mxu1 %v1512_v32  ;;  %v1368_v32 = vld [vmem:[%s6098_s28 + $0x5b8] sm:$0xff]  ;;  %v1525_v35 = vpack.c.bf16 %v1357_v24, %v1353_v23  ;;  %v1386_v10 = vld [vmem:[%s6098_s28 + $0x648] sm:$0xff]  ;;  %v1391_v23 = vld [vmem:[%s6098_s28 + $0x670] sm:$0xff] }
  0xc3   : > { %1925 = vmatpush1.bf16.msra.mxu0 %v1509_v37  ;;  %v1530_v37 = vpack.c.bf16 %v1366_v29, %v1362_v28  ;;  %v1392_v14 = vld [vmem:[%s6098_s28 + $0x678] sm:$0xff]  ;;  %v1394_v24 = vld [vmem:[%s6098_s28 + $0x688] sm:$0xff]  ;;  %v1395_v38 = vld [vmem:[%s6098_s28 + $0x690] sm:$0xff] }
  0xc4   : > { %2631 = vmatpush1.bf16.msra.mxu1 %v1511_v40  ;;  %1926 = vmatprep.subr.bf16.mxu0 %v1514_v41  ;;  %v1363_v40 = vld [vmem:[%s6098_s28 + $0x590] sm:$0xff]  ;;  %v1069_v41 = vpack.c.bf16 %v829_v30, %v825_v20  ;;  %v1389_v20 = vld [vmem:[%s6098_s28 + $0x660] sm:$0xff]  ;;  %v1398_v25 = vld [vmem:[%s6098_s28 + $0x6a8] sm:$0xff] }
  0xc5   : > { %2632 = vmatprep.subr.bf16.mxu1 %v1516_v42  ;;  %v1532_v42 = vpack.c.bf16 %v1368_v32, %v1364_v31  ;;  %v1531_v51 = vpack.c.bf16 %v1367_v43, %v1363_v40  ;;  %v1396_v27 = vld [vmem:[%s6098_s28 + $0x698] sm:$0xff]  ;;  %v850_v29 = vld [vmem:[#allocation3 + $0x188] sm:$0xff]  ;;  %v1399_v39 = vld [vmem:[%s6098_s28 + $0x6b0] sm:$0xff] }
  0xc6   : > { %1612 = vmatmul.mubr.bf16.gmra.mrb[4].mxu0 %v1061_v46  ;;  %v1400_v28 = vld [vmem:[%s6098_s28 + $0x6b8] sm:$0xff]  ;;  %v854_v30 = vld [vmem:[#allocation3 + $0x1a8] sm:$0xff]  ;;  %v849_v43 = vld [vmem:[#allocation3 + $0x180] sm:$0xff] }
  0xc7   : > { %2318 = vmatmul.mubr.bf16.gmra.mrb[4].mxu1 %v1061_v46  ;;  %1621 = vmatprep.mubr.bf16.mxu0 %v1066_v50  ;;  %v1074_v46 = vpack.c.bf16 %v838_v34, %v834_v33  ;;  %v1546_v33 = vpack.c.bf16 %v1398_v25, %v1394_v24  ;;  %v1393_v34 = vld [vmem:[%s6098_s28 + $0x680] sm:$0xff]  ;;  %v1082_v40 = vpack.c.bf16 %v854_v30, %v850_v29  ;;  %v858_v45 = vld [vmem:[#allocation3 + $0x1c8] sm:$0xff]  ;;  %v1403_v61 = vld [vmem:[%s6098_s28 + $0x6d0] sm:$0xff] }
  0xc8   : > { %2327 = vmatprep.mubr.bf16.mxu1 %v1066_v50  ;;  %1927 = vmatpush1.bf16.msra.mxu0 %v1513_v53  ;;  %v833_v50 = vld [vmem:[#allocation3 + $0x100] sm:$0xff]  ;;  %v1407_v62 = vld [vmem:[%s6098_s28 + $0x6f0] sm:$0xff]  ;;  %v890_v29 = vld [vmem:[#allocation3 + $0x2c8] sm:$0xff] }
  0xc9   : > { %2633 = vmatpush1.bf16.msra.mxu1 %v1515_v55  ;;  %1928 = vmatprep.subr.bf16.mxu0 %v1518_v56  ;;  %v1369_v53 = vld [vmem:[%s6098_s28 + $0x5c0] sm:$0xff]  ;;  %v1371_v55 = vld [vmem:[%s6098_s28 + $0x5d0] sm:$0xff]  ;;  %v1536_v56 = vpack.c.bf16 %v1376_v48, %v1372_v47  ;;  %v894_v30 = vld [vmem:[#allocation3 + $0x2e8] sm:$0xff] }
  0xca   : > { %2634 = vmatprep.subr.bf16.mxu1 %v1520_v60  ;;  %v837_v60 = vld [vmem:[#allocation3 + $0x120] sm:$0xff]  ;;  %v1533_v1 = vpack.c.bf16 %v1373_v54, %v1369_v53  ;;  %v1535_v2 = vpack.c.bf16 %v1375_v57, %v1371_v55  ;;  %v1402_v53 = vld [vmem:[%s6098_s28 + $0x6c8] sm:$0xff]  ;;  %v1408_v57 = vld [vmem:[%s6098_s28 + $0x6f8] sm:$0xff] }
  0xcb   : > { %v853_v44 = vld [vmem:[#allocation3 + $0x1a0] sm:$0xff]  ;;  %v1406_v54 = vld [vmem:[%s6098_s28 + $0x6e8] sm:$0xff] }
  0xcc   : > { %1929 = vmatpush1.bf16.msra.mxu0 %v1517_v5  ;;  %v1381_v5 = vld [vmem:[%s6098_s28 + $0x620] sm:$0xff]  ;;  %v1081_v47 = vpack.c.bf16 %v853_v44, %v849_v43  ;;  %v1550_v55 = vpack.c.bf16 %v1406_v54, %v1402_v53  ;;  %v906_v53 = vld [vmem:[#allocation3 + $0x348] sm:$0xff] }
  0xcd   : > { %2635 = vmatpush1.bf16.msra.mxu1 %v1519_v6  ;;  %1930 = vmatprep.subr.bf16.mxu0 %v1522_v7  ;;  %v1379_v6 = vld [vmem:[%s6098_s28 + $0x610] sm:$0xff]  ;;  %v1073_v7 = vpack.c.bf16 %v837_v60, %v833_v50  ;;  %v1537_v15 = vpack.c.bf16 %v1381_v5, %v1377_v4  ;;  %v861_v50 = vld [vmem:[#allocation3 + $0x1e0] sm:$0xff]  ;;  %v874_v5 = vld [vmem:[#allocation3 + $0x248] sm:$0xff] }
  0xce   : > { %1622 = vmatmul.mubr.bf16.gmra.mrb[8].mxu0 %v1065_v11  ;;  %2636 = vmatprep.subr.bf16.mxu1 %v1524_v12  ;;  %v1078_v12 = vpack.c.bf16 %v846_v0, %v842_v63  ;;  %v1539_v17 = vpack.c.bf16 %v1383_v9, %v1379_v6  ;;  %v1401_v58 = vld [vmem:[%s6098_s28 + $0x6c0] sm:$0xff]  ;;  %v1551_v0 = vpack.c.bf16 %v1407_v62, %v1403_v61  ;;  %v878_v6 = vld [vmem:[#allocation3 + $0x268] sm:$0xff] }
  0xcf   : > { %2328 = vmatmul.mubr.bf16.gmra.mrb[8].mxu1 %v1065_v11  ;;  %1631 = vmatprep.mubr.bf16.mxu0 %v1070_v16  ;;  %v1390_v11 = vld [vmem:[%s6098_s28 + $0x668] sm:$0xff]  ;;  %v1405_v60 = vld [vmem:[%s6098_s28 + $0x6e0] sm:$0xff] }
  0xd0   : > { %2337 = vmatprep.mubr.bf16.mxu1 %v1070_v16  ;;  %1931 = vmatpush1.bf16.msra.mxu0 %v1521_v19  ;;  %v841_v16 = vld [vmem:[#allocation3 + $0x140] sm:$0xff]  ;;  %v1542_v18 = vpack.c.bf16 %v1390_v11, %v1386_v10  ;;  %v1549_v63 = vpack.c.bf16 %v1405_v60, %v1401_v58  ;;  %v882_v11 = vld [vmem:[#allocation3 + $0x288] sm:$0xff] }
  0xd1   : > { %2637 = vmatpush1.bf16.msra.mxu1 %v1523_v21  ;;  %1932 = vmatprep.subr.bf16.mxu0 %v1526_v22  ;;  %v1385_v19 = vld [vmem:[%s6098_s28 + $0x640] sm:$0xff]  ;;  %v1387_v21 = vld [vmem:[%s6098_s28 + $0x650] sm:$0xff]  ;;  %v1544_v22 = vpack.c.bf16 %v1392_v14, %v1388_v13  ;;  %v1410_v13 = vld [vmem:[%s6098_s28 + $0x708] sm:$0xff] }
  0xd2   : > { %2638 = vmatprep.subr.bf16.mxu1 %v1528_v26  ;;  %v845_v26 = vld [vmem:[#allocation3 + $0x160] sm:$0xff]  ;;  %v1541_v31 = vpack.c.bf16 %v1389_v20, %v1385_v19  ;;  %v1543_v32 = vpack.c.bf16 %v1391_v23, %v1387_v21  ;;  %v1414_v14 = vld [vmem:[%s6098_s28 + $0x728] sm:$0xff]  ;;  %v1411_v21 = vld [vmem:[%s6098_s28 + $0x710] sm:$0xff] }
  0xd3   : > { %v869_v4 = vld [vmem:[#allocation3 + $0x220] sm:$0xff]  ;;  %v910_v54 = vld [vmem:[#allocation3 + $0x368] sm:$0xff] }
  0xd4   : > { %1933 = vmatpush1.bf16.msra.mxu0 %v1525_v35  ;;  %v1397_v35 = vld [vmem:[%s6098_s28 + $0x6a0] sm:$0xff]  ;;  %v918_v60 = vld [vmem:[#allocation3 + $0x3a8] sm:$0xff] }
  0xd5   : > { %2639 = vmatpush1.bf16.msra.mxu1 %v1527_v36  ;;  %1934 = vmatprep.subr.bf16.mxu0 %v1530_v37  ;;  %v1077_v36 = vpack.c.bf16 %v845_v26, %v841_v16  ;;  %v1548_v37 = vpack.c.bf16 %v1400_v28, %v1396_v27  ;;  %v873_v9 = vld [vmem:[#allocation3 + $0x240] sm:$0xff]  ;;  %v1412_v16 = vld [vmem:[%s6098_s28 + $0x718] sm:$0xff]  ;;  %v1426_v61 = vld [vmem:[%s6098_s28 + $0x788] sm:$0xff] }
  0xd6   : > { %1632 = vmatmul.mubr.bf16.gmra.mrb[12].mxu0 %v1069_v41  ;;  %2640 = vmatprep.subr.bf16.mxu1 %v1532_v42  ;;  %v1547_v42 = vpack.c.bf16 %v1399_v39, %v1395_v38  ;;  %v877_v10 = vld [vmem:[#allocation3 + $0x260] sm:$0xff]  ;;  %v1422_v38 = vld [vmem:[%s6098_s28 + $0x768] sm:$0xff] }
  0xd7   : > { %2338 = vmatmul.mubr.bf16.gmra.mrb[12].mxu1 %v1069_v41  ;;  %1641 = vmatprep.mubr.bf16.mxu0 %v1074_v46  ;;  %v1545_v41 = vpack.c.bf16 %v1397_v35, %v1393_v34  ;;  %v1413_v20 = vld [vmem:[%s6098_s28 + $0x720] sm:$0xff]  ;;  %v1093_v25 = vpack.c.bf16 %v877_v10, %v873_v9  ;;  %v898_v35 = vld [vmem:[#allocation3 + $0x308] sm:$0xff] }
  0xd8   : > { %2347 = vmatprep.mubr.bf16.mxu1 %v1074_v46  ;;  %1935 = vmatpush1.bf16.msra.mxu0 %v1529_v49  ;;  %v862_v46 = vld [vmem:[#allocation3 + $0x1e8] sm:$0xff]  ;;  %v857_v49 = vld [vmem:[#allocation3 + $0x1c0] sm:$0xff] }
  0xd9   : > { %2641 = vmatpush1.bf16.msra.mxu1 %v1531_v51  ;;  %1936 = vmatprep.subr.bf16.mxu0 %v1534_v52  ;;  %v1086_v48 = vpack.c.bf16 %v862_v46, %v858_v45  ;;  %v866_v51 = vld [vmem:[#allocation3 + $0x208] sm:$0xff]  ;;  %v881_v27 = vld [vmem:[#allocation3 + $0x280] sm:$0xff]  ;;  %v1419_v45 = vld [vmem:[%s6098_s28 + $0x750] sm:$0xff] }
  0xda   : > { %2642 = vmatprep.subr.bf16.mxu1 %v1536_v56  ;;  %v870_v52 = vld [vmem:[#allocation3 + $0x228] sm:$0xff]  ;;  %v1404_v56 = vld [vmem:[%s6098_s28 + $0x6d8] sm:$0xff]  ;;  %v885_v28 = vld [vmem:[#allocation3 + $0x2a0] sm:$0xff] }
  0xdb   : > { %v1552_v59 = vpack.c.bf16 %v1408_v57, %v1404_v56  ;;  %v893_v34 = vld [vmem:[#allocation3 + $0x2e0] sm:$0xff]  ;;  %v1423_v46 = vld [vmem:[%s6098_s28 + $0x770] sm:$0xff]  ;;  %v1110_v56 = vpack.c.bf16 %v910_v54, %v906_v53  ;;  %v1430_v62 = vld [vmem:[%s6098_s28 + $0x7a8] sm:$0xff] }
  0xdc   : > { %1937 = vmatpush1.bf16.msra.mxu0 %v1533_v1  ;;  %v1085_v1 = vpack.c.bf16 %v861_v50, %v857_v49  ;;  %v1421_v44 = vld [vmem:[%s6098_s28 + $0x760] sm:$0xff] }
  0xdd   : > { %2643 = vmatpush1.bf16.msra.mxu1 %v1535_v2  ;;  %1938 = vmatprep.subr.bf16.mxu0 %v1538_v3  ;;  %v1090_v2 = vpack.c.bf16 %v870_v52, %v866_v51  ;;  %v865_v3 = vld [vmem:[#allocation3 + $0x200] sm:$0xff] }
  0xde   : > { %1642 = vmatmul.mubr.bf16.gmra.mrb[16].mxu0 %v1073_v7  ;;  %2644 = vmatprep.subr.bf16.mxu1 %v1540_v8  ;;  %v1094_v8 = vpack.c.bf16 %v878_v6, %v874_v5  ;;  %v897_v51 = vld [vmem:[#allocation3 + $0x300] sm:$0xff]  ;;  %v1427_v5 = vld [vmem:[%s6098_s28 + $0x790] sm:$0xff] }
  0xdf   : > { %2348 = vmatmul.mubr.bf16.gmra.mrb[16].mxu1 %v1073_v7  ;;  %1651 = vmatprep.mubr.bf16.mxu0 %v1078_v12  ;;  %v1089_v7 = vpack.c.bf16 %v869_v4, %v865_v3  ;;  %v901_v52 = vld [vmem:[#allocation3 + $0x320] sm:$0xff]  ;;  %v1431_v6 = vld [vmem:[%s6098_s28 + $0x7b0] sm:$0xff] }
  0xe0   : > { %2357 = vmatprep.mubr.bf16.mxu1 %v1078_v12  ;;  %1939 = vmatpush1.bf16.msra.mxu0 %v1537_v15  ;;  %v886_v12 = vld [vmem:[#allocation3 + $0x2a8] sm:$0xff]  ;;  %v1554_v15 = vpack.c.bf16 %v1414_v14, %v1410_v13  ;;  %v905_v57 = vld [vmem:[#allocation3 + $0x340] sm:$0xff] }
  0xe1   : > { %2645 = vmatpush1.bf16.msra.mxu1 %v1539_v17  ;;  %1940 = vmatprep.subr.bf16.mxu0 %v1542_v18  ;;  %v1416_v17 = vld [vmem:[%s6098_s28 + $0x738] sm:$0xff]  ;;  %v1409_v18 = vld [vmem:[%s6098_s28 + $0x700] sm:$0xff]  ;;  %v1098_v26 = vpack.c.bf16 %v886_v12, %v882_v11  ;;  %v922_v13 = vld [vmem:[#allocation3 + $0x3c8] sm:$0xff] }
  0xe2   : > { %2646 = vmatprep.subr.bf16.mxu1 %v1544_v22  ;;  %v1556_v19 = vpack.c.bf16 %v1416_v17, %v1412_v16  ;;  %v1415_v22 = vld [vmem:[%s6098_s28 + $0x730] sm:$0xff]  ;;  %v1553_v23 = vpack.c.bf16 %v1413_v20, %v1409_v18  ;;  %v909_v58 = vld [vmem:[#allocation3 + $0x360] sm:$0xff]  ;;  %v926_v14 = vld [vmem:[#allocation3 + $0x3e8] sm:$0xff] }
  0xe3   : > { %v1555_v24 = vpack.c.bf16 %v1415_v22, %v1411_v21  ;;  %v1429_v4 = vld [vmem:[%s6098_s28 + $0x7a0] sm:$0xff]  ;;  %v1109_v9 = vpack.c.bf16 %v909_v58, %v905_v57  ;;  %v1118_v16 = vpack.c.bf16 %v926_v14, %v922_v13  ;;  %v934_v20 = vld [vmem:[#allocation3 + $0x428] sm:$0xff] }
  0xe4   : > { %1941 = vmatpush1.bf16.msra.mxu0 %v1541_v31  ;;  %v1097_v31 = vpack.c.bf16 %v885_v28, %v881_v27  ;;  %v913_v11 = vld [vmem:[#allocation3 + $0x380] sm:$0xff]  ;;  %v1434_v21 = vld [vmem:[%s6098_s28 + $0x7c8] sm:$0xff] }
  0xe5   : > { %2647 = vmatpush1.bf16.msra.mxu1 %v1543_v32  ;;  %1942 = vmatprep.subr.bf16.mxu0 %v1546_v33  ;;  %v1102_v32 = vpack.c.bf16 %v894_v30, %v890_v29  ;;  %v889_v33 = vld [vmem:[#allocation3 + $0x2c0] sm:$0xff]  ;;  %v1438_v22 = vld [vmem:[%s6098_s28 + $0x7e8] sm:$0xff]  ;;  %v1435_v29 = vld [vmem:[%s6098_s28 + $0x7d0] sm:$0xff] }
  0xe6   : > { %1652 = vmatmul.mubr.bf16.gmra.mrb[20].mxu0 %v1077_v36  ;;  %2648 = vmatprep.subr.bf16.mxu1 %v1548_v37  ;;  %v1418_v37 = vld [vmem:[%s6098_s28 + $0x748] sm:$0xff]  ;;  %v1101_v49 = vpack.c.bf16 %v893_v34, %v889_v33  ;;  %v917_v12 = vld [vmem:[#allocation3 + $0x3a0] sm:$0xff]  ;;  %v1439_v30 = vld [vmem:[%s6098_s28 + $0x7f0] sm:$0xff] }
  0xe7   : > { %2358 = vmatmul.mubr.bf16.gmra.mrb[20].mxu1 %v1077_v36  ;;  %1661 = vmatprep.mubr.bf16.mxu0 %v1082_v40  ;;  %v902_v36 = vld [vmem:[#allocation3 + $0x328] sm:$0xff]  ;;  %v1558_v39 = vpack.c.bf16 %v1422_v38, %v1418_v37  ;;  %v921_v17 = vld [vmem:[#allocation3 + $0x3c0] sm:$0xff] }
  0xe8   : > { %2367 = vmatprep.mubr.bf16.mxu1 %v1082_v40  ;;  %1943 = vmatpush1.bf16.msra.mxu0 %v1545_v41  ;;  %v1420_v40 = vld [vmem:[%s6098_s28 + $0x758] sm:$0xff]  ;;  %v1106_v50 = vpack.c.bf16 %v902_v36, %v898_v35  ;;  %v925_v18 = vld [vmem:[#allocation3 + $0x3e0] sm:$0xff]  ;;  %v938_v37 = vld [vmem:[#allocation3 + $0x448] sm:$0xff] }
  0xe9   : > { %2649 = vmatpush1.bf16.msra.mxu1 %v1547_v42  ;;  %1944 = vmatprep.subr.bf16.mxu0 %v1550_v55  ;;  %v1424_v41 = vld [vmem:[%s6098_s28 + $0x778] sm:$0xff]  ;;  %v1417_v42 = vld [vmem:[%s6098_s28 + $0x740] sm:$0xff]  ;;  %v1105_v55 = vpack.c.bf16 %v901_v52, %v897_v51  ;;  %v1117_v33 = vpack.c.bf16 %v925_v18, %v921_v17  ;;  %v942_v38 = vld [vmem:[#allocation3 + $0x468] sm:$0xff] }
  0xea   : > { %2650 = vmatprep.subr.bf16.mxu1 %v1552_v59  ;;  %v1560_v43 = vpack.c.bf16 %v1424_v41, %v1420_v40  ;;  %v914_v59 = vld [vmem:[#allocation3 + $0x388] sm:$0xff]  ;;  %v1437_v28 = vld [vmem:[%s6098_s28 + $0x7e0] sm:$0xff]  ;;  %v1126_v40 = vpack.c.bf16 %v942_v38, %v938_v37 }
  0xeb   : > { %v1114_v10 = vpack.c.bf16 %v918_v60, %v914_v59  ;;  %v929_v35 = vld [vmem:[#allocation3 + $0x400] sm:$0xff] }
  0xec   : > { %1945 = vmatpush1.bf16.msra.mxu0 %v1549_v63  ;;  %v1562_v63 = vpack.c.bf16 %v1430_v62, %v1426_v61  ;;  %v933_v36 = vld [vmem:[#allocation3 + $0x420] sm:$0xff]  ;;  %v970_v61 = vld [vmem:[#allocation3 + $0x548] sm:$0xff] }
  0xed   : > { %2651 = vmatpush1.bf16.msra.mxu1 %v1551_v0  ;;  %1946 = vmatprep.subr.bf16.mxu0 %v1554_v15  ;;  %v1428_v0 = vld [vmem:[%s6098_s28 + $0x798] sm:$0xff]  ;;  %v1113_v15 = vpack.c.bf16 %v917_v12, %v913_v11  ;;  %v937_v41 = vld [vmem:[#allocation3 + $0x440] sm:$0xff]  ;;  %v974_v62 = vld [vmem:[#allocation3 + $0x568] sm:$0xff] }
  0xee   : > { %1662 = vmatmul.mubr.bf16.gmra.mrb[24].mxu0 %v1081_v47  ;;  %2652 = vmatprep.subr.bf16.mxu1 %v1556_v19  ;;  %v930_v19 = vld [vmem:[#allocation3 + $0x408] sm:$0xff]  ;;  %v953_v53 = vld [vmem:[#allocation3 + $0x4c0] sm:$0xff] }
  0xef   : > { %2368 = vmatmul.mubr.bf16.gmra.mrb[24].mxu1 %v1081_v47  ;;  %1671 = vmatprep.mubr.bf16.mxu0 %v1086_v48  ;;  %v1557_v47 = vpack.c.bf16 %v1421_v44, %v1417_v42  ;;  %v1122_v34 = vpack.c.bf16 %v934_v20, %v930_v19  ;;  %v941_v42 = vld [vmem:[#allocation3 + $0x460] sm:$0xff]  ;;  %v950_v44 = vld [vmem:[#allocation3 + $0x4a8] sm:$0xff] }
  0xf0   : > { %2377 = vmatprep.mubr.bf16.mxu1 %v1086_v48  ;;  %1947 = vmatpush1.bf16.msra.mxu0 %v1553_v23  ;;  %v1559_v48 = vpack.c.bf16 %v1423_v46, %v1419_v45  ;;  %v1566_v23 = vpack.c.bf16 %v1438_v22, %v1434_v21  ;;  %v1125_v45 = vpack.c.bf16 %v941_v42, %v937_v41  ;;  %v957_v54 = vld [vmem:[#allocation3 + $0x4e0] sm:$0xff]  ;;  %v1002_v21 = vld [vmem:[#allocation3 + $0x648] sm:$0xff] }
  0xf1   : > { %2653 = vmatpush1.bf16.msra.mxu1 %v1555_v24  ;;  %1948 = vmatprep.subr.bf16.mxu0 %v1558_v39  ;;  %v1436_v24 = vld [vmem:[%s6098_s28 + $0x7d8] sm:$0xff]  ;;  %v1121_v39 = vpack.c.bf16 %v933_v36, %v929_v35  ;;  %v1133_v57 = vpack.c.bf16 %v957_v54, %v953_v53  ;;  %v961_v59 = vld [vmem:[#allocation3 + $0x500] sm:$0xff]  ;;  %v1006_v22 = vld [vmem:[#allocation3 + $0x668] sm:$0xff] }
  0xf2   : > { %2654 = vmatprep.subr.bf16.mxu1 %v1560_v43  ;;  %v946_v43 = vld [vmem:[#allocation3 + $0x488] sm:$0xff]  ;;  %v965_v60 = vld [vmem:[#allocation3 + $0x520] sm:$0xff] }
  0xf3   : > { %v1130_v46 = vpack.c.bf16 %v950_v44, %v946_v43  ;;  %v985_v13 = vld [vmem:[#allocation3 + $0x5c0] sm:$0xff] }
  0xf4   : > { %1949 = vmatpush1.bf16.msra.mxu0 %v1557_v47  ;;  %v945_v47 = vld [vmem:[#allocation3 + $0x480] sm:$0xff] }
  0xf5   : > { %2655 = vmatpush1.bf16.msra.mxu1 %v1559_v48  ;;  %1950 = vmatprep.subr.bf16.mxu0 %v1562_v63  ;;  %v949_v48 = vld [vmem:[#allocation3 + $0x4a0] sm:$0xff]  ;;  %v1137_v63 = vpack.c.bf16 %v965_v60, %v961_v59 }
  0xf6   : > { %1672 = vmatmul.mubr.bf16.gmra.mrb[28].mxu0 %v1085_v1  ;;  %v1129_v51 = vpack.c.bf16 %v949_v48, %v945_v47  ;;  %v989_v14 = vld [vmem:[#allocation3 + $0x5e0] sm:$0xff] }
  0xf7   : > { %2378 = vmatmul.mubr.bf16.gmra.mrb[28].mxu1 %v1085_v1  ;;  %1681 = vmatprep.mubr.bf16.mxu0 %v1090_v2  ;;  %v1432_v1 = vld [vmem:[%s6098_s28 + $0x7b8] sm:$0xff]  ;;  %v1149_v17 = vpack.c.bf16 %v989_v14, %v985_v13  ;;  %v993_v19 = vld [vmem:[#allocation3 + $0x600] sm:$0xff] }
  0xf8   : > { %2387 = vmatprep.mubr.bf16.mxu1 %v1090_v2  ;;  %v1425_v2 = vld [vmem:[%s6098_s28 + $0x780] sm:$0xff]  ;;  %v1564_v3 = vpack.c.bf16 %v1432_v1, %v1428_v0  ;;  %v1142_v0 = vpack.c.bf16 %v974_v62, %v970_v61 }
  0xf9   : > { %v969_v1 = vld [vmem:[#allocation3 + $0x540] sm:$0xff] }
  0xfa   : > { %2656 = vmatprep.subr.bf16.mxu1 %v1564_v3  ;;  %v978_v3 = vld [vmem:[#allocation3 + $0x588] sm:$0xff]  ;;  %v997_v20 = vld [vmem:[#allocation3 + $0x620] sm:$0xff] }
  0xfb   : > { %v1017_v37 = vld [vmem:[#allocation3 + $0x6c0] sm:$0xff] }
  0xfc   : > { %v1021_v38 = vld [vmem:[#allocation3 + $0x6e0] sm:$0xff] }
  0xfd   : > { %v1165_v41 = vpack.c.bf16 %v1021_v38, %v1017_v37  ;;  %v1025_v43 = vld [vmem:[#allocation3 + $0x700] sm:$0xff] }
  0xfe   : > { %1682 = vmatmul.mubr.bf16.gmra.mrb[32].mxu0 %v1089_v7  ;;  %v1029_v44 = vld [vmem:[#allocation3 + $0x720] sm:$0xff] }
  0xff   : > { %2388 = vmatmul.mubr.bf16.gmra.mrb[32].mxu1 %v1089_v7  ;;  %1691 = vmatprep.mubr.bf16.mxu0 %v1094_v8  ;;  %v1561_v7 = vpack.c.bf16 %v1429_v4, %v1425_v2  ;;  %v973_v2 = vld [vmem:[#allocation3 + $0x560] sm:$0xff]  ;;  %v982_v4 = vld [vmem:[#allocation3 + $0x5a8] sm:$0xff]  ;;  %v1169_v47 = vpack.c.bf16 %v1029_v44, %v1025_v43 }
 0x100   : > { %2397 = vmatprep.mubr.bf16.mxu1 %v1094_v8  ;;  %v1563_v8 = vpack.c.bf16 %v1431_v6, %v1427_v5  ;;  %v1141_v5 = vpack.c.bf16 %v973_v2, %v969_v1  ;;  %v1146_v6 = vpack.c.bf16 %v982_v4, %v978_v3  ;;  %v1049_v61 = vld [vmem:[#allocation3 + $0x7c0] sm:$0xff]  ;;  %v803_v3 = vld [vmem:[#allocation3 + $0x10] sm:$0xff] }
 0x101   : > { %1951 = vmatpush1.bf16.msra.mxu0 %v1561_v7  ;;  %v977_v7 = vld [vmem:[#allocation3 + $0x580] sm:$0xff]  ;;  %v807_v4 = vld [vmem:[#allocation3 + $0x30] sm:$0xff] }
 0x102   : > { %2657 = vmatpush1.bf16.msra.mxu1 %v1563_v8  ;;  %1952 = vmatprep.subr.bf16.mxu0 %v1566_v23  ;;  %v981_v8 = vld [vmem:[#allocation3 + $0x5a0] sm:$0xff]  ;;  %v1153_v23 = vpack.c.bf16 %v997_v20, %v993_v19 }
 0x103   : > { %v1145_v11 = vpack.c.bf16 %v981_v8, %v977_v7  ;;  %v1053_v62 = vld [vmem:[#allocation3 + $0x7e0] sm:$0xff]  ;;  %v1059_v7 = vpack.c.bf16 %v807_v4, %v803_v3 }
 0x104   : > { %v1181_v1 = vpack.c.bf16 %v1053_v62, %v1049_v61 }
 0x106   : > { %1692 = vmatmul.mubr.bf16.gmra.mrb[36].mxu0 %v1093_v25 }
 0x107   : > { %2398 = vmatmul.mubr.bf16.gmra.mrb[36].mxu1 %v1093_v25  ;;  %1701 = vmatprep.mubr.bf16.mxu0 %v1098_v26  ;;  %v1440_v25 = vld [vmem:[%s6098_s28 + $0x7f8] sm:$0xff] }
 0x108   : > { %2407 = vmatprep.mubr.bf16.mxu1 %v1098_v26  ;;  %v1433_v26 = vld [vmem:[%s6098_s28 + $0x7c0] sm:$0xff]  ;;  %v1568_v27 = vpack.c.bf16 %v1440_v25, %v1436_v24  ;;  %v1158_v24 = vpack.c.bf16 %v1006_v22, %v1002_v21  ;;  %v827_v21 = vld [vmem:[#allocation3 + $0xd0] sm:$0xff] }
 0x109   : > { %v1001_v25 = vld [vmem:[#allocation3 + $0x640] sm:$0xff]  ;;  %v831_v22 = vld [vmem:[#allocation3 + $0xf0] sm:$0xff] }
 0x10a   : > { %2658 = vmatprep.subr.bf16.mxu1 %v1568_v27  ;;  %v1010_v27 = vld [vmem:[#allocation3 + $0x688] sm:$0xff] }
 0x10e   : > { %1702 = vmatmul.mubr.bf16.gmra.mrb[40].mxu0 %v1097_v31 }
 0x10f   : > { %2408 = vmatmul.mubr.bf16.gmra.mrb[40].mxu1 %v1097_v31  ;;  %1711 = vmatprep.mubr.bf16.mxu0 %v1102_v32  ;;  %v1565_v31 = vpack.c.bf16 %v1437_v28, %v1433_v26  ;;  %v1005_v26 = vld [vmem:[#allocation3 + $0x660] sm:$0xff]  ;;  %v1014_v28 = vld [vmem:[#allocation3 + $0x6a8] sm:$0xff] }
 0x110   : > { %2417 = vmatprep.mubr.bf16.mxu1 %v1102_v32  ;;  %v1567_v32 = vpack.c.bf16 %v1439_v30, %v1435_v29  ;;  %v1157_v29 = vpack.c.bf16 %v1005_v26, %v1001_v25  ;;  %v1162_v30 = vpack.c.bf16 %v1014_v28, %v1010_v27  ;;  %v1071_v25 = vpack.c.bf16 %v831_v22, %v827_v21  ;;  %v835_v27 = vld [vmem:[#allocation3 + $0x110] sm:$0xff] }
 0x111   : > { %1953 = vmatpush1.bf16.msra.mxu0 %v1565_v31  ;;  %v1009_v31 = vld [vmem:[#allocation3 + $0x680] sm:$0xff]  ;;  %v839_v28 = vld [vmem:[#allocation3 + $0x130] sm:$0xff] }
 0x112   : > { %2659 = vmatpush1.bf16.msra.mxu1 %v1567_v32  ;;  %v1013_v32 = vld [vmem:[#allocation3 + $0x6a0] sm:$0xff] }
 0x113   : > { %v1161_v35 = vpack.c.bf16 %v1013_v32, %v1009_v31  ;;  %v1075_v31 = vpack.c.bf16 %v839_v28, %v835_v27 }
 0x116   : > { %1712 = vmatmul.mubr.bf16.gmra.mrb[44].mxu0 %v1101_v49 }
 0x117   : > { %2418 = vmatmul.mubr.bf16.gmra.mrb[44].mxu1 %v1101_v49  ;;  %1721 = vmatprep.mubr.bf16.mxu0 %v1106_v50  ;;  %v954_v49 = vld [vmem:[#allocation3 + $0x4c8] sm:$0xff] }
 0x118   : > { %2427 = vmatprep.mubr.bf16.mxu1 %v1106_v50  ;;  %v958_v50 = vld [vmem:[#allocation3 + $0x4e8] sm:$0xff] }
 0x119   : > { %v1134_v52 = vpack.c.bf16 %v958_v50, %v954_v49  ;;  %v1033_v49 = vld [vmem:[#allocation3 + $0x740] sm:$0xff] }
 0x11a   : > { %v1037_v50 = vld [vmem:[#allocation3 + $0x760] sm:$0xff] }
 0x11b   : > { %v1173_v53 = vpack.c.bf16 %v1037_v50, %v1033_v49 }
 0x11e   : > { %1722 = vmatmul.mubr.bf16.gmra.mrb[48].mxu0 %v1105_v55 }
 0x11f   : > { %2428 = vmatmul.mubr.bf16.gmra.mrb[48].mxu1 %v1105_v55  ;;  %1731 = vmatprep.mubr.bf16.mxu0 %v1110_v56  ;;  %v962_v55 = vld [vmem:[#allocation3 + $0x508] sm:$0xff] }
 0x120   : > { %2437 = vmatprep.mubr.bf16.mxu1 %v1110_v56  ;;  %v966_v56 = vld [vmem:[#allocation3 + $0x528] sm:$0xff] }
 0x121   : > { %v1138_v58 = vpack.c.bf16 %v966_v56, %v962_v55  ;;  %v1041_v55 = vld [vmem:[#allocation3 + $0x780] sm:$0xff] }
 0x122   : > { %v1045_v56 = vld [vmem:[#allocation3 + $0x7a0] sm:$0xff] }
 0x123   : > { %v1177_v59 = vpack.c.bf16 %v1045_v56, %v1041_v55 }
 0x126   : > { %1732 = vmatmul.mubr.bf16.gmra.mrb[52].mxu0 %v1109_v9 }
 0x127   : > { %2438 = vmatmul.mubr.bf16.gmra.mrb[52].mxu1 %v1109_v9  ;;  %1741 = vmatprep.mubr.bf16.mxu0 %v1114_v10  ;;  %v986_v9 = vld [vmem:[#allocation3 + $0x5c8] sm:$0xff] }
 0x128   : > { %2447 = vmatprep.mubr.bf16.mxu1 %v1114_v10  ;;  %v990_v10 = vld [vmem:[#allocation3 + $0x5e8] sm:$0xff] }
 0x129   : > { %v1150_v12 = vpack.c.bf16 %v990_v10, %v986_v9  ;;  %v811_v9 = vld [vmem:[#allocation3 + $0x50] sm:$0xff] }
 0x12a   : > { %v815_v10 = vld [vmem:[#allocation3 + $0x70] sm:$0xff] }
 0x12b   : > { %v1063_v13 = vpack.c.bf16 %v815_v10, %v811_v9 }
 0x12e   : > { %1742 = vmatmul.mubr.bf16.gmra.mrb[56].mxu0 %v1113_v15 }
 0x12f   : > { %2448 = vmatmul.mubr.bf16.gmra.mrb[56].mxu1 %v1113_v15  ;;  %1751 = vmatprep.mubr.bf16.mxu0 %v1118_v16  ;;  %v994_v15 = vld [vmem:[#allocation3 + $0x608] sm:$0xff] }
 0x130   : > { %2457 = vmatprep.mubr.bf16.mxu1 %v1118_v16  ;;  %v998_v16 = vld [vmem:[#allocation3 + $0x628] sm:$0xff] }
 0x131   : > { %v1154_v18 = vpack.c.bf16 %v998_v16, %v994_v15  ;;  %v819_v15 = vld [vmem:[#allocation3 + $0x90] sm:$0xff] }
 0x132   : > { %v823_v16 = vld [vmem:[#allocation3 + $0xb0] sm:$0xff] }
 0x133   : > { %v1067_v19 = vpack.c.bf16 %v823_v16, %v819_v15 }
 0x136   : > { %1752 = vmatmul.mubr.bf16.gmra.mrb[60].mxu0 %v1117_v33 }
 0x137   : > { %2458 = vmatmul.mubr.bf16.gmra.mrb[60].mxu1 %v1117_v33  ;;  %1761 = vmatprep.mubr.bf16.mxu0 %v1122_v34  ;;  %v1018_v33 = vld [vmem:[#allocation3 + $0x6c8] sm:$0xff] }
 0x138   : > { %2467 = vmatprep.mubr.bf16.mxu1 %v1122_v34  ;;  %v1022_v34 = vld [vmem:[#allocation3 + $0x6e8] sm:$0xff] }
 0x139   : > { %v1166_v36 = vpack.c.bf16 %v1022_v34, %v1018_v33  ;;  %v843_v33 = vld [vmem:[#allocation3 + $0x150] sm:$0xff] }
 0x13a   : > { %v847_v34 = vld [vmem:[#allocation3 + $0x170] sm:$0xff] }
 0x13b   : > { %v1079_v37 = vpack.c.bf16 %v847_v34, %v843_v33 }
 0x13e   : > { %1762 = vmatmul.mubr.bf16.gmra.mrb[64].mxu0 %v1121_v39 }
 0x13f   : > { %2468 = vmatmul.mubr.bf16.gmra.mrb[64].mxu1 %v1121_v39  ;;  %1771 = vmatprep.mubr.bf16.mxu0 %v1126_v40  ;;  %v1026_v39 = vld [vmem:[#allocation3 + $0x708] sm:$0xff] }
 0x140   : > { %2477 = vmatprep.mubr.bf16.mxu1 %v1126_v40  ;;  %v1030_v40 = vld [vmem:[#allocation3 + $0x728] sm:$0xff] }
 0x141   : > { %v1170_v42 = vpack.c.bf16 %v1030_v40, %v1026_v39  ;;  %v851_v39 = vld [vmem:[#allocation3 + $0x190] sm:$0xff] }
 0x142   : > { %v855_v40 = vld [vmem:[#allocation3 + $0x1b0] sm:$0xff] }
 0x143   : > { %v1083_v43 = vpack.c.bf16 %v855_v40, %v851_v39 }
 0x146   : > { %1772 = vmatmul.mubr.bf16.gmra.mrb[68].mxu0 %v1125_v45 }
 0x147   : > { %2478 = vmatmul.mubr.bf16.gmra.mrb[68].mxu1 %v1125_v45  ;;  %1781 = vmatprep.mubr.bf16.mxu0 %v1130_v46  ;;  %v1034_v45 = vld [vmem:[#allocation3 + $0x748] sm:$0xff] }
 0x148   : > { %2487 = vmatprep.mubr.bf16.mxu1 %v1130_v46  ;;  %v1038_v46 = vld [vmem:[#allocation3 + $0x768] sm:$0xff] }
 0x149   : > { %v1174_v48 = vpack.c.bf16 %v1038_v46, %v1034_v45  ;;  %v859_v45 = vld [vmem:[#allocation3 + $0x1d0] sm:$0xff] }
 0x14a   : > { %v863_v46 = vld [vmem:[#allocation3 + $0x1f0] sm:$0xff] }
 0x14b   : > { %v1087_v49 = vpack.c.bf16 %v863_v46, %v859_v45 }
 0x14e   : > { %1782 = vmatmul.mubr.bf16.gmra.mrb[72].mxu0 %v1129_v51 }
 0x14f   : > { %2488 = vmatmul.mubr.bf16.gmra.mrb[72].mxu1 %v1129_v51  ;;  %1791 = vmatprep.mubr.bf16.mxu0 %v1134_v52  ;;  %v1042_v51 = vld [vmem:[#allocation3 + $0x788] sm:$0xff] }
 0x150   : > { %2497 = vmatprep.mubr.bf16.mxu1 %v1134_v52  ;;  %v1046_v52 = vld [vmem:[#allocation3 + $0x7a8] sm:$0xff] }
 0x151   : > { %v1178_v54 = vpack.c.bf16 %v1046_v52, %v1042_v51  ;;  %v867_v51 = vld [vmem:[#allocation3 + $0x210] sm:$0xff] }
 0x152   : > { %v871_v52 = vld [vmem:[#allocation3 + $0x230] sm:$0xff] }
 0x153   : > { %v1091_v55 = vpack.c.bf16 %v871_v52, %v867_v51 }
 0x156   : > { %1792 = vmatmul.mubr.bf16.gmra.mrb[76].mxu0 %v1133_v57 }
 0x157   : > { %2498 = vmatmul.mubr.bf16.gmra.mrb[76].mxu1 %v1133_v57  ;;  %1801 = vmatprep.mubr.bf16.mxu0 %v1138_v58  ;;  %v1050_v57 = vld [vmem:[#allocation3 + $0x7c8] sm:$0xff] }
 0x158   : > { %2507 = vmatprep.mubr.bf16.mxu1 %v1138_v58  ;;  %v1054_v58 = vld [vmem:[#allocation3 + $0x7e8] sm:$0xff] }
 0x159   : > { %v1182_v60 = vpack.c.bf16 %v1054_v58, %v1050_v57  ;;  %v875_v57 = vld [vmem:[#allocation3 + $0x250] sm:$0xff] }
 0x15a   : > { %v879_v58 = vld [vmem:[#allocation3 + $0x270] sm:$0xff] }
 0x15b   : > { %v1095_v61 = vpack.c.bf16 %v879_v58, %v875_v57 }
 0x15e   : > { %1802 = vmatmul.mubr.bf16.gmra.mrb[80].mxu0 %v1137_v63 }
 0x15f   : > { %2508 = vmatmul.mubr.bf16.gmra.mrb[80].mxu1 %v1137_v63  ;;  %1811 = vmatprep.mubr.bf16.mxu0 %v1142_v0  ;;  %v804_v63 = vld [vmem:[#allocation3 + $0x18] sm:$0xff] }
 0x160   : > { %2517 = vmatprep.mubr.bf16.mxu1 %v1142_v0  ;;  %v808_v0 = vld [vmem:[#allocation3 + $0x38] sm:$0xff] }
 0x161   : > { %v1060_v2 = vpack.c.bf16 %v808_v0, %v804_v63  ;;  %v883_v63 = vld [vmem:[#allocation3 + $0x290] sm:$0xff] }
 0x162   : > { %v887_v0 = vld [vmem:[#allocation3 + $0x2b0] sm:$0xff] }
 0x163   : > { %v1099_v3 = vpack.c.bf16 %v887_v0, %v883_v63 }
 0x166   : > { %1812 = vmatmul.mubr.bf16.gmra.mrb[84].mxu0 %v1141_v5 }
 0x167   : > { %2518 = vmatmul.mubr.bf16.gmra.mrb[84].mxu1 %v1141_v5  ;;  %1821 = vmatprep.mubr.bf16.mxu0 %v1146_v6  ;;  %v812_v5 = vld [vmem:[#allocation3 + $0x58] sm:$0xff] }
 0x168   : > { %2527 = vmatprep.mubr.bf16.mxu1 %v1146_v6  ;;  %v816_v6 = vld [vmem:[#allocation3 + $0x78] sm:$0xff] }
 0x169   : > { %v1064_v8 = vpack.c.bf16 %v816_v6, %v812_v5  ;;  %v891_v5 = vld [vmem:[#allocation3 + $0x2d0] sm:$0xff] }
 0x16a   : > { %v895_v6 = vld [vmem:[#allocation3 + $0x2f0] sm:$0xff] }
 0x16b   : > { %v1103_v9 = vpack.c.bf16 %v895_v6, %v891_v5 }
 0x16e   : > { %1822 = vmatmul.mubr.bf16.gmra.mrb[88].mxu0 %v1145_v11 }
 0x16f   : > { %2528 = vmatmul.mubr.bf16.gmra.mrb[88].mxu1 %v1145_v11  ;;  %1831 = vmatprep.mubr.bf16.mxu0 %v1150_v12  ;;  %v820_v11 = vld [vmem:[#allocation3 + $0x98] sm:$0xff] }
 0x170   : > { %2537 = vmatprep.mubr.bf16.mxu1 %v1150_v12  ;;  %v824_v12 = vld [vmem:[#allocation3 + $0xb8] sm:$0xff] }
 0x171   : > { %v1068_v14 = vpack.c.bf16 %v824_v12, %v820_v11  ;;  %v899_v11 = vld [vmem:[#allocation3 + $0x310] sm:$0xff] }
 0x172   : > { %v903_v12 = vld [vmem:[#allocation3 + $0x330] sm:$0xff] }
 0x173   : > { %v1107_v15 = vpack.c.bf16 %v903_v12, %v899_v11 }
 0x176   : > { %1832 = vmatmul.mubr.bf16.gmra.mrb[92].mxu0 %v1149_v17 }
 0x177   : > { %2538 = vmatmul.mubr.bf16.gmra.mrb[92].mxu1 %v1149_v17  ;;  %1841 = vmatprep.mubr.bf16.mxu0 %v1154_v18  ;;  %v828_v17 = vld [vmem:[#allocation3 + $0xd8] sm:$0xff] }
 0x178   : > { %2547 = vmatprep.mubr.bf16.mxu1 %v1154_v18  ;;  %v832_v18 = vld [vmem:[#allocation3 + $0xf8] sm:$0xff] }
 0x179   : > { %v1072_v20 = vpack.c.bf16 %v832_v18, %v828_v17  ;;  %v907_v17 = vld [vmem:[#allocation3 + $0x350] sm:$0xff] }
 0x17a   : > { %v911_v18 = vld [vmem:[#allocation3 + $0x370] sm:$0xff] }
 0x17b   : > { %v1111_v21 = vpack.c.bf16 %v911_v18, %v907_v17 }
 0x17e   : > { %1842 = vmatmul.mubr.bf16.gmra.mrb[96].mxu0 %v1153_v23 }
 0x17f   : > { %2548 = vmatmul.mubr.bf16.gmra.mrb[96].mxu1 %v1153_v23  ;;  %1851 = vmatprep.mubr.bf16.mxu0 %v1158_v24  ;;  %v836_v23 = vld [vmem:[#allocation3 + $0x118] sm:$0xff] }
 0x180   : > { %2557 = vmatprep.mubr.bf16.mxu1 %v1158_v24  ;;  %v840_v24 = vld [vmem:[#allocation3 + $0x138] sm:$0xff] }
 0x181   : > { %v1076_v26 = vpack.c.bf16 %v840_v24, %v836_v23  ;;  %v915_v23 = vld [vmem:[#allocation3 + $0x390] sm:$0xff] }
 0x182   : > { %v919_v24 = vld [vmem:[#allocation3 + $0x3b0] sm:$0xff] }
 0x183   : > { %v1115_v27 = vpack.c.bf16 %v919_v24, %v915_v23 }
 0x186   : > { %1852 = vmatmul.mubr.bf16.gmra.mrb[100].mxu0 %v1157_v29 }
 0x187   : > { %2558 = vmatmul.mubr.bf16.gmra.mrb[100].mxu1 %v1157_v29  ;;  %1861 = vmatprep.mubr.bf16.mxu0 %v1162_v30  ;;  %v844_v29 = vld [vmem:[#allocation3 + $0x158] sm:$0xff] }
 0x188   : > { %2567 = vmatprep.mubr.bf16.mxu1 %v1162_v30  ;;  %v848_v30 = vld [vmem:[#allocation3 + $0x178] sm:$0xff] }
 0x189   : > { %v1080_v32 = vpack.c.bf16 %v848_v30, %v844_v29  ;;  %v923_v29 = vld [vmem:[#allocation3 + $0x3d0] sm:$0xff] }
 0x18a   : > { %v927_v30 = vld [vmem:[#allocation3 + $0x3f0] sm:$0xff] }
 0x18b   : > { %v1119_v33 = vpack.c.bf16 %v927_v30, %v923_v29  ;;  %v3754_v30 = vlaneseq }
 0x18e   : > { %1862 = vmatmul.mubr.bf16.gmra.mrb[104].mxu0 %v1161_v35 }
 0x18f   : > { %2568 = vmatmul.mubr.bf16.gmra.mrb[104].mxu1 %v1161_v35  ;;  %1871 = vmatprep.mubr.bf16.mxu0 %v1166_v36  ;;  %v852_v35 = vld [vmem:[#allocation3 + $0x198] sm:$0xff] }
 0x190   : > { %2577 = vmatprep.mubr.bf16.mxu1 %v1166_v36  ;;  %v856_v36 = vld [vmem:[#allocation3 + $0x1b8] sm:$0xff] }
 0x191   : > { %v1084_v38 = vpack.c.bf16 %v856_v36, %v852_v35  ;;  %v931_v35 = vld [vmem:[#allocation3 + $0x410] sm:$0xff] }
 0x192   : > { %v935_v36 = vld [vmem:[#allocation3 + $0x430] sm:$0xff] }
 0x193   : > { %v1123_v39 = vpack.c.bf16 %v935_v36, %v931_v35  ;;  %v1020_v35 = vld [vmem:[#allocation3 + $0x6d8] sm:$0xff] }
 0x194   : > { %v1024_v36 = vld [vmem:[#allocation3 + $0x6f8] sm:$0xff] }
 0x196   : > { %1872 = vmatmul.mubr.bf16.gmra.mrb[108].mxu0 %v1165_v41 }
 0x197   : > { %2578 = vmatmul.mubr.bf16.gmra.mrb[108].mxu1 %v1165_v41  ;;  %1881 = vmatprep.mubr.bf16.mxu0 %v1170_v42  ;;  %v860_v41 = vld [vmem:[#allocation3 + $0x1d8] sm:$0xff] }
 0x198   : > { %2587 = vmatprep.mubr.bf16.mxu1 %v1170_v42  ;;  %v864_v42 = vld [vmem:[#allocation3 + $0x1f8] sm:$0xff] }
 0x199   : > { %v1088_v44 = vpack.c.bf16 %v864_v42, %v860_v41  ;;  %v939_v41 = vld [vmem:[#allocation3 + $0x450] sm:$0xff] }
 0x19a   : > { %v943_v42 = vld [vmem:[#allocation3 + $0x470] sm:$0xff] }
 0x19b   : > { %v1127_v45 = vpack.c.bf16 %v943_v42, %v939_v41  ;;  %v1168_v42 = vpack.c.bf16 %v1024_v36, %v1020_v35  ;;  %v1035_v35 = vld [vmem:[#allocation3 + $0x750] sm:$0xff] }
 0x19c   : > { %v1039_v36 = vld [vmem:[#allocation3 + $0x770] sm:$0xff] }
 0x19e   : > { %1882 = vmatmul.mubr.bf16.gmra.mrb[112].mxu0 %v1169_v47 }
 0x19f   : > { %2588 = vmatmul.mubr.bf16.gmra.mrb[112].mxu1 %v1169_v47  ;;  %1891 = vmatprep.mubr.bf16.mxu0 %v1174_v48  ;;  %v868_v47 = vld [vmem:[#allocation3 + $0x218] sm:$0xff] }
 0x1a0   : > { %2597 = vmatprep.mubr.bf16.mxu1 %v1174_v48  ;;  %v872_v48 = vld [vmem:[#allocation3 + $0x238] sm:$0xff] }
 0x1a1   : > { %v1092_v50 = vpack.c.bf16 %v872_v48, %v868_v47  ;;  %v947_v47 = vld [vmem:[#allocation3 + $0x490] sm:$0xff] }
 0x1a2   : > { %v951_v48 = vld [vmem:[#allocation3 + $0x4b0] sm:$0xff] }
 0x1a3   : > { %v1131_v51 = vpack.c.bf16 %v951_v48, %v947_v47  ;;  %v1019_v47 = vld [vmem:[#allocation3 + $0x6d0] sm:$0xff] }
 0x1a4   : > { %v1023_v48 = vld [vmem:[#allocation3 + $0x6f0] sm:$0xff] }
 0x1a6   : > { %1892 = vmatmul.mubr.bf16.gmra.mrb[116].mxu0 %v1173_v53 }
 0x1a7   : > { %2598 = vmatmul.mubr.bf16.gmra.mrb[116].mxu1 %v1173_v53  ;;  %1901 = vmatprep.mubr.bf16.mxu0 %v1178_v54  ;;  %v876_v53 = vld [vmem:[#allocation3 + $0x258] sm:$0xff] }
 0x1a8   : > { %2607 = vmatprep.mubr.bf16.mxu1 %v1178_v54  ;;  %v880_v54 = vld [vmem:[#allocation3 + $0x278] sm:$0xff] }
 0x1a9   : > { %v1096_v56 = vpack.c.bf16 %v880_v54, %v876_v53  ;;  %v955_v53 = vld [vmem:[#allocation3 + $0x4d0] sm:$0xff] }
 0x1aa   : > { %v959_v54 = vld [vmem:[#allocation3 + $0x4f0] sm:$0xff] }
 0x1ab   : > { %v1135_v57 = vpack.c.bf16 %v959_v54, %v955_v53 }
 0x1ae   : > { %1902 = vmatmul.mubr.bf16.gmra.mrb[120].mxu0 %v1177_v59 }
 0x1af   : > { %2608 = vmatmul.mubr.bf16.gmra.mrb[120].mxu1 %v1177_v59  ;;  %1911 = vmatprep.mubr.bf16.mxu0 %v1182_v60  ;;  %v884_v59 = vld [vmem:[#allocation3 + $0x298] sm:$0xff] }
 0x1b0   : > { %2617 = vmatprep.mubr.bf16.mxu1 %v1182_v60  ;;  %v888_v60 = vld [vmem:[#allocation3 + $0x2b8] sm:$0xff] }
 0x1b1   : > { %v1100_v62 = vpack.c.bf16 %v888_v60, %v884_v59  ;;  %v963_v59 = vld [vmem:[#allocation3 + $0x510] sm:$0xff] }
 0x1b2   : > { %v967_v60 = vld [vmem:[#allocation3 + $0x530] sm:$0xff] }
 0x1b3   : > { %v1139_v63 = vpack.c.bf16 %v967_v60, %v963_v59 }
 0x1b6   : > { %1912 = vmatmul.mubr.bf16.gmra.mrb[124].mxu0 %v1181_v1 }
 0x1b7   : > { %2618 = vmatmul.mubr.bf16.gmra.mrb[124].mxu1 %v1181_v1  ;;  %1954 = vmatprep.mubr.bf16.mxu0 %v1060_v2  ;;  %v892_v1 = vld [vmem:[#allocation3 + $0x2d8] sm:$0xff] }
 0x1b8   : > { %2660 = vmatprep.mubr.bf16.mxu1 %v1060_v2  ;;  %v896_v2 = vld [vmem:[#allocation3 + $0x2f8] sm:$0xff] }
 0x1b9   : > { %v1104_v4 = vpack.c.bf16 %v896_v2, %v892_v1  ;;  %v971_v1 = vld [vmem:[#allocation3 + $0x550] sm:$0xff] }
 0x1ba   : > { %v975_v2 = vld [vmem:[#allocation3 + $0x570] sm:$0xff] }
 0x1bb   : > { %v1143_v5 = vpack.c.bf16 %v975_v2, %v971_v1 }
 0x1be   : > { %1955 = vmatmul.mubr.bf16.vlgmr.msra.gmra.mrb[0].mxu0 %v1059_v7 }
 0x1bf   : > { %2661 = vmatmul.mubr.bf16.vlgmr.msra.gmra.mrb[0].mxu1 %v1059_v7  ;;  %1964 = vmatprep.mubr.bf16.mxu0 %v1064_v8  ;;  %v900_v7 = vld [vmem:[#allocation3 + $0x318] sm:$0xff] }
 0x1c0   : > { %2670 = vmatprep.mubr.bf16.mxu1 %v1064_v8  ;;  %v904_v8 = vld [vmem:[#allocation3 + $0x338] sm:$0xff] }
 0x1c1   : > { %v1108_v10 = vpack.c.bf16 %v904_v8, %v900_v7  ;;  %v979_v7 = vld [vmem:[#allocation3 + $0x590] sm:$0xff] }
 0x1c2   : > { %v983_v8 = vld [vmem:[#allocation3 + $0x5b0] sm:$0xff] }
 0x1c3   : > { %v1147_v11 = vpack.c.bf16 %v983_v8, %v979_v7 }
 0x1c6   : > { %1965 = vmatmul.mubr.bf16.gmra.mrb[4].mxu0 %v1063_v13 }
 0x1c7   : > { %2671 = vmatmul.mubr.bf16.gmra.mrb[4].mxu1 %v1063_v13  ;;  %1974 = vmatprep.mubr.bf16.mxu0 %v1068_v14  ;;  %v908_v13 = vld [vmem:[#allocation3 + $0x358] sm:$0xff] }
 0x1c8   : > { %2680 = vmatprep.mubr.bf16.mxu1 %v1068_v14  ;;  %v912_v14 = vld [vmem:[#allocation3 + $0x378] sm:$0xff] }
 0x1c9   : > { %v1112_v16 = vpack.c.bf16 %v912_v14, %v908_v13  ;;  %v987_v13 = vld [vmem:[#allocation3 + $0x5d0] sm:$0xff] }
 0x1ca   : > { %v991_v14 = vld [vmem:[#allocation3 + $0x5f0] sm:$0xff] }
 0x1cb   : > { %v1151_v17 = vpack.c.bf16 %v991_v14, %v987_v13  ;;  %v1040_v13 = vld [vmem:[#allocation3 + $0x778] sm:$0xff] }
 0x1ce   : > { %1975 = vmatmul.mubr.bf16.gmra.mrb[8].mxu0 %v1067_v19 }
 0x1cf   : > { %2681 = vmatmul.mubr.bf16.gmra.mrb[8].mxu1 %v1067_v19  ;;  %1984 = vmatprep.mubr.bf16.mxu0 %v1072_v20  ;;  %v916_v19 = vld [vmem:[#allocation3 + $0x398] sm:$0xff] }
 0x1d0   : > { %2690 = vmatprep.mubr.bf16.mxu1 %v1072_v20  ;;  %v920_v20 = vld [vmem:[#allocation3 + $0x3b8] sm:$0xff] }
 0x1d1   : > { %v1116_v22 = vpack.c.bf16 %v920_v20, %v916_v19  ;;  %v995_v19 = vld [vmem:[#allocation3 + $0x610] sm:$0xff] }
 0x1d2   : > { %v999_v20 = vld [vmem:[#allocation3 + $0x630] sm:$0xff] }
 0x1d3   : > { %v1155_v23 = vpack.c.bf16 %v999_v20, %v995_v19 }
 0x1d6   : > { %1985 = vmatmul.mubr.bf16.gmra.mrb[12].mxu0 %v1071_v25 }
 0x1d7   : > { %2691 = vmatmul.mubr.bf16.gmra.mrb[12].mxu1 %v1071_v25  ;;  %1994 = vmatprep.mubr.bf16.mxu0 %v1076_v26  ;;  %v924_v25 = vld [vmem:[#allocation3 + $0x3d8] sm:$0xff] }
 0x1d8   : > { %2700 = vmatprep.mubr.bf16.mxu1 %v1076_v26  ;;  %v928_v26 = vld [vmem:[#allocation3 + $0x3f8] sm:$0xff] }
 0x1d9   : > { %v1120_v28 = vpack.c.bf16 %v928_v26, %v924_v25  ;;  %v1003_v25 = vld [vmem:[#allocation3 + $0x650] sm:$0xff] }
 0x1da   : > { %v1007_v26 = vld [vmem:[#allocation3 + $0x670] sm:$0xff] }
 0x1db   : > { %v1159_v29 = vpack.c.bf16 %v1007_v26, %v1003_v25 }
 0x1de   : > { %1995 = vmatmul.mubr.bf16.gmra.mrb[16].mxu0 %v1075_v31 }
 0x1df   : > { %2701 = vmatmul.mubr.bf16.gmra.mrb[16].mxu1 %v1075_v31  ;;  %2004 = vmatprep.mubr.bf16.mxu0 %v1080_v32  ;;  %v932_v31 = vld [vmem:[#allocation3 + $0x418] sm:$0xff] }
 0x1e0   : > { %2710 = vmatprep.mubr.bf16.mxu1 %v1080_v32  ;;  %v936_v32 = vld [vmem:[#allocation3 + $0x438] sm:$0xff] }
 0x1e1   : > { %v1124_v34 = vpack.c.bf16 %v936_v32, %v932_v31  ;;  %v3755_v32 = vshrl.u32 %v3754_v30, 7 }
 0x1e3   : > { %v3760_v41 = vsub.s32 1, %v3755_v32 }
 0x1e6   : > { %2005 = vmatmul.mubr.bf16.gmra.mrb[20].mxu0 %v1079_v37 }
 0x1e7   : > { %2711 = vmatmul.mubr.bf16.gmra.mrb[20].mxu1 %v1079_v37  ;;  %2014 = vmatprep.mubr.bf16.mxu0 %v1084_v38  ;;  %v940_v37 = vld [vmem:[#allocation3 + $0x458] sm:$0xff] }
 0x1e8   : > { %2720 = vmatprep.mubr.bf16.mxu1 %v1084_v38  ;;  %v944_v38 = vld [vmem:[#allocation3 + $0x478] sm:$0xff] }
 0x1e9   : > { %v1128_v40 = vpack.c.bf16 %v944_v38, %v940_v37  ;;  %v3756_v38 = vsub.s32 0, %v3755_v32 }
 0x1ee   : > { %2015 = vmatmul.mubr.bf16.gmra.mrb[24].mxu0 %v1083_v43 }
 0x1ef   : > { %2721 = vmatmul.mubr.bf16.gmra.mrb[24].mxu1 %v1083_v43  ;;  %2024 = vmatprep.mubr.bf16.mxu0 %v1088_v44  ;;  %v948_v43 = vld [vmem:[#allocation3 + $0x498] sm:$0xff] }
 0x1f0   : > { %2730 = vmatprep.mubr.bf16.mxu1 %v1088_v44  ;;  %v952_v44 = vld [vmem:[#allocation3 + $0x4b8] sm:$0xff] }
 0x1f1   : > { %v1132_v46 = vpack.c.bf16 %v952_v44, %v948_v43  ;;  %v3768_v43 = vsub.s32 3, %v3755_v32 }
 0x1f6   : > { %2025 = vmatmul.mubr.bf16.gmra.mrb[28].mxu0 %v1087_v49 }
 0x1f7   : > { %2731 = vmatmul.mubr.bf16.gmra.mrb[28].mxu1 %v1087_v49  ;;  %2034 = vmatprep.mubr.bf16.mxu0 %v1092_v50  ;;  %v956_v49 = vld [vmem:[#allocation3 + $0x4d8] sm:$0xff] }
 0x1f8   : > { %2740 = vmatprep.mubr.bf16.mxu1 %v1092_v50  ;;  %v960_v50 = vld [vmem:[#allocation3 + $0x4f8] sm:$0xff] }
 0x1f9   : > { %v1136_v52 = vpack.c.bf16 %v960_v50, %v956_v49  ;;  %v1028_v50 = vld [vmem:[#allocation3 + $0x718] sm:$0xff] }
 0x1fe   : > { %2035 = vmatmul.mubr.bf16.gmra.mrb[32].mxu0 %v1091_v55 }
 0x1ff   : > { %2741 = vmatmul.mubr.bf16.gmra.mrb[32].mxu1 %v1091_v55  ;;  %2044 = vmatprep.mubr.bf16.mxu0 %v1096_v56  ;;  %v964_v55 = vld [vmem:[#allocation3 + $0x518] sm:$0xff] }
 0x200   : > { %2750 = vmatprep.mubr.bf16.mxu1 %v1096_v56  ;;  %v968_v56 = vld [vmem:[#allocation3 + $0x538] sm:$0xff] }
 0x201   : > { %v1140_v58 = vpack.c.bf16 %v968_v56, %v964_v55  ;;  %v1167_v56 = vpack.c.bf16 %v1023_v48, %v1019_v47  ;;  %v1175_v47 = vpack.c.bf16 %v1039_v36, %v1035_v35 }
 0x206   : > { %2045 = vmatmul.mubr.bf16.gmra.mrb[36].mxu0 %v1095_v61 }
 0x207   : > { %2751 = vmatmul.mubr.bf16.gmra.mrb[36].mxu1 %v1095_v61  ;;  %2054 = vmatprep.mubr.bf16.mxu0 %v1100_v62  ;;  %v972_v61 = vld [vmem:[#allocation3 + $0x558] sm:$0xff] }
 0x208   : > { %2760 = vmatprep.mubr.bf16.mxu1 %v1100_v62  ;;  %v976_v62 = vld [vmem:[#allocation3 + $0x578] sm:$0xff] }
 0x209   : > { %v1144_v0 = vpack.c.bf16 %v976_v62, %v972_v61 }
 0x20e   : > { %2055 = vmatmul.mubr.bf16.gmra.mrb[40].mxu0 %v1099_v3 }
 0x20f   : > { %2761 = vmatmul.mubr.bf16.gmra.mrb[40].mxu1 %v1099_v3  ;;  %2064 = vmatprep.mubr.bf16.mxu0 %v1104_v4  ;;  %v980_v3 = vld [vmem:[#allocation3 + $0x598] sm:$0xff] }
 0x210   : > { %2770 = vmatprep.mubr.bf16.mxu1 %v1104_v4  ;;  %v984_v4 = vld [vmem:[#allocation3 + $0x5b8] sm:$0xff] }
 0x211   : > { %v1148_v6 = vpack.c.bf16 %v984_v4, %v980_v3 }
 0x216   : > { %2065 = vmatmul.mubr.bf16.gmra.mrb[44].mxu0 %v1103_v9 }
 0x217   : > { %2771 = vmatmul.mubr.bf16.gmra.mrb[44].mxu1 %v1103_v9  ;;  %2074 = vmatprep.mubr.bf16.mxu0 %v1108_v10  ;;  %v988_v9 = vld [vmem:[#allocation3 + $0x5d8] sm:$0xff] }
 0x218   : > { %2780 = vmatprep.mubr.bf16.mxu1 %v1108_v10  ;;  %v992_v10 = vld [vmem:[#allocation3 + $0x5f8] sm:$0xff] }
 0x219   : > { %v1152_v12 = vpack.c.bf16 %v992_v10, %v988_v9  ;;  %v1027_v9 = vld [vmem:[#allocation3 + $0x710] sm:$0xff] }
 0x21a   : > { %v1031_v10 = vld [vmem:[#allocation3 + $0x730] sm:$0xff] }
 0x21e   : > { %2075 = vmatmul.mubr.bf16.gmra.mrb[48].mxu0 %v1107_v15 }
 0x21f   : > { %2781 = vmatmul.mubr.bf16.gmra.mrb[48].mxu1 %v1107_v15  ;;  %2084 = vmatprep.mubr.bf16.mxu0 %v1112_v16  ;;  %v996_v15 = vld [vmem:[#allocation3 + $0x618] sm:$0xff] }
 0x220   : > { %2790 = vmatprep.mubr.bf16.mxu1 %v1112_v16  ;;  %v1000_v16 = vld [vmem:[#allocation3 + $0x638] sm:$0xff] }
 0x221   : > { %v1156_v18 = vpack.c.bf16 %v1000_v16, %v996_v15 }
 0x226   : > { %2085 = vmatmul.mubr.bf16.gmra.mrb[52].mxu0 %v1111_v21 }
 0x227   : > { %2791 = vmatmul.mubr.bf16.gmra.mrb[52].mxu1 %v1111_v21  ;;  %2094 = vmatprep.mubr.bf16.mxu0 %v1116_v22  ;;  %v1004_v21 = vld [vmem:[#allocation3 + $0x658] sm:$0xff] }
 0x228   : > { %2800 = vmatprep.mubr.bf16.mxu1 %v1116_v22  ;;  %v1008_v22 = vld [vmem:[#allocation3 + $0x678] sm:$0xff] }
 0x229   : > { %v1160_v24 = vpack.c.bf16 %v1008_v22, %v1004_v21 }
 0x22e   : > { %2095 = vmatmul.mubr.bf16.gmra.mrb[56].mxu0 %v1115_v27 }
 0x22f   : > { %2801 = vmatmul.mubr.bf16.gmra.mrb[56].mxu1 %v1115_v27  ;;  %2104 = vmatprep.mubr.bf16.mxu0 %v1120_v28  ;;  %v1012_v27 = vld [vmem:[#allocation3 + $0x698] sm:$0xff] }
 0x230   : > { %2810 = vmatprep.mubr.bf16.mxu1 %v1120_v28  ;;  %v1016_v28 = vld [vmem:[#allocation3 + $0x6b8] sm:$0xff] }
 0x231   : > { %v1164_v31 = vpack.c.bf16 %v1016_v28, %v1012_v27 }
 0x236   : > { %2105 = vmatmul.mubr.bf16.gmra.mrb[60].mxu0 %v1119_v33 }
 0x237   : > { %2811 = vmatmul.mubr.bf16.gmra.mrb[60].mxu1 %v1119_v33  ;;  %2114 = vmatprep.mubr.bf16.mxu0 %v1124_v34  ;;  %v1011_v33 = vld [vmem:[#allocation3 + $0x690] sm:$0xff] }
 0x238   : > { %2820 = vmatprep.mubr.bf16.mxu1 %v1124_v34  ;;  %v1015_v34 = vld [vmem:[#allocation3 + $0x6b0] sm:$0xff] }
 0x239   : > { %v1163_v37 = vpack.c.bf16 %v1015_v34, %v1011_v33 }
 0x23e   : > { %2115 = vmatmul.mubr.bf16.gmra.mrb[64].mxu0 %v1123_v39 }
 0x23f   : > { %2821 = vmatmul.mubr.bf16.gmra.mrb[64].mxu1 %v1123_v39  ;;  %2124 = vmatprep.mubr.bf16.mxu0 %v1128_v40  ;;  %v3752_v39 = vld [vmem:[%s250_s8] sm:$0xf] }
 0x240   : > { %2830 = vmatprep.mubr.bf16.mxu1 %v1128_v40  ;;  %v3764_v40 = vsub.s32 2, %v3755_v32  ;;  %v6361_v44 = vrot.slane %v3752_v39, %v3756_v38  ;;  %v6367_v49 = vrot.slane %v3752_v39, %v3768_v43  ;;  %v1044_v38 = vld [vmem:[#allocation3 + $0x798] sm:$0xff] }
 0x246   : > { %2125 = vmatmul.mubr.bf16.gmra.mrb[68].mxu0 %v1127_v45 }
 0x247   : > { %2831 = vmatmul.mubr.bf16.gmra.mrb[68].mxu1 %v1127_v45  ;;  %2134 = vmatprep.mubr.bf16.mxu0 %v1132_v46  ;;  %v6363_v45 = vrot.slane %v3752_v39, %v3764_v40 }
 0x248   : > { %2840 = vmatprep.mubr.bf16.mxu1 %v1132_v46  ;;  %v6365_v46 = vrot.slane %v3752_v39, %v3760_v41  ;;  %v1048_v39 = vld [vmem:[#allocation3 + $0x7b8] sm:$0xff] }
 0x24e   : > { %2135 = vmatmul.mubr.bf16.gmra.mrb[72].mxu0 %v1131_v51 }
 0x24f   : > { %2841 = vmatmul.mubr.bf16.gmra.mrb[72].mxu1 %v1131_v51  ;;  %2144 = vmatprep.mubr.bf16.mxu0 %v1136_v52  ;;  %v1032_v51 = vld [vmem:[#allocation3 + $0x738] sm:$0xff] }
 0x250   : > { %2850 = vmatprep.mubr.bf16.mxu1 %v1136_v52  ;;  %v1172_v61 = vpack.c.bf16 %v1032_v51, %v1028_v50 }
 0x256   : > { %2145 = vmatmul.mubr.bf16.gmra.mrb[76].mxu0 %v1135_v57 }
 0x257   : > { %2851 = vmatmul.mubr.bf16.gmra.mrb[76].mxu1 %v1135_v57  ;;  %2154 = vmatprep.mubr.bf16.mxu0 %v1140_v58 }
 0x258   : > { %2860 = vmatprep.mubr.bf16.mxu1 %v1140_v58 }
 0x25e   : > { %2155 = vmatmul.mubr.bf16.gmra.mrb[80].mxu0 %v1139_v63 }
 0x25f   : > { %2861 = vmatmul.mubr.bf16.gmra.mrb[80].mxu1 %v1139_v63  ;;  %2164 = vmatprep.mubr.bf16.mxu0 %v1144_v0 }
 0x260   : > { %2870 = vmatprep.mubr.bf16.mxu1 %v1144_v0 }
 0x266   : > { %2165 = vmatmul.mubr.bf16.gmra.mrb[84].mxu0 %v1143_v5 }
 0x267   : > { %2871 = vmatmul.mubr.bf16.gmra.mrb[84].mxu1 %v1143_v5  ;;  %2174 = vmatprep.mubr.bf16.mxu0 %v1148_v6 }
 0x268   : > { %2880 = vmatprep.mubr.bf16.mxu1 %v1148_v6 }
 0x26e   : > { %2175 = vmatmul.mubr.bf16.gmra.mrb[88].mxu0 %v1147_v11 }
 0x26f   : > { %2881 = vmatmul.mubr.bf16.gmra.mrb[88].mxu1 %v1147_v11  ;;  %2184 = vmatprep.mubr.bf16.mxu0 %v1152_v12 }
 0x270   : > { %2890 = vmatprep.mubr.bf16.mxu1 %v1152_v12  ;;  %v1036_v12 = vld [vmem:[#allocation3 + $0x758] sm:$0xff] }
 0x276   : > { %2185 = vmatmul.mubr.bf16.gmra.mrb[92].mxu0 %v1151_v17 }
 0x277   : > { %2891 = vmatmul.mubr.bf16.gmra.mrb[92].mxu1 %v1151_v17  ;;  %2194 = vmatprep.mubr.bf16.mxu0 %v1156_v18 }
 0x278   : > { %2900 = vmatprep.mubr.bf16.mxu1 %v1156_v18  ;;  %v1171_v18 = vpack.c.bf16 %v1031_v10, %v1027_v9 }
 0x27e   : > { %2195 = vmatmul.mubr.bf16.gmra.mrb[96].mxu0 %v1155_v23 }
 0x27f   : > { %2901 = vmatmul.mubr.bf16.gmra.mrb[96].mxu1 %v1155_v23  ;;  %2204 = vmatprep.mubr.bf16.mxu0 %v1160_v24  ;;  %v1176_v23 = vpack.c.bf16 %v1040_v13, %v1036_v12 }
 0x280   : > { %2910 = vmatprep.mubr.bf16.mxu1 %v1160_v24 }
 0x286   : > { %2205 = vmatmul.mubr.bf16.gmra.mrb[100].mxu0 %v1159_v29 }
 0x287   : > { %2911 = vmatmul.mubr.bf16.gmra.mrb[100].mxu1 %v1159_v29  ;;  %2214 = vmatprep.mubr.bf16.mxu0 %v1164_v31 }
 0x288   : > { %2920 = vmatprep.mubr.bf16.mxu1 %v1164_v31 }
 0x28e   : > { %2215 = vmatmul.mubr.bf16.gmra.mrb[104].mxu0 %v1163_v37 }
 0x28f   : > { %2921 = vmatmul.mubr.bf16.gmra.mrb[104].mxu1 %v1163_v37  ;;  %2224 = vmatprep.mubr.bf16.mxu0 %v1168_v42 }
 0x290   : > { %2930 = vmatprep.mubr.bf16.mxu1 %v1168_v42 }
 0x291   : > { %v1956_v52 = vpop.f32.mrb[0].mxu0 }
 0x292   : > { %v3774_v53 = vadd.f32 %v6361_v44, %v1956_v52  ;;  %v2662_v54 = vpop.f32.mrb[0].mxu1  ;;  %v1958_v55 = vpop.f32.mrb[1].mxu0 }
 0x293   : > { %v3776_v57 = vadd.f32 %v6363_v45, %v2662_v54  ;;  %v3775_v58 = vadd.f32 %v6365_v46, %v1958_v55  ;;  %v2664_v59 = vpop.f32.mrb[1].mxu1  ;;  %v1960_v60 = vpop.f32.mrb[2].mxu0 }
 0x294   : > { %v3777_v62 = vadd.f32 %v6367_v49, %v2664_v59  ;;  %v3778_v63 = vadd.f32 %v6361_v44, %v1960_v60  ;;  %v2666_v0 = vpop.f32.mrb[2].mxu1  ;;  %v1962_v1 = vpop.f32.mrb[3].mxu0 }
 0x295   : > { %v5221_v2 = vpack.c.bf16 %v3775_v58, %v3774_v53  ;;  %v3780_v3 = vadd.f32 %v6363_v45, %v2666_v0  ;;  %v3779_v4 = vadd.f32 %v6365_v46, %v1962_v1  ;;  %v2668_v5 = vpop.f32.mrb[3].mxu1  ;;  %v1180_v53 = vpack.c.bf16 %v1048_v39, %v1044_v38  ;;  %v1043_v1 = vld [vmem:[#allocation3 + $0x790] sm:$0xff] }
 0x296   : > { %v5222_v6 = vpack.c.bf16 %v3777_v62, %v3776_v57  ;;  %v3781_v7 = vadd.f32 %v6367_v49, %v2668_v5  ;;  %2225 = vmatmul.mubr.bf16.gmra.mrb[108].mxu0 %v1167_v56  ;;  %v1056_v5 = vld [vmem:[#allocation3 + $0x7f8] sm:$0xff] }
 0x297   : > { %4798 = vst [vmem:[%s6378_s19] sm:$0xff] %v5221_v2  ;;  %v5223_v8 = vpack.c.bf16 %v3779_v4, %v3778_v63  ;;  %2931 = vmatmul.mubr.bf16.gmra.mrb[108].mxu1 %v1167_v56  ;;  %2234 = vmatprep.mubr.bf16.mxu0 %v1172_v61  ;;  %v1047_v2 = vld [vmem:[#allocation3 + $0x7b0] sm:$0xff]  ;;  %v1052_v4 = vld [vmem:[#allocation3 + $0x7d8] sm:$0xff] }
 0x298   : > { %4799 = vst [vmem:[%s6378_s19 + $0x8] sm:$0xff] %v5222_v6  ;;  %v5224_v11 = vpack.c.bf16 %v3781_v7, %v3780_v3  ;;  %2940 = vmatprep.mubr.bf16.mxu1 %v1172_v61  ;;  %v1179_v10 = vpack.c.bf16 %v1047_v2, %v1043_v1 }
 0x299   : > { %4800 = vst [vmem:[%s6378_s19 + $0x10] sm:$0xff] %v5223_v8  ;;  %v1966_v14 = vpop.f32.mrb[4].mxu0 }
 0x29a   : > { %4801 = vst [vmem:[%s6378_s19 + $0x18] sm:$0xff] %v5224_v11  ;;  %v3782_v15 = vadd.f32 %v6361_v44, %v1966_v14  ;;  %v2672_v16 = vpop.f32.mrb[4].mxu1  ;;  %v1968_v17 = vpop.f32.mrb[5].mxu0 }
 0x29b   : > { %v3784_v19 = vadd.f32 %v6363_v45, %v2672_v16  ;;  %v3783_v20 = vadd.f32 %v6365_v46, %v1968_v17  ;;  %v2674_v21 = vpop.f32.mrb[5].mxu1  ;;  %v1970_v22 = vpop.f32.mrb[6].mxu0 }
 0x29c   : > { %v3785_v24 = vadd.f32 %v6367_v49, %v2674_v21  ;;  %v3786_v25 = vadd.f32 %v6361_v44, %v1970_v22  ;;  %v2676_v26 = vpop.f32.mrb[6].mxu1  ;;  %v1972_v27 = vpop.f32.mrb[7].mxu0 }
 0x29d   : > { %v5225_v28 = vpack.c.bf16 %v3783_v20, %v3782_v15  ;;  %v3788_v29 = vadd.f32 %v6363_v45, %v2676_v26  ;;  %v3787_v30 = vadd.f32 %v6365_v46, %v1972_v27  ;;  %v2678_v31 = vpop.f32.mrb[7].mxu1  ;;  %v1184_v15 = vpack.c.bf16 %v1056_v5, %v1052_v4  ;;  %v1051_v27 = vld [vmem:[#allocation3 + $0x7d0] sm:$0xff] }
 0x29e   : > { %v5226_v32 = vpack.c.bf16 %v3785_v24, %v3784_v19  ;;  %v3789_v33 = vadd.f32 %v6367_v49, %v2678_v31  ;;  %2235 = vmatmul.mubr.bf16.gmra.mrb[112].mxu0 %v1171_v18 }
 0x29f   : > { %4802 = vst [vmem:[%s6378_s19 + $0x20] sm:$0xff] %v5225_v28  ;;  %v5227_v34 = vpack.c.bf16 %v3787_v30, %v3786_v25  ;;  %2941 = vmatmul.mubr.bf16.gmra.mrb[112].mxu1 %v1171_v18  ;;  %2244 = vmatprep.mubr.bf16.mxu0 %v1176_v23  ;;  %v1055_v28 = vld [vmem:[#allocation3 + $0x7f0] sm:$0xff] }
 0x2a0   : > { %4803 = vst [vmem:[%s6378_s19 + $0x28] sm:$0xff] %v5226_v32  ;;  %v5228_v37 = vpack.c.bf16 %v3789_v33, %v3788_v29  ;;  %2950 = vmatprep.mubr.bf16.mxu1 %v1176_v23 }
 0x2a1   : > { %4804 = vst [vmem:[%s6378_s19 + $0x30] sm:$0xff] %v5227_v34  ;;  %v1976_v40 = vpop.f32.mrb[8].mxu0  ;;  %v1183_v34 = vpack.c.bf16 %v1055_v28, %v1051_v27 }
 0x2a2   : > { %4805 = vst [vmem:[%s6378_s19 + $0x38] sm:$0xff] %v5228_v37  ;;  %v3790_v41 = vadd.f32 %v6361_v44, %v1976_v40  ;;  %v2682_v42 = vpop.f32.mrb[8].mxu1  ;;  %v1978_v43 = vpop.f32.mrb[9].mxu0 }
 0x2a3   : > { %v3792_v48 = vadd.f32 %v6363_v45, %v2682_v42  ;;  %v3791_v50 = vadd.f32 %v6365_v46, %v1978_v43  ;;  %v2684_v51 = vpop.f32.mrb[9].mxu1  ;;  %v1980_v52 = vpop.f32.mrb[10].mxu0 }
 0x2a4   : > { %v3793_v54 = vadd.f32 %v6367_v49, %v2684_v51  ;;  %v3794_v55 = vadd.f32 %v6361_v44, %v1980_v52  ;;  %v2686_v56 = vpop.f32.mrb[10].mxu1  ;;  %v1982_v57 = vpop.f32.mrb[11].mxu0 }
 0x2a5   : > { %v5229_v58 = vpack.c.bf16 %v3791_v50, %v3790_v41  ;;  %v3796_v59 = vadd.f32 %v6363_v45, %v2686_v56  ;;  %v3795_v60 = vadd.f32 %v6365_v46, %v1982_v57  ;;  %v2688_v61 = vpop.f32.mrb[11].mxu1 }
 0x2a6   : > { %v5230_v62 = vpack.c.bf16 %v3793_v54, %v3792_v48  ;;  %v3797_v63 = vadd.f32 %v6367_v49, %v2688_v61  ;;  %2245 = vmatmul.mubr.bf16.gmra.mrb[116].mxu0 %v1175_v47 }
 0x2a7   : > { %4806 = vst [vmem:[%s6378_s19 + $0x40] sm:$0xff] %v5229_v58  ;;  %v5231_v0 = vpack.c.bf16 %v3795_v60, %v3794_v55  ;;  %2951 = vmatmul.mubr.bf16.gmra.mrb[116].mxu1 %v1175_v47  ;;  %2254 = vmatprep.mubr.bf16.mxu0 %v1180_v53 }
 0x2a8   : > { %4807 = vst [vmem:[%s6378_s19 + $0x48] sm:$0xff] %v5230_v62  ;;  %v5232_v3 = vpack.c.bf16 %v3797_v63, %v3796_v59  ;;  %2960 = vmatprep.mubr.bf16.mxu1 %v1180_v53 }
 0x2a9   : > { %4808 = vst [vmem:[%s6378_s19 + $0x50] sm:$0xff] %v5231_v0  ;;  %v1986_v6 = vpop.f32.mrb[12].mxu0 }
 0x2aa   : > { %4809 = vst [vmem:[%s6378_s19 + $0x58] sm:$0xff] %v5232_v3  ;;  %v3798_v7 = vadd.f32 %v6361_v44, %v1986_v6  ;;  %v2692_v8 = vpop.f32.mrb[12].mxu1  ;;  %v1988_v9 = vpop.f32.mrb[13].mxu0 }
 0x2ab   : > { %v3800_v11 = vadd.f32 %v6363_v45, %v2692_v8  ;;  %v3799_v12 = vadd.f32 %v6365_v46, %v1988_v9  ;;  %v2694_v13 = vpop.f32.mrb[13].mxu1  ;;  %v1990_v14 = vpop.f32.mrb[14].mxu0 }
 0x2ac   : > { %v3801_v16 = vadd.f32 %v6367_v49, %v2694_v13  ;;  %v3802_v17 = vadd.f32 %v6361_v44, %v1990_v14  ;;  %v2696_v18 = vpop.f32.mrb[14].mxu1  ;;  %v1992_v19 = vpop.f32.mrb[15].mxu0 }
 0x2ad   : > { %v5233_v20 = vpack.c.bf16 %v3799_v12, %v3798_v7  ;;  %v3804_v21 = vadd.f32 %v6363_v45, %v2696_v18  ;;  %v3803_v22 = vadd.f32 %v6365_v46, %v1992_v19  ;;  %v2698_v23 = vpop.f32.mrb[15].mxu1 }
 0x2ae   : > { %v5234_v24 = vpack.c.bf16 %v3801_v16, %v3800_v11  ;;  %v3805_v25 = vadd.f32 %v6367_v49, %v2698_v23  ;;  %2255 = vmatmul.mubr.bf16.gmra.mrb[120].mxu0 %v1179_v10 }
 0x2af   : > { %4810 = vst [vmem:[%s6378_s19 + $0x60] sm:$0xff] %v5233_v20  ;;  %v5235_v26 = vpack.c.bf16 %v3803_v22, %v3802_v17  ;;  %2961 = vmatmul.mubr.bf16.gmra.mrb[120].mxu1 %v1179_v10  ;;  %2264 = vmatprep.mubr.bf16.mxu0 %v1184_v15 }
 0x2b0   : > { %4811 = vst [vmem:[%s6378_s19 + $0x68] sm:$0xff] %v5234_v24  ;;  %v5236_v29 = vpack.c.bf16 %v3805_v25, %v3804_v21  ;;  %2970 = vmatprep.mubr.bf16.mxu1 %v1184_v15 }
 0x2b1   : > { %4812 = vst [vmem:[%s6378_s19 + $0x70] sm:$0xff] %v5235_v26  ;;  %v1996_v30 = vpop.f32.mrb[16].mxu0 }
 0x2b2   : > { %4813 = vst [vmem:[%s6378_s19 + $0x78] sm:$0xff] %v5236_v29  ;;  %v3806_v31 = vadd.f32 %v6361_v44, %v1996_v30  ;;  %v2702_v32 = vpop.f32.mrb[16].mxu1  ;;  %v1998_v33 = vpop.f32.mrb[17].mxu0 }
 0x2b3   : > { %v3808_v35 = vadd.f32 %v6363_v45, %v2702_v32  ;;  %v3807_v36 = vadd.f32 %v6365_v46, %v1998_v33  ;;  %v2704_v37 = vpop.f32.mrb[17].mxu1  ;;  %v2000_v38 = vpop.f32.mrb[18].mxu0 }
 0x2b4   : > { %v3809_v39 = vadd.f32 %v6367_v49, %v2704_v37  ;;  %v3810_v40 = vadd.f32 %v6361_v44, %v2000_v38  ;;  %v2706_v41 = vpop.f32.mrb[18].mxu1  ;;  %v2002_v42 = vpop.f32.mrb[19].mxu0 }
 0x2b5   : > { %v5237_v43 = vpack.c.bf16 %v3807_v36, %v3806_v31  ;;  %v3812_v47 = vadd.f32 %v6363_v45, %v2706_v41  ;;  %v3811_v48 = vadd.f32 %v6365_v46, %v2002_v42  ;;  %v2708_v50 = vpop.f32.mrb[19].mxu1 }
 0x2b6   : > { %v5238_v51 = vpack.c.bf16 %v3809_v39, %v3808_v35  ;;  %v3813_v52 = vadd.f32 %v6367_v49, %v2708_v50  ;;  %2265 = vmatmul.mubr.bf16.gmra.mrb[124].mxu0 %v1183_v34 }
 0x2b7   : > { %4814 = vst [vmem:[%s6378_s19 + $0x80] sm:$0xff] %v5237_v43  ;;  %v5239_v53 = vpack.c.bf16 %v3811_v48, %v3810_v40  ;;  %2971 = vmatmul.mubr.bf16.gmra.mrb[124].mxu1 %v1183_v34 }
 0x2b8   : > { %4815 = vst [vmem:[%s6378_s19 + $0x88] sm:$0xff] %v5238_v51  ;;  %v5240_v54 = vpack.c.bf16 %v3813_v52, %v3812_v47 }
 0x2b9   : > { %4816 = vst [vmem:[%s6378_s19 + $0x90] sm:$0xff] %v5239_v53  ;;  %v2006_v55 = vpop.f32.mrb[20].mxu0 }
 0x2ba   : > { %4817 = vst [vmem:[%s6378_s19 + $0x98] sm:$0xff] %v5240_v54  ;;  %v3814_v56 = vadd.f32 %v6361_v44, %v2006_v55  ;;  %v2712_v57 = vpop.f32.mrb[20].mxu1  ;;  %v2008_v58 = vpop.f32.mrb[21].mxu0 }
 0x2bb   : > { %v3816_v59 = vadd.f32 %v6363_v45, %v2712_v57  ;;  %v3815_v60 = vadd.f32 %v6365_v46, %v2008_v58  ;;  %v2714_v61 = vpop.f32.mrb[21].mxu1  ;;  %v2010_v62 = vpop.f32.mrb[22].mxu0 }
 0x2bc   : > { %v3817_v63 = vadd.f32 %v6367_v49, %v2714_v61  ;;  %v3818_v0 = vadd.f32 %v6361_v44, %v2010_v62  ;;  %v2716_v1 = vpop.f32.mrb[22].mxu1  ;;  %v2012_v2 = vpop.f32.mrb[23].mxu0 }
 0x2bd   : > { %v5241_v3 = vpack.c.bf16 %v3815_v60, %v3814_v56  ;;  %v3820_v4 = vadd.f32 %v6363_v45, %v2716_v1  ;;  %v3819_v5 = vadd.f32 %v6365_v46, %v2012_v2  ;;  %v2718_v6 = vpop.f32.mrb[23].mxu1 }
 0x2be   : > { %v5242_v7 = vpack.c.bf16 %v3817_v63, %v3816_v59  ;;  %v3821_v8 = vadd.f32 %v6367_v49, %v2718_v6 }
 0x2bf   : > { %4818 = vst [vmem:[%s6378_s19 + $0xa0] sm:$0xff] %v5241_v3  ;;  %v5243_v9 = vpack.c.bf16 %v3819_v5, %v3818_v0 }
 0x2c0   : > { %4819 = vst [vmem:[%s6378_s19 + $0xa8] sm:$0xff] %v5242_v7  ;;  %v5244_v10 = vpack.c.bf16 %v3821_v8, %v3820_v4 }
 0x2c1   : > { %4820 = vst [vmem:[%s6378_s19 + $0xb0] sm:$0xff] %v5243_v9  ;;  %v2016_v11 = vpop.f32.mrb[24].mxu0 }
 0x2c2   : > { %4821 = vst [vmem:[%s6378_s19 + $0xb8] sm:$0xff] %v5244_v10  ;;  %v3822_v12 = vadd.f32 %v6361_v44, %v2016_v11  ;;  %v2722_v13 = vpop.f32.mrb[24].mxu1  ;;  %v2018_v14 = vpop.f32.mrb[25].mxu0 }
 0x2c3   : > { %v3824_v15 = vadd.f32 %v6363_v45, %v2722_v13  ;;  %v3823_v16 = vadd.f32 %v6365_v46, %v2018_v14  ;;  %v2724_v17 = vpop.f32.mrb[25].mxu1  ;;  %v2020_v18 = vpop.f32.mrb[26].mxu0 }
 0x2c4   : > { %v3825_v19 = vadd.f32 %v6367_v49, %v2724_v17  ;;  %v3826_v20 = vadd.f32 %v6361_v44, %v2020_v18  ;;  %v2726_v21 = vpop.f32.mrb[26].mxu1  ;;  %v2022_v22 = vpop.f32.mrb[27].mxu0 }
 0x2c5   : > { %v5245_v23 = vpack.c.bf16 %v3823_v16, %v3822_v12  ;;  %v3828_v24 = vadd.f32 %v6363_v45, %v2726_v21  ;;  %v3827_v25 = vadd.f32 %v6365_v46, %v2022_v22  ;;  %v2728_v26 = vpop.f32.mrb[27].mxu1 }
 0x2c6   : > { %v5246_v27 = vpack.c.bf16 %v3825_v19, %v3824_v15  ;;  %v3829_v28 = vadd.f32 %v6367_v49, %v2728_v26 }
 0x2c7   : > { %4822 = vst [vmem:[%s6378_s19 + $0xc0] sm:$0xff] %v5245_v23  ;;  %v5247_v29 = vpack.c.bf16 %v3827_v25, %v3826_v20 }
 0x2c8   : > { %4823 = vst [vmem:[%s6378_s19 + $0xc8] sm:$0xff] %v5246_v27  ;;  %v5248_v30 = vpack.c.bf16 %v3829_v28, %v3828_v24 }
 0x2c9   : > { %4824 = vst [vmem:[%s6378_s19 + $0xd0] sm:$0xff] %v5247_v29  ;;  %v2026_v31 = vpop.f32.mrb[28].mxu0 }
 0x2ca   : > { %4825 = vst [vmem:[%s6378_s19 + $0xd8] sm:$0xff] %v5248_v30  ;;  %v3830_v32 = vadd.f32 %v6361_v44, %v2026_v31  ;;  %v2732_v33 = vpop.f32.mrb[28].mxu1  ;;  %v2028_v34 = vpop.f32.mrb[29].mxu0 }
 0x2cb   : > { %v3832_v35 = vadd.f32 %v6363_v45, %v2732_v33  ;;  %v3831_v36 = vadd.f32 %v6365_v46, %v2028_v34  ;;  %v2734_v37 = vpop.f32.mrb[29].mxu1  ;;  %v2030_v38 = vpop.f32.mrb[30].mxu0 }
 0x2cc   : > { %v3833_v39 = vadd.f32 %v6367_v49, %v2734_v37  ;;  %v3834_v40 = vadd.f32 %v6361_v44, %v2030_v38  ;;  %v2736_v41 = vpop.f32.mrb[30].mxu1  ;;  %v2032_v42 = vpop.f32.mrb[31].mxu0 }
 0x2cd   : > { %v5249_v43 = vpack.c.bf16 %v3831_v36, %v3830_v32  ;;  %v3836_v47 = vadd.f32 %v6363_v45, %v2736_v41  ;;  %v3835_v48 = vadd.f32 %v6365_v46, %v2032_v42  ;;  %v2738_v50 = vpop.f32.mrb[31].mxu1 }
 0x2ce   : > { %v5250_v51 = vpack.c.bf16 %v3833_v39, %v3832_v35  ;;  %v3837_v52 = vadd.f32 %v6367_v49, %v2738_v50 }
 0x2cf   : > { %4826 = vst [vmem:[%s6378_s19 + $0xe0] sm:$0xff] %v5249_v43  ;;  %v5251_v53 = vpack.c.bf16 %v3835_v48, %v3834_v40 }
 0x2d0   : > { %4827 = vst [vmem:[%s6378_s19 + $0xe8] sm:$0xff] %v5250_v51  ;;  %v5252_v54 = vpack.c.bf16 %v3837_v52, %v3836_v47 }
 0x2d1   : > { %4828 = vst [vmem:[%s6378_s19 + $0xf0] sm:$0xff] %v5251_v53  ;;  %v2036_v55 = vpop.f32.mrb[32].mxu0 }
 0x2d2   : > { %4829 = vst [vmem:[%s6378_s19 + $0xf8] sm:$0xff] %v5252_v54  ;;  %v3838_v56 = vadd.f32 %v6361_v44, %v2036_v55  ;;  %v2742_v57 = vpop.f32.mrb[32].mxu1  ;;  %v2038_v58 = vpop.f32.mrb[33].mxu0 }
 0x2d3   : > { %v3840_v59 = vadd.f32 %v6363_v45, %v2742_v57  ;;  %v3839_v60 = vadd.f32 %v6365_v46, %v2038_v58  ;;  %v2744_v61 = vpop.f32.mrb[33].mxu1  ;;  %v2040_v62 = vpop.f32.mrb[34].mxu0 }
 0x2d4   : > { %v3841_v63 = vadd.f32 %v6367_v49, %v2744_v61  ;;  %v3842_v0 = vadd.f32 %v6361_v44, %v2040_v62  ;;  %v2746_v1 = vpop.f32.mrb[34].mxu1  ;;  %v2042_v2 = vpop.f32.mrb[35].mxu0 }
 0x2d5   : > { %v5253_v3 = vpack.c.bf16 %v3839_v60, %v3838_v56  ;;  %v3844_v4 = vadd.f32 %v6363_v45, %v2746_v1  ;;  %v3843_v5 = vadd.f32 %v6365_v46, %v2042_v2  ;;  %v2748_v6 = vpop.f32.mrb[35].mxu1 }
 0x2d6   : > { %v5254_v7 = vpack.c.bf16 %v3841_v63, %v3840_v59  ;;  %v3845_v8 = vadd.f32 %v6367_v49, %v2748_v6 }
 0x2d7   : > { %4830 = vst [vmem:[%s6378_s19 + $0x100] sm:$0xff] %v5253_v3  ;;  %v5255_v9 = vpack.c.bf16 %v3843_v5, %v3842_v0 }
 0x2d8   : > { %4831 = vst [vmem:[%s6378_s19 + $0x108] sm:$0xff] %v5254_v7  ;;  %v5256_v10 = vpack.c.bf16 %v3845_v8, %v3844_v4 }
 0x2d9   : > { %4832 = vst [vmem:[%s6378_s19 + $0x110] sm:$0xff] %v5255_v9  ;;  %v2046_v11 = vpop.f32.mrb[36].mxu0 }
 0x2da   : > { %4833 = vst [vmem:[%s6378_s19 + $0x118] sm:$0xff] %v5256_v10  ;;  %v3846_v12 = vadd.f32 %v6361_v44, %v2046_v11  ;;  %v2752_v13 = vpop.f32.mrb[36].mxu1  ;;  %v2048_v14 = vpop.f32.mrb[37].mxu0 }
 0x2db   : > { %v3848_v15 = vadd.f32 %v6363_v45, %v2752_v13  ;;  %v3847_v16 = vadd.f32 %v6365_v46, %v2048_v14  ;;  %v2754_v17 = vpop.f32.mrb[37].mxu1  ;;  %v2050_v18 = vpop.f32.mrb[38].mxu0 }
 0x2dc   : > { %v3849_v19 = vadd.f32 %v6367_v49, %v2754_v17  ;;  %v3850_v20 = vadd.f32 %v6361_v44, %v2050_v18  ;;  %v2756_v21 = vpop.f32.mrb[38].mxu1  ;;  %v2052_v22 = vpop.f32.mrb[39].mxu0 }
 0x2dd   : > { %v5257_v23 = vpack.c.bf16 %v3847_v16, %v3846_v12  ;;  %v3852_v24 = vadd.f32 %v6363_v45, %v2756_v21  ;;  %v3851_v25 = vadd.f32 %v6365_v46, %v2052_v22  ;;  %v2758_v26 = vpop.f32.mrb[39].mxu1 }
 0x2de   : > { %v5258_v27 = vpack.c.bf16 %v3849_v19, %v3848_v15  ;;  %v3853_v28 = vadd.f32 %v6367_v49, %v2758_v26 }
 0x2df   : > { %4834 = vst [vmem:[%s6378_s19 + $0x120] sm:$0xff] %v5257_v23  ;;  %v5259_v29 = vpack.c.bf16 %v3851_v25, %v3850_v20 }
 0x2e0   : > { %4835 = vst [vmem:[%s6378_s19 + $0x128] sm:$0xff] %v5258_v27  ;;  %v5260_v30 = vpack.c.bf16 %v3853_v28, %v3852_v24 }
 0x2e1   : > { %4836 = vst [vmem:[%s6378_s19 + $0x130] sm:$0xff] %v5259_v29  ;;  %v2056_v31 = vpop.f32.mrb[40].mxu0 }
 0x2e2   : > { %4837 = vst [vmem:[%s6378_s19 + $0x138] sm:$0xff] %v5260_v30  ;;  %v3854_v32 = vadd.f32 %v6361_v44, %v2056_v31  ;;  %v2762_v33 = vpop.f32.mrb[40].mxu1  ;;  %v2058_v34 = vpop.f32.mrb[41].mxu0 }
 0x2e3   : > { %v3856_v35 = vadd.f32 %v6363_v45, %v2762_v33  ;;  %v3855_v36 = vadd.f32 %v6365_v46, %v2058_v34  ;;  %v2764_v37 = vpop.f32.mrb[41].mxu1  ;;  %v2060_v38 = vpop.f32.mrb[42].mxu0 }
 0x2e4   : > { %v3857_v39 = vadd.f32 %v6367_v49, %v2764_v37  ;;  %v3858_v40 = vadd.f32 %v6361_v44, %v2060_v38  ;;  %v2766_v41 = vpop.f32.mrb[42].mxu1  ;;  %v2062_v42 = vpop.f32.mrb[43].mxu0 }
 0x2e5   : > { %v5261_v43 = vpack.c.bf16 %v3855_v36, %v3854_v32  ;;  %v3860_v47 = vadd.f32 %v6363_v45, %v2766_v41  ;;  %v3859_v48 = vadd.f32 %v6365_v46, %v2062_v42  ;;  %v2768_v50 = vpop.f32.mrb[43].mxu1 }
 0x2e6   : > { %v5262_v51 = vpack.c.bf16 %v3857_v39, %v3856_v35  ;;  %v3861_v52 = vadd.f32 %v6367_v49, %v2768_v50 }
 0x2e7   : > { %4838 = vst [vmem:[%s6378_s19 + $0x140] sm:$0xff] %v5261_v43  ;;  %v5263_v53 = vpack.c.bf16 %v3859_v48, %v3858_v40 }
 0x2e8   : > { %4839 = vst [vmem:[%s6378_s19 + $0x148] sm:$0xff] %v5262_v51  ;;  %v5264_v54 = vpack.c.bf16 %v3861_v52, %v3860_v47 }
 0x2e9   : > { %4840 = vst [vmem:[%s6378_s19 + $0x150] sm:$0xff] %v5263_v53  ;;  %v2066_v55 = vpop.f32.mrb[44].mxu0 }
 0x2ea   : > { %4841 = vst [vmem:[%s6378_s19 + $0x158] sm:$0xff] %v5264_v54  ;;  %v3862_v56 = vadd.f32 %v6361_v44, %v2066_v55  ;;  %v2772_v57 = vpop.f32.mrb[44].mxu1  ;;  %v2068_v58 = vpop.f32.mrb[45].mxu0 }
 0x2eb   : > { %v3864_v59 = vadd.f32 %v6363_v45, %v2772_v57  ;;  %v3863_v60 = vadd.f32 %v6365_v46, %v2068_v58  ;;  %v2774_v61 = vpop.f32.mrb[45].mxu1  ;;  %v2070_v62 = vpop.f32.mrb[46].mxu0 }
 0x2ec   : > { %v3865_v63 = vadd.f32 %v6367_v49, %v2774_v61  ;;  %v3866_v0 = vadd.f32 %v6361_v44, %v2070_v62  ;;  %v2776_v1 = vpop.f32.mrb[46].mxu1  ;;  %v2072_v2 = vpop.f32.mrb[47].mxu0 }
 0x2ed   : > { %v5265_v3 = vpack.c.bf16 %v3863_v60, %v3862_v56  ;;  %v3868_v4 = vadd.f32 %v6363_v45, %v2776_v1  ;;  %v3867_v5 = vadd.f32 %v6365_v46, %v2072_v2  ;;  %v2778_v6 = vpop.f32.mrb[47].mxu1 }
 0x2ee   : > { %v5266_v7 = vpack.c.bf16 %v3865_v63, %v3864_v59  ;;  %v3869_v8 = vadd.f32 %v6367_v49, %v2778_v6 }
 0x2ef   : > { %4842 = vst [vmem:[%s6378_s19 + $0x160] sm:$0xff] %v5265_v3  ;;  %v5267_v9 = vpack.c.bf16 %v3867_v5, %v3866_v0 }
 0x2f0   : > { %4843 = vst [vmem:[%s6378_s19 + $0x168] sm:$0xff] %v5266_v7  ;;  %v5268_v10 = vpack.c.bf16 %v3869_v8, %v3868_v4 }
 0x2f1   : > { %4844 = vst [vmem:[%s6378_s19 + $0x170] sm:$0xff] %v5267_v9  ;;  %v2076_v11 = vpop.f32.mrb[48].mxu0 }
 0x2f2   : > { %4845 = vst [vmem:[%s6378_s19 + $0x178] sm:$0xff] %v5268_v10  ;;  %v3870_v12 = vadd.f32 %v6361_v44, %v2076_v11  ;;  %v2782_v13 = vpop.f32.mrb[48].mxu1  ;;  %v2078_v14 = vpop.f32.mrb[49].mxu0 }
 0x2f3   : > { %v3872_v15 = vadd.f32 %v6363_v45, %v2782_v13  ;;  %v3871_v16 = vadd.f32 %v6365_v46, %v2078_v14  ;;  %v2784_v17 = vpop.f32.mrb[49].mxu1  ;;  %v2080_v18 = vpop.f32.mrb[50].mxu0 }
 0x2f4   : > { %v3873_v19 = vadd.f32 %v6367_v49, %v2784_v17  ;;  %v3874_v20 = vadd.f32 %v6361_v44, %v2080_v18  ;;  %v2786_v21 = vpop.f32.mrb[50].mxu1  ;;  %v2082_v22 = vpop.f32.mrb[51].mxu0 }
 0x2f5   : > { %v5269_v23 = vpack.c.bf16 %v3871_v16, %v3870_v12  ;;  %v3876_v24 = vadd.f32 %v6363_v45, %v2786_v21  ;;  %v3875_v25 = vadd.f32 %v6365_v46, %v2082_v22  ;;  %v2788_v26 = vpop.f32.mrb[51].mxu1 }
 0x2f6   : > { %v5270_v27 = vpack.c.bf16 %v3873_v19, %v3872_v15  ;;  %v3877_v28 = vadd.f32 %v6367_v49, %v2788_v26 }
 0x2f7   : > { %4846 = vst [vmem:[%s6378_s19 + $0x180] sm:$0xff] %v5269_v23  ;;  %v5271_v29 = vpack.c.bf16 %v3875_v25, %v3874_v20 }
 0x2f8   : > { %4847 = vst [vmem:[%s6378_s19 + $0x188] sm:$0xff] %v5270_v27  ;;  %v5272_v30 = vpack.c.bf16 %v3877_v28, %v3876_v24 }
 0x2f9   : > { %4848 = vst [vmem:[%s6378_s19 + $0x190] sm:$0xff] %v5271_v29  ;;  %v2086_v31 = vpop.f32.mrb[52].mxu0 }
 0x2fa   : > { %4849 = vst [vmem:[%s6378_s19 + $0x198] sm:$0xff] %v5272_v30  ;;  %v3878_v32 = vadd.f32 %v6361_v44, %v2086_v31  ;;  %v2792_v33 = vpop.f32.mrb[52].mxu1  ;;  %v2088_v34 = vpop.f32.mrb[53].mxu0 }
 0x2fb   : > { %v3880_v35 = vadd.f32 %v6363_v45, %v2792_v33  ;;  %v3879_v36 = vadd.f32 %v6365_v46, %v2088_v34  ;;  %v2794_v37 = vpop.f32.mrb[53].mxu1  ;;  %v2090_v38 = vpop.f32.mrb[54].mxu0 }
 0x2fc   : > { %v3881_v39 = vadd.f32 %v6367_v49, %v2794_v37  ;;  %v3882_v40 = vadd.f32 %v6361_v44, %v2090_v38  ;;  %v2796_v41 = vpop.f32.mrb[54].mxu1  ;;  %v2092_v42 = vpop.f32.mrb[55].mxu0 }
 0x2fd   : > { %v5273_v43 = vpack.c.bf16 %v3879_v36, %v3878_v32  ;;  %v3884_v47 = vadd.f32 %v6363_v45, %v2796_v41  ;;  %v3883_v48 = vadd.f32 %v6365_v46, %v2092_v42  ;;  %v2798_v50 = vpop.f32.mrb[55].mxu1 }
 0x2fe   : > { %v5274_v51 = vpack.c.bf16 %v3881_v39, %v3880_v35  ;;  %v3885_v52 = vadd.f32 %v6367_v49, %v2798_v50 }
 0x2ff   : > { %4850 = vst [vmem:[%s6378_s19 + $0x1a0] sm:$0xff] %v5273_v43  ;;  %v5275_v53 = vpack.c.bf16 %v3883_v48, %v3882_v40 }
 0x300   : > { %4851 = vst [vmem:[%s6378_s19 + $0x1a8] sm:$0xff] %v5274_v51  ;;  %v5276_v54 = vpack.c.bf16 %v3885_v52, %v3884_v47 }
 0x301   : > { %4852 = vst [vmem:[%s6378_s19 + $0x1b0] sm:$0xff] %v5275_v53  ;;  %v2096_v55 = vpop.f32.mrb[56].mxu0 }
 0x302   : > { %4853 = vst [vmem:[%s6378_s19 + $0x1b8] sm:$0xff] %v5276_v54  ;;  %v3886_v56 = vadd.f32 %v6361_v44, %v2096_v55  ;;  %v2802_v57 = vpop.f32.mrb[56].mxu1  ;;  %v2098_v58 = vpop.f32.mrb[57].mxu0 }
 0x303   : > { %v3888_v59 = vadd.f32 %v6363_v45, %v2802_v57  ;;  %v3887_v60 = vadd.f32 %v6365_v46, %v2098_v58  ;;  %v2804_v61 = vpop.f32.mrb[57].mxu1  ;;  %v2100_v62 = vpop.f32.mrb[58].mxu0 }
 0x304   : > { %v3889_v63 = vadd.f32 %v6367_v49, %v2804_v61  ;;  %v3890_v0 = vadd.f32 %v6361_v44, %v2100_v62  ;;  %v2806_v1 = vpop.f32.mrb[58].mxu1  ;;  %v2102_v2 = vpop.f32.mrb[59].mxu0 }
 0x305   : > { %v5277_v3 = vpack.c.bf16 %v3887_v60, %v3886_v56  ;;  %v3892_v4 = vadd.f32 %v6363_v45, %v2806_v1  ;;  %v3891_v5 = vadd.f32 %v6365_v46, %v2102_v2  ;;  %v2808_v6 = vpop.f32.mrb[59].mxu1 }
 0x306   : > { %v5278_v7 = vpack.c.bf16 %v3889_v63, %v3888_v59  ;;  %v3893_v8 = vadd.f32 %v6367_v49, %v2808_v6 }
 0x307   : > { %4854 = vst [vmem:[%s6378_s19 + $0x1c0] sm:$0xff] %v5277_v3  ;;  %v5279_v9 = vpack.c.bf16 %v3891_v5, %v3890_v0 }
 0x308   : > { %4855 = vst [vmem:[%s6378_s19 + $0x1c8] sm:$0xff] %v5278_v7  ;;  %v5280_v10 = vpack.c.bf16 %v3893_v8, %v3892_v4 }
 0x309   : > { %4856 = vst [vmem:[%s6378_s19 + $0x1d0] sm:$0xff] %v5279_v9  ;;  %v2106_v11 = vpop.f32.mrb[60].mxu0 }
 0x30a   : > { %4857 = vst [vmem:[%s6378_s19 + $0x1d8] sm:$0xff] %v5280_v10  ;;  %v3894_v12 = vadd.f32 %v6361_v44, %v2106_v11  ;;  %v2812_v13 = vpop.f32.mrb[60].mxu1  ;;  %v2108_v14 = vpop.f32.mrb[61].mxu0 }
 0x30b   : > { %v3896_v15 = vadd.f32 %v6363_v45, %v2812_v13  ;;  %v3895_v16 = vadd.f32 %v6365_v46, %v2108_v14  ;;  %v2814_v17 = vpop.f32.mrb[61].mxu1  ;;  %v2110_v18 = vpop.f32.mrb[62].mxu0 }
 0x30c   : > { %v3897_v19 = vadd.f32 %v6367_v49, %v2814_v17  ;;  %v3898_v20 = vadd.f32 %v6361_v44, %v2110_v18  ;;  %v2816_v21 = vpop.f32.mrb[62].mxu1  ;;  %v2112_v22 = vpop.f32.mrb[63].mxu0 }
 0x30d   : > { %v5281_v23 = vpack.c.bf16 %v3895_v16, %v3894_v12  ;;  %v3900_v24 = vadd.f32 %v6363_v45, %v2816_v21  ;;  %v3899_v25 = vadd.f32 %v6365_v46, %v2112_v22  ;;  %v2818_v26 = vpop.f32.mrb[63].mxu1 }
 0x30e   : > { %v5282_v27 = vpack.c.bf16 %v3897_v19, %v3896_v15  ;;  %v3901_v28 = vadd.f32 %v6367_v49, %v2818_v26 }
 0x30f   : > { %4858 = vst [vmem:[%s6378_s19 + $0x1e0] sm:$0xff] %v5281_v23  ;;  %v5283_v29 = vpack.c.bf16 %v3899_v25, %v3898_v20 }
 0x310   : > { %4859 = vst [vmem:[%s6378_s19 + $0x1e8] sm:$0xff] %v5282_v27  ;;  %v5284_v30 = vpack.c.bf16 %v3901_v28, %v3900_v24 }
 0x311   : > { %4860 = vst [vmem:[%s6378_s19 + $0x1f0] sm:$0xff] %v5283_v29  ;;  %v2116_v31 = vpop.f32.mrb[64].mxu0 }
 0x312   : > { %4861 = vst [vmem:[%s6378_s19 + $0x1f8] sm:$0xff] %v5284_v30  ;;  %v3902_v32 = vadd.f32 %v6361_v44, %v2116_v31  ;;  %v2822_v33 = vpop.f32.mrb[64].mxu1  ;;  %v2118_v34 = vpop.f32.mrb[65].mxu0 }
 0x313   : > { %v3904_v35 = vadd.f32 %v6363_v45, %v2822_v33  ;;  %v3903_v36 = vadd.f32 %v6365_v46, %v2118_v34  ;;  %v2824_v37 = vpop.f32.mrb[65].mxu1  ;;  %v2120_v38 = vpop.f32.mrb[66].mxu0 }
 0x314   : > { %v3905_v39 = vadd.f32 %v6367_v49, %v2824_v37  ;;  %v3906_v40 = vadd.f32 %v6361_v44, %v2120_v38  ;;  %v2826_v41 = vpop.f32.mrb[66].mxu1  ;;  %v2122_v42 = vpop.f32.mrb[67].mxu0 }
 0x315   : > { %v5285_v43 = vpack.c.bf16 %v3903_v36, %v3902_v32  ;;  %v3908_v47 = vadd.f32 %v6363_v45, %v2826_v41  ;;  %v3907_v48 = vadd.f32 %v6365_v46, %v2122_v42  ;;  %v2828_v50 = vpop.f32.mrb[67].mxu1 }
 0x316   : > { %v5286_v51 = vpack.c.bf16 %v3905_v39, %v3904_v35  ;;  %v3909_v52 = vadd.f32 %v6367_v49, %v2828_v50 }
 0x317   : > { %4862 = vst [vmem:[%s6378_s19 + $0x200] sm:$0xff] %v5285_v43  ;;  %v5287_v53 = vpack.c.bf16 %v3907_v48, %v3906_v40 }
 0x318   : > { %4863 = vst [vmem:[%s6378_s19 + $0x208] sm:$0xff] %v5286_v51  ;;  %v5288_v54 = vpack.c.bf16 %v3909_v52, %v3908_v47 }
 0x319   : > { %4864 = vst [vmem:[%s6378_s19 + $0x210] sm:$0xff] %v5287_v53  ;;  %v2126_v55 = vpop.f32.mrb[68].mxu0 }
 0x31a   : > { %4865 = vst [vmem:[%s6378_s19 + $0x218] sm:$0xff] %v5288_v54  ;;  %v3910_v56 = vadd.f32 %v6361_v44, %v2126_v55  ;;  %v2832_v57 = vpop.f32.mrb[68].mxu1  ;;  %v2128_v58 = vpop.f32.mrb[69].mxu0 }
 0x31b   : > { %v3912_v59 = vadd.f32 %v6363_v45, %v2832_v57  ;;  %v3911_v60 = vadd.f32 %v6365_v46, %v2128_v58  ;;  %v2834_v61 = vpop.f32.mrb[69].mxu1  ;;  %v2130_v62 = vpop.f32.mrb[70].mxu0 }
 0x31c   : > { %v3913_v63 = vadd.f32 %v6367_v49, %v2834_v61  ;;  %v3914_v0 = vadd.f32 %v6361_v44, %v2130_v62  ;;  %v2836_v1 = vpop.f32.mrb[70].mxu1  ;;  %v2132_v2 = vpop.f32.mrb[71].mxu0 }
 0x31d   : > { %v5289_v3 = vpack.c.bf16 %v3911_v60, %v3910_v56  ;;  %v3916_v4 = vadd.f32 %v6363_v45, %v2836_v1  ;;  %v3915_v5 = vadd.f32 %v6365_v46, %v2132_v2  ;;  %v2838_v6 = vpop.f32.mrb[71].mxu1 }
 0x31e   : > { %v5290_v7 = vpack.c.bf16 %v3913_v63, %v3912_v59  ;;  %v3917_v8 = vadd.f32 %v6367_v49, %v2838_v6 }
 0x31f   : > { %4866 = vst [vmem:[%s6378_s19 + $0x220] sm:$0xff] %v5289_v3  ;;  %v5291_v9 = vpack.c.bf16 %v3915_v5, %v3914_v0 }
 0x320   : > { %4867 = vst [vmem:[%s6378_s19 + $0x228] sm:$0xff] %v5290_v7  ;;  %v5292_v10 = vpack.c.bf16 %v3917_v8, %v3916_v4 }
 0x321   : > { %4868 = vst [vmem:[%s6378_s19 + $0x230] sm:$0xff] %v5291_v9  ;;  %v2136_v11 = vpop.f32.mrb[72].mxu0 }
 0x322   : > { %4869 = vst [vmem:[%s6378_s19 + $0x238] sm:$0xff] %v5292_v10  ;;  %v3918_v12 = vadd.f32 %v6361_v44, %v2136_v11  ;;  %v2842_v13 = vpop.f32.mrb[72].mxu1  ;;  %v2138_v14 = vpop.f32.mrb[73].mxu0 }
 0x323   : > { %v3920_v15 = vadd.f32 %v6363_v45, %v2842_v13  ;;  %v3919_v16 = vadd.f32 %v6365_v46, %v2138_v14  ;;  %v2844_v17 = vpop.f32.mrb[73].mxu1  ;;  %v2140_v18 = vpop.f32.mrb[74].mxu0 }
 0x324   : > { %v3921_v19 = vadd.f32 %v6367_v49, %v2844_v17  ;;  %v3922_v20 = vadd.f32 %v6361_v44, %v2140_v18  ;;  %v2846_v21 = vpop.f32.mrb[74].mxu1  ;;  %v2142_v22 = vpop.f32.mrb[75].mxu0 }
 0x325   : > { %v5293_v23 = vpack.c.bf16 %v3919_v16, %v3918_v12  ;;  %v3924_v24 = vadd.f32 %v6363_v45, %v2846_v21  ;;  %v3923_v25 = vadd.f32 %v6365_v46, %v2142_v22  ;;  %v2848_v26 = vpop.f32.mrb[75].mxu1 }
 0x326   : > { %v5294_v27 = vpack.c.bf16 %v3921_v19, %v3920_v15  ;;  %v3925_v28 = vadd.f32 %v6367_v49, %v2848_v26 }
 0x327   : > { %4870 = vst [vmem:[%s6378_s19 + $0x240] sm:$0xff] %v5293_v23  ;;  %v5295_v29 = vpack.c.bf16 %v3923_v25, %v3922_v20 }
 0x328   : > { %4871 = vst [vmem:[%s6378_s19 + $0x248] sm:$0xff] %v5294_v27  ;;  %v5296_v30 = vpack.c.bf16 %v3925_v28, %v3924_v24 }
 0x329   : > { %4872 = vst [vmem:[%s6378_s19 + $0x250] sm:$0xff] %v5295_v29  ;;  %v2146_v31 = vpop.f32.mrb[76].mxu0 }
 0x32a   : > { %4873 = vst [vmem:[%s6378_s19 + $0x258] sm:$0xff] %v5296_v30  ;;  %v3926_v32 = vadd.f32 %v6361_v44, %v2146_v31  ;;  %v2852_v33 = vpop.f32.mrb[76].mxu1  ;;  %v2148_v34 = vpop.f32.mrb[77].mxu0 }
 0x32b   : > { %v3928_v35 = vadd.f32 %v6363_v45, %v2852_v33  ;;  %v3927_v36 = vadd.f32 %v6365_v46, %v2148_v34  ;;  %v2854_v37 = vpop.f32.mrb[77].mxu1  ;;  %v2150_v38 = vpop.f32.mrb[78].mxu0 }
 0x32c   : > { %v3929_v39 = vadd.f32 %v6367_v49, %v2854_v37  ;;  %v3930_v40 = vadd.f32 %v6361_v44, %v2150_v38  ;;  %v2856_v41 = vpop.f32.mrb[78].mxu1  ;;  %v2152_v42 = vpop.f32.mrb[79].mxu0 }
 0x32d   : > { %v5297_v43 = vpack.c.bf16 %v3927_v36, %v3926_v32  ;;  %v3932_v47 = vadd.f32 %v6363_v45, %v2856_v41  ;;  %v3931_v48 = vadd.f32 %v6365_v46, %v2152_v42  ;;  %v2858_v50 = vpop.f32.mrb[79].mxu1 }
 0x32e   : > { %v5298_v51 = vpack.c.bf16 %v3929_v39, %v3928_v35  ;;  %v3933_v52 = vadd.f32 %v6367_v49, %v2858_v50 }
 0x32f   : > { %4874 = vst [vmem:[%s6378_s19 + $0x260] sm:$0xff] %v5297_v43  ;;  %v5299_v53 = vpack.c.bf16 %v3931_v48, %v3930_v40 }
 0x330   : > { %4875 = vst [vmem:[%s6378_s19 + $0x268] sm:$0xff] %v5298_v51  ;;  %v5300_v54 = vpack.c.bf16 %v3933_v52, %v3932_v47 }
 0x331   : > { %4876 = vst [vmem:[%s6378_s19 + $0x270] sm:$0xff] %v5299_v53  ;;  %v2156_v55 = vpop.f32.mrb[80].mxu0 }
 0x332   : > { %4877 = vst [vmem:[%s6378_s19 + $0x278] sm:$0xff] %v5300_v54  ;;  %v3934_v56 = vadd.f32 %v6361_v44, %v2156_v55  ;;  %v2862_v57 = vpop.f32.mrb[80].mxu1  ;;  %v2158_v58 = vpop.f32.mrb[81].mxu0 }
 0x333   : > { %v3936_v59 = vadd.f32 %v6363_v45, %v2862_v57  ;;  %v3935_v60 = vadd.f32 %v6365_v46, %v2158_v58  ;;  %v2864_v61 = vpop.f32.mrb[81].mxu1  ;;  %v2160_v62 = vpop.f32.mrb[82].mxu0 }
 0x334   : > { %v3937_v63 = vadd.f32 %v6367_v49, %v2864_v61  ;;  %v3938_v0 = vadd.f32 %v6361_v44, %v2160_v62  ;;  %v2866_v1 = vpop.f32.mrb[82].mxu1  ;;  %v2162_v2 = vpop.f32.mrb[83].mxu0 }
 0x335   : > { %v5301_v3 = vpack.c.bf16 %v3935_v60, %v3934_v56  ;;  %v3940_v4 = vadd.f32 %v6363_v45, %v2866_v1  ;;  %v3939_v5 = vadd.f32 %v6365_v46, %v2162_v2  ;;  %v2868_v6 = vpop.f32.mrb[83].mxu1 }
 0x336   : > { %v5302_v7 = vpack.c.bf16 %v3937_v63, %v3936_v59  ;;  %v3941_v8 = vadd.f32 %v6367_v49, %v2868_v6 }
 0x337   : > { %4878 = vst [vmem:[%s6378_s19 + $0x280] sm:$0xff] %v5301_v3  ;;  %v5303_v9 = vpack.c.bf16 %v3939_v5, %v3938_v0 }
 0x338   : > { %4879 = vst [vmem:[%s6378_s19 + $0x288] sm:$0xff] %v5302_v7  ;;  %v5304_v10 = vpack.c.bf16 %v3941_v8, %v3940_v4 }
 0x339   : > { %4880 = vst [vmem:[%s6378_s19 + $0x290] sm:$0xff] %v5303_v9  ;;  %v2166_v11 = vpop.f32.mrb[84].mxu0 }
 0x33a   : > { %4881 = vst [vmem:[%s6378_s19 + $0x298] sm:$0xff] %v5304_v10  ;;  %v3942_v12 = vadd.f32 %v6361_v44, %v2166_v11  ;;  %v2872_v13 = vpop.f32.mrb[84].mxu1  ;;  %v2168_v14 = vpop.f32.mrb[85].mxu0 }
 0x33b   : > { %v3944_v15 = vadd.f32 %v6363_v45, %v2872_v13  ;;  %v3943_v16 = vadd.f32 %v6365_v46, %v2168_v14  ;;  %v2874_v17 = vpop.f32.mrb[85].mxu1  ;;  %v2170_v18 = vpop.f32.mrb[86].mxu0 }
 0x33c   : > { %v3945_v19 = vadd.f32 %v6367_v49, %v2874_v17  ;;  %v3946_v20 = vadd.f32 %v6361_v44, %v2170_v18  ;;  %v2876_v21 = vpop.f32.mrb[86].mxu1  ;;  %v2172_v22 = vpop.f32.mrb[87].mxu0 }
 0x33d   : > { %v5305_v23 = vpack.c.bf16 %v3943_v16, %v3942_v12  ;;  %v3948_v24 = vadd.f32 %v6363_v45, %v2876_v21  ;;  %v3947_v25 = vadd.f32 %v6365_v46, %v2172_v22  ;;  %v2878_v26 = vpop.f32.mrb[87].mxu1 }
 0x33e   : > { %v5306_v27 = vpack.c.bf16 %v3945_v19, %v3944_v15  ;;  %v3949_v28 = vadd.f32 %v6367_v49, %v2878_v26 }
 0x33f   : > { %4882 = vst [vmem:[%s6378_s19 + $0x2a0] sm:$0xff] %v5305_v23  ;;  %v5307_v29 = vpack.c.bf16 %v3947_v25, %v3946_v20 }
 0x340   : > { %4883 = vst [vmem:[%s6378_s19 + $0x2a8] sm:$0xff] %v5306_v27  ;;  %v5308_v30 = vpack.c.bf16 %v3949_v28, %v3948_v24 }
 0x341   : > { %4884 = vst [vmem:[%s6378_s19 + $0x2b0] sm:$0xff] %v5307_v29  ;;  %v2176_v31 = vpop.f32.mrb[88].mxu0 }
 0x342   : > { %4885 = vst [vmem:[%s6378_s19 + $0x2b8] sm:$0xff] %v5308_v30  ;;  %v3950_v32 = vadd.f32 %v6361_v44, %v2176_v31  ;;  %v2882_v33 = vpop.f32.mrb[88].mxu1  ;;  %v2178_v34 = vpop.f32.mrb[89].mxu0 }
 0x343   : > { %v3952_v35 = vadd.f32 %v6363_v45, %v2882_v33  ;;  %v3951_v36 = vadd.f32 %v6365_v46, %v2178_v34  ;;  %v2884_v37 = vpop.f32.mrb[89].mxu1  ;;  %v2180_v38 = vpop.f32.mrb[90].mxu0 }
 0x344   : > { %v3953_v39 = vadd.f32 %v6367_v49, %v2884_v37  ;;  %v3954_v40 = vadd.f32 %v6361_v44, %v2180_v38  ;;  %v2886_v41 = vpop.f32.mrb[90].mxu1  ;;  %v2182_v42 = vpop.f32.mrb[91].mxu0 }
 0x345   : > { %v5309_v43 = vpack.c.bf16 %v3951_v36, %v3950_v32  ;;  %v3956_v47 = vadd.f32 %v6363_v45, %v2886_v41  ;;  %v3955_v48 = vadd.f32 %v6365_v46, %v2182_v42  ;;  %v2888_v50 = vpop.f32.mrb[91].mxu1 }
 0x346   : > { %v5310_v51 = vpack.c.bf16 %v3953_v39, %v3952_v35  ;;  %v3957_v52 = vadd.f32 %v6367_v49, %v2888_v50 }
 0x347   : > { %4886 = vst [vmem:[%s6378_s19 + $0x2c0] sm:$0xff] %v5309_v43  ;;  %v5311_v53 = vpack.c.bf16 %v3955_v48, %v3954_v40 }
 0x348   : > { %4887 = vst [vmem:[%s6378_s19 + $0x2c8] sm:$0xff] %v5310_v51  ;;  %v5312_v54 = vpack.c.bf16 %v3957_v52, %v3956_v47 }
 0x349   : > { %4888 = vst [vmem:[%s6378_s19 + $0x2d0] sm:$0xff] %v5311_v53  ;;  %v2186_v55 = vpop.f32.mrb[92].mxu0 }
 0x34a   : > { %4889 = vst [vmem:[%s6378_s19 + $0x2d8] sm:$0xff] %v5312_v54  ;;  %v3958_v56 = vadd.f32 %v6361_v44, %v2186_v55  ;;  %v2892_v57 = vpop.f32.mrb[92].mxu1  ;;  %v2188_v58 = vpop.f32.mrb[93].mxu0 }
 0x34b   : > { %v3960_v59 = vadd.f32 %v6363_v45, %v2892_v57  ;;  %v3959_v60 = vadd.f32 %v6365_v46, %v2188_v58  ;;  %v2894_v61 = vpop.f32.mrb[93].mxu1  ;;  %v2190_v62 = vpop.f32.mrb[94].mxu0 }
 0x34c   : > { %v3961_v63 = vadd.f32 %v6367_v49, %v2894_v61  ;;  %v3962_v0 = vadd.f32 %v6361_v44, %v2190_v62  ;;  %v2896_v1 = vpop.f32.mrb[94].mxu1  ;;  %v2192_v2 = vpop.f32.mrb[95].mxu0 }
 0x34d   : > { %v5313_v3 = vpack.c.bf16 %v3959_v60, %v3958_v56  ;;  %v3964_v4 = vadd.f32 %v6363_v45, %v2896_v1  ;;  %v3963_v5 = vadd.f32 %v6365_v46, %v2192_v2  ;;  %v2898_v6 = vpop.f32.mrb[95].mxu1 }
 0x34e   : > { %v5314_v7 = vpack.c.bf16 %v3961_v63, %v3960_v59  ;;  %v3965_v8 = vadd.f32 %v6367_v49, %v2898_v6 }
 0x34f   : > { %4890 = vst [vmem:[%s6378_s19 + $0x2e0] sm:$0xff] %v5313_v3  ;;  %v5315_v9 = vpack.c.bf16 %v3963_v5, %v3962_v0 }
 0x350   : > { %4891 = vst [vmem:[%s6378_s19 + $0x2e8] sm:$0xff] %v5314_v7  ;;  %v5316_v10 = vpack.c.bf16 %v3965_v8, %v3964_v4 }
 0x351   : > { %4892 = vst [vmem:[%s6378_s19 + $0x2f0] sm:$0xff] %v5315_v9  ;;  %v2196_v11 = vpop.f32.mrb[96].mxu0 }
 0x352   : > { %4893 = vst [vmem:[%s6378_s19 + $0x2f8] sm:$0xff] %v5316_v10  ;;  %v3966_v12 = vadd.f32 %v6361_v44, %v2196_v11  ;;  %v2902_v13 = vpop.f32.mrb[96].mxu1  ;;  %v2198_v14 = vpop.f32.mrb[97].mxu0 }
 0x353   : > { %v3968_v15 = vadd.f32 %v6363_v45, %v2902_v13  ;;  %v3967_v16 = vadd.f32 %v6365_v46, %v2198_v14  ;;  %v2904_v17 = vpop.f32.mrb[97].mxu1  ;;  %v2200_v18 = vpop.f32.mrb[98].mxu0 }
 0x354   : > { %v3969_v19 = vadd.f32 %v6367_v49, %v2904_v17  ;;  %v3970_v20 = vadd.f32 %v6361_v44, %v2200_v18  ;;  %v2906_v21 = vpop.f32.mrb[98].mxu1  ;;  %v2202_v22 = vpop.f32.mrb[99].mxu0 }
 0x355   : > { %v5317_v23 = vpack.c.bf16 %v3967_v16, %v3966_v12  ;;  %v3972_v24 = vadd.f32 %v6363_v45, %v2906_v21  ;;  %v3971_v25 = vadd.f32 %v6365_v46, %v2202_v22  ;;  %v2908_v26 = vpop.f32.mrb[99].mxu1 }
 0x356   : > { %v5318_v27 = vpack.c.bf16 %v3969_v19, %v3968_v15  ;;  %v3973_v28 = vadd.f32 %v6367_v49, %v2908_v26 }
 0x357   : > { %4894 = vst [vmem:[%s6378_s19 + $0x300] sm:$0xff] %v5317_v23  ;;  %v5319_v29 = vpack.c.bf16 %v3971_v25, %v3970_v20 }
 0x358   : > { %4895 = vst [vmem:[%s6378_s19 + $0x308] sm:$0xff] %v5318_v27  ;;  %v5320_v30 = vpack.c.bf16 %v3973_v28, %v3972_v24 }
 0x359   : > { %4896 = vst [vmem:[%s6378_s19 + $0x310] sm:$0xff] %v5319_v29  ;;  %v2206_v31 = vpop.f32.mrb[100].mxu0 }
 0x35a   : > { %4897 = vst [vmem:[%s6378_s19 + $0x318] sm:$0xff] %v5320_v30  ;;  %v3974_v32 = vadd.f32 %v6361_v44, %v2206_v31  ;;  %v2912_v33 = vpop.f32.mrb[100].mxu1  ;;  %v2208_v34 = vpop.f32.mrb[101].mxu0 }
 0x35b   : > { %v3976_v35 = vadd.f32 %v6363_v45, %v2912_v33  ;;  %v3975_v36 = vadd.f32 %v6365_v46, %v2208_v34  ;;  %v2914_v37 = vpop.f32.mrb[101].mxu1  ;;  %v2210_v38 = vpop.f32.mrb[102].mxu0 }
 0x35c   : > { %v3977_v39 = vadd.f32 %v6367_v49, %v2914_v37  ;;  %v3978_v40 = vadd.f32 %v6361_v44, %v2210_v38  ;;  %v2916_v41 = vpop.f32.mrb[102].mxu1  ;;  %v2212_v42 = vpop.f32.mrb[103].mxu0 }
 0x35d   : > { %v5321_v43 = vpack.c.bf16 %v3975_v36, %v3974_v32  ;;  %v3980_v47 = vadd.f32 %v6363_v45, %v2916_v41  ;;  %v3979_v48 = vadd.f32 %v6365_v46, %v2212_v42  ;;  %v2918_v50 = vpop.f32.mrb[103].mxu1 }
 0x35e   : > { %v5322_v51 = vpack.c.bf16 %v3977_v39, %v3976_v35  ;;  %v3981_v52 = vadd.f32 %v6367_v49, %v2918_v50 }
 0x35f   : > { %4898 = vst [vmem:[%s6378_s19 + $0x320] sm:$0xff] %v5321_v43  ;;  %v5323_v53 = vpack.c.bf16 %v3979_v48, %v3978_v40 }
 0x360   : > { %4899 = vst [vmem:[%s6378_s19 + $0x328] sm:$0xff] %v5322_v51  ;;  %v5324_v54 = vpack.c.bf16 %v3981_v52, %v3980_v47 }
 0x361   : > { %4900 = vst [vmem:[%s6378_s19 + $0x330] sm:$0xff] %v5323_v53  ;;  %v2216_v55 = vpop.f32.mrb[104].mxu0 }
 0x362   : > { %4901 = vst [vmem:[%s6378_s19 + $0x338] sm:$0xff] %v5324_v54  ;;  %v3982_v56 = vadd.f32 %v6361_v44, %v2216_v55  ;;  %v2922_v57 = vpop.f32.mrb[104].mxu1  ;;  %v2218_v58 = vpop.f32.mrb[105].mxu0 }
 0x363   : > { %v3984_v59 = vadd.f32 %v6363_v45, %v2922_v57  ;;  %v3983_v60 = vadd.f32 %v6365_v46, %v2218_v58  ;;  %v2924_v61 = vpop.f32.mrb[105].mxu1  ;;  %v2220_v62 = vpop.f32.mrb[106].mxu0 }
 0x364   : > { %v3985_v63 = vadd.f32 %v6367_v49, %v2924_v61  ;;  %v3986_v0 = vadd.f32 %v6361_v44, %v2220_v62  ;;  %v2926_v1 = vpop.f32.mrb[106].mxu1  ;;  %v2222_v2 = vpop.f32.mrb[107].mxu0 }
 0x365   : > { %v5325_v3 = vpack.c.bf16 %v3983_v60, %v3982_v56  ;;  %v3988_v4 = vadd.f32 %v6363_v45, %v2926_v1  ;;  %v3987_v5 = vadd.f32 %v6365_v46, %v2222_v2  ;;  %v2928_v6 = vpop.f32.mrb[107].mxu1 }
 0x366   : > { %v5326_v7 = vpack.c.bf16 %v3985_v63, %v3984_v59  ;;  %v3989_v8 = vadd.f32 %v6367_v49, %v2928_v6 }
 0x367   : > { %4902 = vst [vmem:[%s6378_s19 + $0x340] sm:$0xff] %v5325_v3  ;;  %v5327_v9 = vpack.c.bf16 %v3987_v5, %v3986_v0 }
 0x368   : > { %4903 = vst [vmem:[%s6378_s19 + $0x348] sm:$0xff] %v5326_v7  ;;  %v5328_v10 = vpack.c.bf16 %v3989_v8, %v3988_v4 }
 0x369   : > { %4904 = vst [vmem:[%s6378_s19 + $0x350] sm:$0xff] %v5327_v9  ;;  %v2226_v11 = vpop.f32.mrb[108].mxu0 }
 0x36a   : > { %4905 = vst [vmem:[%s6378_s19 + $0x358] sm:$0xff] %v5328_v10  ;;  %v3990_v12 = vadd.f32 %v6361_v44, %v2226_v11  ;;  %v2932_v13 = vpop.f32.mrb[108].mxu1  ;;  %v2228_v14 = vpop.f32.mrb[109].mxu0 }
 0x36b   : > { %v3992_v15 = vadd.f32 %v6363_v45, %v2932_v13  ;;  %v3991_v16 = vadd.f32 %v6365_v46, %v2228_v14  ;;  %v2934_v17 = vpop.f32.mrb[109].mxu1  ;;  %v2230_v18 = vpop.f32.mrb[110].mxu0 }
 0x36c   : > { %v3993_v19 = vadd.f32 %v6367_v49, %v2934_v17  ;;  %v3994_v20 = vadd.f32 %v6361_v44, %v2230_v18  ;;  %v2936_v21 = vpop.f32.mrb[110].mxu1  ;;  %v2232_v22 = vpop.f32.mrb[111].mxu0 }
 0x36d   : > { %v5329_v23 = vpack.c.bf16 %v3991_v16, %v3990_v12  ;;  %v3996_v24 = vadd.f32 %v6363_v45, %v2936_v21  ;;  %v3995_v25 = vadd.f32 %v6365_v46, %v2232_v22  ;;  %v2938_v26 = vpop.f32.mrb[111].mxu1 }
 0x36e   : > { %v5330_v27 = vpack.c.bf16 %v3993_v19, %v3992_v15  ;;  %v3997_v28 = vadd.f32 %v6367_v49, %v2938_v26 }
 0x36f   : > { %4906 = vst [vmem:[%s6378_s19 + $0x360] sm:$0xff] %v5329_v23  ;;  %v5331_v29 = vpack.c.bf16 %v3995_v25, %v3994_v20 }
 0x370   : > { %4907 = vst [vmem:[%s6378_s19 + $0x368] sm:$0xff] %v5330_v27  ;;  %v5332_v30 = vpack.c.bf16 %v3997_v28, %v3996_v24 }
 0x371   : > { %4908 = vst [vmem:[%s6378_s19 + $0x370] sm:$0xff] %v5331_v29  ;;  %v2236_v31 = vpop.f32.mrb[112].mxu0 }
 0x372   : > { %4909 = vst [vmem:[%s6378_s19 + $0x378] sm:$0xff] %v5332_v30  ;;  %v3998_v32 = vadd.f32 %v6361_v44, %v2236_v31  ;;  %v2942_v33 = vpop.f32.mrb[112].mxu1  ;;  %v2238_v34 = vpop.f32.mrb[113].mxu0 }
 0x373   : > { %v4000_v35 = vadd.f32 %v6363_v45, %v2942_v33  ;;  %v3999_v36 = vadd.f32 %v6365_v46, %v2238_v34  ;;  %v2944_v37 = vpop.f32.mrb[113].mxu1  ;;  %v2240_v38 = vpop.f32.mrb[114].mxu0 }
 0x374   : > { %v4001_v39 = vadd.f32 %v6367_v49, %v2944_v37  ;;  %v4002_v40 = vadd.f32 %v6361_v44, %v2240_v38  ;;  %v2946_v41 = vpop.f32.mrb[114].mxu1  ;;  %v2242_v42 = vpop.f32.mrb[115].mxu0 }
 0x375   : > { %v5333_v43 = vpack.c.bf16 %v3999_v36, %v3998_v32  ;;  %v4004_v47 = vadd.f32 %v6363_v45, %v2946_v41  ;;  %v4003_v48 = vadd.f32 %v6365_v46, %v2242_v42  ;;  %v2948_v50 = vpop.f32.mrb[115].mxu1 }
 0x376   : > { %v5334_v51 = vpack.c.bf16 %v4001_v39, %v4000_v35  ;;  %v4005_v52 = vadd.f32 %v6367_v49, %v2948_v50 }
 0x377   : > { %4910 = vst [vmem:[%s6378_s19 + $0x380] sm:$0xff] %v5333_v43  ;;  %v5335_v53 = vpack.c.bf16 %v4003_v48, %v4002_v40 }
 0x378   : > { %4911 = vst [vmem:[%s6378_s19 + $0x388] sm:$0xff] %v5334_v51  ;;  %v5336_v54 = vpack.c.bf16 %v4005_v52, %v4004_v47 }
 0x379   : > { %4912 = vst [vmem:[%s6378_s19 + $0x390] sm:$0xff] %v5335_v53  ;;  %v2246_v55 = vpop.f32.mrb[116].mxu0 }
 0x37a   : > { %4913 = vst [vmem:[%s6378_s19 + $0x398] sm:$0xff] %v5336_v54  ;;  %v4006_v56 = vadd.f32 %v6361_v44, %v2246_v55  ;;  %v2952_v57 = vpop.f32.mrb[116].mxu1  ;;  %v2248_v58 = vpop.f32.mrb[117].mxu0 }
 0x37b   : > { %v4008_v59 = vadd.f32 %v6363_v45, %v2952_v57  ;;  %v4007_v60 = vadd.f32 %v6365_v46, %v2248_v58  ;;  %v2954_v61 = vpop.f32.mrb[117].mxu1  ;;  %v2250_v62 = vpop.f32.mrb[118].mxu0 }
 0x37c   : > { %v4009_v63 = vadd.f32 %v6367_v49, %v2954_v61  ;;  %v4010_v0 = vadd.f32 %v6361_v44, %v2250_v62  ;;  %v2956_v1 = vpop.f32.mrb[118].mxu1  ;;  %v2252_v2 = vpop.f32.mrb[119].mxu0 }
 0x37d   : > { %v5337_v3 = vpack.c.bf16 %v4007_v60, %v4006_v56  ;;  %v4012_v4 = vadd.f32 %v6363_v45, %v2956_v1  ;;  %v4011_v5 = vadd.f32 %v6365_v46, %v2252_v2  ;;  %v2958_v6 = vpop.f32.mrb[119].mxu1 }
 0x37e   : > { %v5338_v7 = vpack.c.bf16 %v4009_v63, %v4008_v59  ;;  %v4013_v8 = vadd.f32 %v6367_v49, %v2958_v6 }
 0x37f   : > { %4914 = vst [vmem:[%s6378_s19 + $0x3a0] sm:$0xff] %v5337_v3  ;;  %v5339_v9 = vpack.c.bf16 %v4011_v5, %v4010_v0 }
 0x380   : > { %4915 = vst [vmem:[%s6378_s19 + $0x3a8] sm:$0xff] %v5338_v7  ;;  %v5340_v10 = vpack.c.bf16 %v4013_v8, %v4012_v4 }
 0x381   : > { %4916 = vst [vmem:[%s6378_s19 + $0x3b0] sm:$0xff] %v5339_v9  ;;  %v2256_v11 = vpop.f32.mrb[120].mxu0 }
 0x382   : > { %4917 = vst [vmem:[%s6378_s19 + $0x3b8] sm:$0xff] %v5340_v10  ;;  %v4014_v12 = vadd.f32 %v6361_v44, %v2256_v11  ;;  %v2962_v13 = vpop.f32.mrb[120].mxu1  ;;  %v2258_v14 = vpop.f32.mrb[121].mxu0 }
 0x383   : > { %v4016_v15 = vadd.f32 %v6363_v45, %v2962_v13  ;;  %v4015_v16 = vadd.f32 %v6365_v46, %v2258_v14  ;;  %v2964_v17 = vpop.f32.mrb[121].mxu1  ;;  %v2260_v18 = vpop.f32.mrb[122].mxu0 }
 0x384   : > { %v4017_v19 = vadd.f32 %v6367_v49, %v2964_v17  ;;  %v4018_v20 = vadd.f32 %v6361_v44, %v2260_v18  ;;  %v2966_v21 = vpop.f32.mrb[122].mxu1  ;;  %v2262_v22 = vpop.f32.mrb[123].mxu0 }
 0x385   : > { %v5341_v23 = vpack.c.bf16 %v4015_v16, %v4014_v12  ;;  %v4020_v24 = vadd.f32 %v6363_v45, %v2966_v21  ;;  %v4019_v25 = vadd.f32 %v6365_v46, %v2262_v22  ;;  %v2968_v26 = vpop.f32.mrb[123].mxu1 }
 0x386   : > { %v5342_v27 = vpack.c.bf16 %v4017_v19, %v4016_v15  ;;  %v4021_v28 = vadd.f32 %v6367_v49, %v2968_v26 }
 0x387   : > { %4918 = vst [vmem:[%s6378_s19 + $0x3c0] sm:$0xff] %v5341_v23  ;;  %v5343_v29 = vpack.c.bf16 %v4019_v25, %v4018_v20 }
 0x388   : > { %4919 = vst [vmem:[%s6378_s19 + $0x3c8] sm:$0xff] %v5342_v27  ;;  %v5344_v30 = vpack.c.bf16 %v4021_v28, %v4020_v24 }
 0x389   : > { %4920 = vst [vmem:[%s6378_s19 + $0x3d0] sm:$0xff] %v5343_v29  ;;  %v2266_v31 = vpop.f32.mrb[124].mxu0 }
 0x38a   : > { %4921 = vst [vmem:[%s6378_s19 + $0x3d8] sm:$0xff] %v5344_v30  ;;  %v4022_v32 = vadd.f32 %v6361_v44, %v2266_v31  ;;  %v2972_v33 = vpop.f32.mrb[124].mxu1  ;;  %v2268_v34 = vpop.f32.mrb[125].mxu0 }
 0x38b   : > { %v4024_v35 = vadd.f32 %v6363_v45, %v2972_v33  ;;  %v4023_v36 = vadd.f32 %v6365_v46, %v2268_v34  ;;  %v2974_v37 = vpop.f32.mrb[125].mxu1  ;;  %v2270_v38 = vpop.f32.mrb[126].mxu0 }
 0x38c   : > { %v4025_v39 = vadd.f32 %v6367_v49, %v2974_v37  ;;  %v4026_v40 = vadd.f32 %v6361_v44, %v2270_v38  ;;  %v2976_v41 = vpop.f32.mrb[126].mxu1  ;;  %v2272_v42 = vpop.f32.mrb[127].mxu0 }
 0x38d   : > { %v5345_v43 = vpack.c.bf16 %v4023_v36, %v4022_v32  ;;  %v4028_v47 = vadd.f32 %v6363_v45, %v2976_v41  ;;  %v4027_v48 = vadd.f32 %v6365_v46, %v2272_v42  ;;  %v2978_v50 = vpop.f32.mrb[127].mxu1 }
 0x38e   : > { %v5346_v51 = vpack.c.bf16 %v4025_v39, %v4024_v35  ;;  %v4029_v52 = vadd.f32 %v6367_v49, %v2978_v50 }
 0x38f   : > { %4922 = vst [vmem:[%s6378_s19 + $0x3e0] sm:$0xff] %v5345_v43  ;;  %v5347_v44 = vpack.c.bf16 %v4027_v48, %v4026_v40 }
 0x390   : > { %4923 = vst [vmem:[%s6378_s19 + $0x3e8] sm:$0xff] %v5346_v51  ;;  %v5348_v45 = vpack.c.bf16 %v4029_v52, %v4028_v47 }
 0x391   : > { %4924 = vst [vmem:[%s6378_s19 + $0x3f0] sm:$0xff] %v5347_v44 }
 0x392   : > { %4925 = vst [vmem:[%s6378_s19 + $0x3f8] sm:$0xff] %v5348_v45 }
 0x393   : > { %5791 = shalt.err (!%p5788_p2)
}
 0x394   : > { %s5792_s7 = scalar_lea.hbm %s6757_s23, 16384  ;;  %s5796_s28 = scalar_lea.hbm %s6814_s3, 49152 }
 0x395   : > { %p5793_p5 = scmp.ne.s32.totalorder %s6757_s23, %s5792_s7  ;;  %p5797_p4 = scmp.lt.u32.totalorder %s6757_s23, %s6814_s3 }
 0x396   : > { %p5798_p7 = scmp.lt.u32.totalorder %s5796_s28, %s5792_s7  ;;  %p5800_p9 = scmp.lt.u32.totalorder %s5792_s7, %s6757_s23 }
 0x397   : > { %p5794_p11 = pnand %p5793_p5, %p6838_p12 }
 0x398   : > { %p5799_p0 = por %p5798_p7, %p5797_p4 }
 0x399   : > { %p5795_p8 = pneg %p5794_p11 }
 0x39a   : > { %p5801_p13 = por %p5800_p9, %p5799_p0 }
 0x39c   : > { %p5802_p6 = pnand %p5801_p13, %p5795_p8 }
 0x39e   : > { %5805 = shalt.err (!%p5802_p6)
}
 0x39f   : > { %s5873_s10 = smov 256   ;;  %s5874_s19 = smov 768  }
 0x3a0   : > { %s5875_s11 = smov 16  }
 0x3a1   : > { %5614 = dma.vmem_to_hbm [thread:$0]  (%p6838_p12), %s6760_s22, 16384, %s6757_s23, %s4927_s5, %s5873_s10, %s5874_s19, %s5875_s11  }
 0x3a2 PF: > { %p5634_p3 = scmp.ge.s32.totalorder %s5864_s17, 2  ;;  %s4958_s15 = sand.u32 1, %s5844_s12  }
 0x3a3   : > { %p6839_p1 = scmp.ne.s32.totalorder %s6828_s4, 0  ;;  %s4959_s9 = scalar_lea.sflag [#allocation5], %s4958_s15 }
 0x3a5   : > { %p5628_p10 = pnand %p5634_p3, %p6839_p1 }
 0x3a7   : > { %5839 = dma.done.wait (!%p5628_p10), %s4959_s9, 16384  }
 0x3a8   : > { %5841 = vsyncadd (!%p5628_p10), %s4959_s9, 4294950912  ;;  %s20_s17 = sadd.s32 1, %s5864_s17   ;;  %s6840_s12 = smov %s5848_s13 }
 0x3a9   : > { %p17_p2 = scmp.ge.s32.totalorder %s20_s17, 5   ;;  %s6841_s13 = smov %s5852_s14 }
 0x3aa   : > { %s6842_s14 = smov %s5946_s24  ;;  %s6843_s15 = smov %s5860_s16 }
 0x3ab   : > { %s6844_s16 = smov %s6846_s18  ;;  %19 = sbr.rel (!%p17_p2) target bundleno = 9 (0x9), region = 102 }
 0x3b2   :  { %4964 = vsyncpa [#allocation4], 1 }
 0x3b3   :  { %4966 = vsyncpa [#allocation4 + $0x1], 1 }
 0x3b4   :  { %4967 = vsyncpa [#allocation7], 1 }
 0x3b5   :  { %4969 = vsyncpa [#allocation7 + $0x1], 1 }
 0x3b6   :  { %4970 = vsyncpa [#allocation5], 1 }
 0x3b7   :  { %4972 = vsyncpa [#allocation5 + $0x1], 1 }

</bundles_post_ra>
